<compile_context>
chip_gen: v5e
topology: v5e:2x2
jax: 0.10.0
libtpu: 0.0.40
codegen_flags: <defaults>
</compile_context>

<pallas_src>
import functools

import jax
import jax.numpy as jnp
from jax import lax
from jax.experimental import pallas as pl
from jax.experimental.pallas import tpu as pltpu


_MAX_UNROLL = 16      # fully unroll the per-chunk recurrence up to this Tc
_STORE_GROUP = 8      # steps batched into one wide output store (unrolled path)


# ----------------------------------------------------------------------------
# VMEM budget (generation-aware) and chunk selection
# ----------------------------------------------------------------------------
def _vmem_limit_bytes():
    """~3/4 of per-core VMEM, capped at 100 MiB (v5e/v6e ~96 MiB, v7x 48 MiB).
    Falls back to a 48 MiB request if the hardware query is unavailable."""
    cap = 64 * 1024 * 1024
    try:
        cap = int(pltpu.get_tpu_info().vmem_capacity_bytes)
    except Exception:
        pass
    return min(cap * 3 // 4, 100 * 1024 * 1024)


def _pick_chunk(seq_len, b_pad, feat_max, hidden, act_bytes, vmem_budget):
    """Largest time chunk Tc dividing T whose row-scaled VMEM footprint
    (double-buffered x/out blocks + gi fallback scratch) fits ~half the budget.
    Always returns a divisor of seq_len (worst case 1), so the VMEM cap is
    honored even for odd sequence lengths (previous fallback ignored it)."""
    per_row = (2 * 2 * feat_max * act_bytes    # two x blocks, double-buffered
               + 2 * 2 * hidden * act_bytes    # two out blocks, double-buffered
               + 2 * 3 * hidden * 4)           # gi scratch (fori fallback)
    max_rows = max(b_pad, (vmem_budget // 2) // max(per_row, 1))
    best = 1
    for tc in range(1, seq_len + 1):
        if seq_len % tc == 0 and tc * b_pad <= max_rows:
            best = tc
    return best


# ----------------------------------------------------------------------------
# Pallas kernel: one bidirectional GRU layer, fwd/rev recurrences interleaved
# ----------------------------------------------------------------------------
def _make_layer_kernel(G, B, H, TC, unroll):
    """B here is the 8-aligned (padded) batch, so every t*B offset is
    sublane-aligned.  Gates are packed [r|z|n] on the lane axis."""

    def kernel(xf_ref, xr_ref, w_ih_ref, w_hh_ref, gib_ref, bhn_ref,
               outf_ref, outr_ref, hf_scr, hr_scr, *maybe_gi):
        # xf_ref/xr_ref: (G, TC*B, Din)   fwd chunk c / rev chunk NC-1-c
        # w_ih_ref     : (2, G, Din, 3H)  per-direction packed input weights
        # w_hh_ref     : (2, H, 3H)       per-direction packed hidden weights
        # gib_ref      : (2, 1, 3H)       b_ih (+ b_hh folded for r,z)
        # bhn_ref      : (2, 1, H)        b_hh of the n gate (scaled by r)
        # outf/outr    : (TC*B, H)        chunk outputs per direction
        # hf/hr_scr    : (B, H)           hidden states carried across chunks
        c = pl.program_id(0)

        @pl.when(c == 0)
        def _():
            hf_scr[...] = jnp.zeros_like(hf_scr)
            hr_scr[...] = jnp.zeros_like(hr_scr)

        # ---- Prologue: whole-chunk input projection, one GEMM per half per
        # direction, hoisted out of the serial recurrence (f32 accumulation).
        def proj(x_ref, d):
            acc = jnp.dot(x_ref[0], w_ih_ref[d, 0],
                          preferred_element_type=jnp.float32)
            for g in range(1, G):
                acc = acc + jnp.dot(x_ref[g], w_ih_ref[d, g],
                                    preferred_element_type=jnp.float32)
            return acc + gib_ref[d]                       # (TC*B, 3H) f32

        gi_f = proj(xf_ref, 0)
        gi_r = proj(xr_ref, 1)

        w_hh_f = w_hh_ref[0]                              # (H, 3H) f32
        w_hh_r = w_hh_ref[1]
        b_hn_f = bhn_ref[0]                               # (1, H)
        b_hn_r = bhn_ref[1]

        def cell(h, gi_t, w_hh, b_hn):
            gh = jnp.dot(h, w_hh, preferred_element_type=jnp.float32)
            r = jax.nn.sigmoid(gi_t[:, :H] + gh[:, :H])
            z = jax.nn.sigmoid(gi_t[:, H:2 * H] + gh[:, H:2 * H])
            n = jnp.tanh(gi_t[:, 2 * H:] + r * (gh[:, 2 * H:] + b_hn))
            return (1.0 - z) * n + z * h

        if unroll:
            # Fully unrolled, gi stays in registers (static slices), fwd and
            # rev steps interleaved so their latencies overlap.  Outputs are
            # flushed in wide sublane-aligned groups instead of per step.
            grp = min(TC, _STORE_GROUP)
            hf = hf_scr[...]
            hr = hr_scr[...]
            buf_f, buf_r = [], []
            for i in range(TC):
                tf = i
                tr = TC - 1 - i
                hf = cell(hf, gi_f[tf * B:(tf + 1) * B, :], w_hh_f, b_hn_f)
                hr = cell(hr, gi_r[tr * B:(tr + 1) * B, :], w_hh_r, b_hn_r)
                buf_f.append(hf)
                buf_r.insert(0, hr)            # keep increasing-t order
                if len(buf_f) == grp or i == TC - 1:
                    nrows = len(buf_f) * B
                    start_f = (i + 1) * B - nrows
                    start_r = tr * B
                    outf_ref[pl.ds(start_f, nrows), :] = (
                        jnp.concatenate(buf_f, axis=0).astype(outf_ref.dtype))
                    outr_ref[pl.ds(start_r, nrows), :] = (
                        jnp.concatenate(buf_r, axis=0).astype(outr_ref.dtype))
                    buf_f, buf_r = [], []
            hf_scr[...] = hf
            hr_scr[...] = hr
        else:
            # Large-chunk fallback: gi goes through VMEM scratch; all pl.ds
            # starts are multiples of B (itself a multiple of 8) -> aligned.
            gif_scr, gir_scr = maybe_gi
            gif_scr[...] = gi_f
            gir_scr[...] = gi_r

            def body(i, carry):
                hf, hr = carry
                tf = pl.multiple_of(i * B, B)
                tr = pl.multiple_of((TC - 1 - i) * B, B)
                hf = cell(hf, gif_scr[pl.ds(tf, B), :], w_hh_f, b_hn_f)
                hr = cell(hr, gir_scr[pl.ds(tr, B), :], w_hh_r, b_hn_r)
                outf_ref[pl.ds(tf, B), :] = hf.astype(outf_ref.dtype)
                outr_ref[pl.ds(tr, B), :] = hr.astype(outr_ref.dtype)
                return (hf, hr)

            hf, hr = lax.fori_loop(0, TC, body,
                                   (hf_scr[...], hr_scr[...]), unroll=4)
            hf_scr[...] = hf
            hr_scr[...] = hr

    return kernel


# ----------------------------------------------------------------------------
# Per-layer wrapper
# ----------------------------------------------------------------------------
def bigru_layer(x, w_ih, w_hh, gib, bhn, *, seq_len, b_pad, chunk,
                out_dtype, vmem_limit):
    """One bidirectional GRU layer, both directions interleaved per grid step.

    x : (G, T*Bp, Din)   half-major, row index = t*Bp + b (Bp is 8-aligned)
    Returns (out_fwd, out_rev), each (T*Bp, H) in out_dtype.
    """
    G, rows, d_in = x.shape
    H = w_hh.shape[-1] // 3
    T, Bp, TC = seq_len, b_pad, chunk
    assert rows == T * Bp and T % TC == 0 and Bp % 8 == 0
    NC = T // TC
    unroll = TC <= _MAX_UNROLL

    kernel = _make_layer_kernel(G, Bp, H, TC, unroll)

    scratch = [pltpu.VMEM((Bp, H), jnp.float32),           # fwd hidden state
               pltpu.VMEM((Bp, H), jnp.float32)]           # rev hidden state
    if not unroll:
        scratch += [pltpu.VMEM((TC * Bp, 3 * H), jnp.float32),
                    pltpu.VMEM((TC * Bp, 3 * H), jnp.float32)]

    grid_spec = pltpu.PrefetchScalarGridSpec(
        num_scalar_prefetch=0,
        grid=(NC,),
        in_specs=[
            # same activation array passed twice: fwd chunk c, rev chunk NC-1-c
            pl.BlockSpec((G, TC * Bp, d_in), lambda c: (0, c, 0)),
            pl.BlockSpec((G, TC * Bp, d_in), lambda c: (0, NC - 1 - c, 0)),
            pl.BlockSpec((2, G, d_in, 3 * H), lambda c: (0, 0, 0, 0)),
            pl.BlockSpec((2, H, 3 * H), lambda c: (0, 0, 0)),
            pl.BlockSpec((2, 1, 3 * H), lambda c: (0, 0, 0)),
            pl.BlockSpec((2, 1, H), lambda c: (0, 0, 0)),
        ],
        out_specs=[
            pl.BlockSpec((TC * Bp, H), lambda c: (c, 0)),             # fwd
            pl.BlockSpec((TC * Bp, H), lambda c: (NC - 1 - c, 0)),    # rev
        ],
        scratch_shapes=scratch,
    )
    return pl.pallas_call(
        kernel,
        out_shape=(jax.ShapeDtypeStruct((T * Bp, H), out_dtype),
                   jax.ShapeDtypeStruct((T * Bp, H), out_dtype)),
        grid_spec=grid_spec,
        compiler_params=pltpu.CompilerParams(
            dimension_semantics=("arbitrary",),   # recurrence carried in scratch
            vmem_limit_bytes=vmem_limit,
        ),
    )(x, x, w_ih, w_hh, gib, bhn)


# ----------------------------------------------------------------------------
# Weight packing (one-time) and forward pass
# ----------------------------------------------------------------------------
def pack_params(params, compute_dtype=jnp.float32):
    """Torch-layout GRU/Linear params -> kernel layout.  Done ONCE per dtype."""
    H = params["gru"][0]["fwd"][1].shape[1]
    packed = {"layers": []}
    for li, layer in enumerate(params["gru"]):
        G = 1 if li == 0 else 2
        w_ih_s, w_hh_s, gib_s, bhn_s = [], [], [], []
        for name in ("fwd", "rev"):
            w_ih, w_hh, b_ih, b_hh = layer[name]
            d_in = w_ih.shape[1] // G
            # (3H, G*Din) -> (G, Din, 3H): x_g @ W[g] gives [r|z|n] on the lanes.
            w_ih_s.append(jnp.transpose(w_ih).reshape(G, d_in, 3 * H)
                          .astype(compute_dtype))
            w_hh_s.append(jnp.transpose(w_hh))                       # (H,3H) f32
            gib_s.append(jnp.concatenate([b_ih[:2 * H] + b_hh[:2 * H],
                                          b_ih[2 * H:]]).reshape(1, 3 * H))
            bhn_s.append(b_hh[2 * H:].reshape(1, H))
        packed["layers"].append({
            "w_ih": jnp.stack(w_ih_s), "w_hh": jnp.stack(w_hh_s),
            "gib": jnp.stack(gib_s), "bhn": jnp.stack(bhn_s),
        })
    wd = params["dense_w"]                          # (C, 2H) torch layout
    packed["dense_wf"] = jnp.transpose(wd[:, :H])   # (H, C)  forward half
    packed["dense_wr"] = jnp.transpose(wd[:, H:])   # (H, C)  reverse half
    packed["dense_b"] = params["dense_b"]
    return packed


def bgru_forward(x_btd, packed, compute_dtype=jnp.float32):
    """Pallas implementation of BGRU.forward.  x_btd: (batch, seq, input_size).
    compute_dtype controls the GEMM-operand / inter-layer-activation dtype
    (bf16 for the bf16-native MXUs); accumulation and gate math stay in f32."""
    bsz, seq, d_in = x_btd.shape
    hidden = packed["layers"][0]["w_hh"].shape[-1] // 3
    b_pad = ((bsz + 7) // 8) * 8                    # 8-sublane aligned rows
    act_bytes = jnp.dtype(compute_dtype).itemsize
    vmem_limit = _vmem_limit_bytes()
    tc = _pick_chunk(seq, b_pad, max(d_in, hidden), hidden, act_bytes, vmem_limit)

    # (B,T,D) -> time-major, zero-pad batch to Bp, merge rows (t*Bp + b).
    x = jnp.transpose(x_btd, (1, 0, 2)).astype(compute_dtype)
    if b_pad != bsz:
        x = jnp.pad(x, ((0, 0), (0, b_pad - bsz), (0, 0)))
    layer_in = x.reshape(1, seq * b_pad, d_in)

    out_f = out_r = None
    for lp in packed["layers"]:
        out_f, out_r = bigru_layer(layer_in, lp["w_ih"], lp["w_hh"], lp["gib"],
                                   lp["bhn"], seq_len=seq, b_pad=b_pad,
                                   chunk=tc, out_dtype=compute_dtype,
                                   vmem_limit=vmem_limit)
        layer_in = jnp.stack([out_f, out_r])        # (2, T*Bp, H): next layer's halves

    # output[:, -1, :] == last-time-step rows; the halves are consumed
    # separately so the fwd/rev concat never materializes.  The num_classes-
    # wide Linear head stays in XLA (lane width 4 -> kernel not worth it).
    row0 = (seq - 1) * b_pad
    last_f = out_f[row0:row0 + bsz].astype(jnp.float32)     # (B, H)
    last_r = out_r[row0:row0 + bsz].astype(jnp.float32)     # (B, H)
    return (last_f @ packed["dense_wf"] + last_r @ packed["dense_wr"]
            + packed["dense_b"])


# ----------------------------------------------------------------------------
# Pure-JAX reference (mirrors torch.nn.GRU semantics) for verification
# ----------------------------------------------------------------------------
def bgru_reference(x_btd, params):
    x = jnp.transpose(x_btd, (1, 0, 2)).astype(jnp.float32)

    def run_dir(xs, w_ih, w_hh, b_ih, b_hh):
        H = w_hh.shape[1]

        def cell(h, x_t):
            gi = x_t @ w_ih.T + b_ih
            gh = h @ w_hh.T + b_hh
            i_r, i_z, i_n = jnp.split(gi, 3, axis=-1)
            h_r, h_z, h_n = jnp.split(gh, 3, axis=-1)
            r = jax.nn.sigmoid(i_r + h_r)
            z = jax.nn.sigmoid(i_z + h_z)
            n = jnp.tanh(i_n + r * h_n)
            h_new = (1.0 - z) * n + z * h
            return h_new, h_new

        h0 = jnp.zeros((xs.shape[1], H), jnp.float32)
        _, ys = lax.scan(cell, h0, xs)
        return ys

    layer_in = x
    for layer in params["gru"]:
        fwd = run_dir(layer_in, *layer["fwd"])
        rev = run_dir(layer_in[::-1], *layer["rev"])[::-1]
        layer_in = jnp.concatenate([fwd, rev], axis=-1)
    return layer_in[-1] @ params["dense_w"].T + params["dense_b"]


# ----------------------------------------------------------------------------
# Deterministic parameter init (matches nn.GRU / nn.Linear shapes)
# ----------------------------------------------------------------------------
def init_params(key, input_size, hidden_size, num_layers, num_classes):
    k = 1.0 / float(hidden_size) ** 0.5
    params = {"gru": []}
    for l in range(num_layers):
        d_in = input_size if l == 0 else 2 * hidden_size
        layer = {}
        for name in ("fwd", "rev"):
            key, k1, k2, k3, k4 = jax.random.split(key, 5)
            layer[name] = (
                jax.random.uniform(k1, (3 * hidden_size, d_in), jnp.float32, -k, k),
                jax.random.uniform(k2, (3 * hidden_size, hidden_size), jnp.float32, -k, k),
                jax.random.uniform(k3, (3 * hidden_size,), jnp.float32, -k, k),
                jax.random.uniform(k4, (3 * hidden_size,), jnp.float32, -k, k),
            )
        params["gru"].append(layer)
    kd = 1.0 / float(2 * hidden_size) ** 0.5
    key, k1, k2 = jax.random.split(key, 3)
    params["dense_w"] = jax.random.uniform(k1, (num_classes, 2 * hidden_size),
                                           jnp.float32, -kd, kd)
    params["dense_b"] = jax.random.uniform(k2, (num_classes,), jnp.float32, -kd, kd)
    return params


if __name__ == "__main__":
    INPUT_SIZE, HIDDEN_SIZE, NUM_LAYERS, NUM_CLASSES = 16, 32, 2, 4
    BATCH, SEQ = 2, 8

    root = jax.random.PRNGKey(0)
    kx, kp = jax.random.split(root)
    x = jax.random.normal(kx, (BATCH, SEQ, INPUT_SIZE), jnp.float32)
    params = init_params(kp, INPUT_SIZE, HIDDEN_SIZE, NUM_LAYERS, NUM_CLASSES)

    ref = jax.block_until_ready(bgru_reference(x, params))
    fwd = jax.jit(bgru_forward, static_argnames=("compute_dtype",))

    # f32 path (default): tight agreement with the reference.
    packed32 = pack_params(params, jnp.float32)
    out32 = jax.block_until_ready(fwd(x, packed32, compute_dtype=jnp.float32))
    assert out32.shape == (BATCH, NUM_CLASSES), out32.shape
    assert jnp.allclose(out32, ref, atol=2e-4, rtol=2e-4), (out32, ref)

    # bf16 GEMM-operand path (perf option for bf16-native MXUs): looser check.
    packed16 = pack_params(params, jnp.bfloat16)
    out16 = jax.block_until_ready(fwd(x, packed16, compute_dtype=jnp.bfloat16))
    assert out16.shape == (BATCH, NUM_CLASSES), out16.shape
    assert jnp.allclose(out16, ref, atol=5e-2, rtol=5e-2), (out16, ref)

    print("KERNEL_OK")
</pallas_src>

<mosaic_0001>
module attributes {stable_mosaic.version = 11 : i64} {
  func.func @kernel(%arg0: i32, %arg1: memref<1x64x16xf32, #tpu.memory_space<vmem>>, %arg2: memref<1x64x16xf32, #tpu.memory_space<vmem>>, %arg3: memref<2x1x16x96xf32, #tpu.memory_space<vmem>>, %arg4: memref<2x32x96xf32, #tpu.memory_space<vmem>>, %arg5: memref<2x1x96xf32, #tpu.memory_space<vmem>>, %arg6: memref<2x1x32xf32, #tpu.memory_space<vmem>>, %arg7: memref<64x32xf32, #tpu.memory_space<vmem>>, %arg8: memref<64x32xf32, #tpu.memory_space<vmem>>, %arg9: memref<8x32xf32, #tpu.memory_space<vmem>>, %arg10: memref<8x32xf32, #tpu.memory_space<vmem>>) attributes {dimension_semantics = [#tpu.dimension_semantics<arbitrary>], iteration_bounds = array<i64: 1>, scalar_prefetch = 0 : i64, scratch_operands = 2 : i64, tpu.core_type = #tpu.core_type<tc>, window_params = [{transform_indices = @transform_0, window_bounds = array<i64: 1, 64, 16>}, {transform_indices = @transform_1, window_bounds = array<i64: 1, 64, 16>}, {pipeline_mode = #tpu.pipeline_mode<synchronous>, transform_indices = @transform_2, window_bounds = array<i64: 2, 1, 16, 96>}, {pipeline_mode = #tpu.pipeline_mode<synchronous>, transform_indices = @transform_3, window_bounds = array<i64: 2, 32, 96>}, {pipeline_mode = #tpu.pipeline_mode<synchronous>, transform_indices = @transform_4, window_bounds = array<i64: 2, 1, 96>}, {pipeline_mode = #tpu.pipeline_mode<synchronous>, transform_indices = @transform_5, window_bounds = array<i64: 2, 1, 32>}, {transform_indices = @transform_6, window_bounds = array<i64: 64, 32>}, {transform_indices = @transform_7, window_bounds = array<i64: 64, 32>}]} {
    %c0_i32 = arith.constant 0 : i32
    %0 = arith.cmpi eq, %arg0, %c0_i32 : i32
    %1 = arith.extui %0 : i1 to i32
    %c0_i32_0 = arith.constant 0 : i32
    %2 = arith.cmpi ne, %1, %c0_i32_0 : i32
    scf.if %2 {
      %cst_108 = arith.constant 0.000000e+00 : f32
      %517 = vector.broadcast %cst_108 : f32 to vector<8x32xf32>
      %c0_109 = arith.constant 0 : index
      %c0_110 = arith.constant 0 : index
      %518 = vector.load %arg9[%c0_109, %c0_110] : memref<8x32xf32, #tpu.memory_space<vmem>>, vector<8x32xf32>
      tpu.vector_store %arg9[%c0_109, %c0_110], %517 {strides = array<i32>} : memref<8x32xf32, #tpu.memory_space<vmem>>, vector<8x32xf32>,
      %cst_111 = arith.constant 0.000000e+00 : f32
      %519 = vector.broadcast %cst_111 : f32 to vector<8x32xf32>
      %c0_112 = arith.constant 0 : index
      %c0_113 = arith.constant 0 : index
      %520 = vector.load %arg10[%c0_112, %c0_113] : memref<8x32xf32, #tpu.memory_space<vmem>>, vector<8x32xf32>
      tpu.vector_store %arg10[%c0_112, %c0_113], %519 {strides = array<i32>} : memref<8x32xf32, #tpu.memory_space<vmem>>, vector<8x32xf32>,
    } else {
    }
    %c0 = arith.constant 0 : index
    %c0_1 = arith.constant 0 : index
    %c0_2 = arith.constant 0 : index
    %3 = vector.load %arg1[%c0, %c0_1, %c0_2] : memref<1x64x16xf32, #tpu.memory_space<vmem>>, vector<1x64x16xf32>
    %4 = vector.shape_cast %3 : vector<1x64x16xf32> to vector<64x16xf32>
    %c0_3 = arith.constant 0 : index
    %c0_4 = arith.constant 0 : index
    %c0_5 = arith.constant 0 : index
    %c0_6 = arith.constant 0 : index
    %5 = vector.load %arg3[%c0_3, %c0_4, %c0_5, %c0_6] : memref<2x1x16x96xf32, #tpu.memory_space<vmem>>, vector<1x1x16x96xf32>
    %6 = vector.shape_cast %5 : vector<1x1x16x96xf32> to vector<16x96xf32>
    %cst = arith.constant dense<0.000000e+00> : vector<64x96xf32>
    %7 = tpu.matmul %4, %6, %cst {dimension_numbers = #tpu.dot_dimension_numbers<[1], [0], [0], [1], [0, 0, 1, 1], [], []>} : vector<64x16xf32>, vector<16x96xf32>, vector<64x96xf32> -> vector<64x96xf32>
    %c0_7 = arith.constant 0 : index
    %c0_8 = arith.constant 0 : index
    %c0_9 = arith.constant 0 : index
    %8 = vector.load %arg5[%c0_7, %c0_8, %c0_9] : memref<2x1x96xf32, #tpu.memory_space<vmem>>, vector<1x1x96xf32>
    %9 = vector.shape_cast %8 : vector<1x1x96xf32> to vector<1x96xf32>
    %10 = vector.broadcast %9 : vector<1x96xf32> to vector<64x96xf32>
    %11 = arith.addf %7, %10 : vector<64x96xf32>
    %c0_10 = arith.constant 0 : index
    %c0_11 = arith.constant 0 : index
    %c0_12 = arith.constant 0 : index
    %12 = vector.load %arg2[%c0_10, %c0_11, %c0_12] : memref<1x64x16xf32, #tpu.memory_space<vmem>>, vector<1x64x16xf32>
    %13 = vector.shape_cast %12 : vector<1x64x16xf32> to vector<64x16xf32>
    %c1 = arith.constant 1 : index
    %c0_13 = arith.constant 0 : index
    %c0_14 = arith.constant 0 : index
    %c0_15 = arith.constant 0 : index
    %14 = vector.load %arg3[%c1, %c0_13, %c0_14, %c0_15] : memref<2x1x16x96xf32, #tpu.memory_space<vmem>>, vector<1x1x16x96xf32>
    %15 = vector.shape_cast %14 : vector<1x1x16x96xf32> to vector<16x96xf32>
    %cst_16 = arith.constant dense<0.000000e+00> : vector<64x96xf32>
    %16 = tpu.matmul %13, %15, %cst_16 {dimension_numbers = #tpu.dot_dimension_numbers<[1], [0], [0], [1], [0, 0, 1, 1], [], []>} : vector<64x16xf32>, vector<16x96xf32>, vector<64x96xf32> -> vector<64x96xf32>
    %c1_17 = arith.constant 1 : index
    %c0_18 = arith.constant 0 : index
    %c0_19 = arith.constant 0 : index
    %17 = vector.load %arg5[%c1_17, %c0_18, %c0_19] : memref<2x1x96xf32, #tpu.memory_space<vmem>>, vector<1x1x96xf32>
    %18 = vector.shape_cast %17 : vector<1x1x96xf32> to vector<1x96xf32>
    %19 = vector.broadcast %18 : vector<1x96xf32> to vector<64x96xf32>
    %20 = arith.addf %16, %19 : vector<64x96xf32>
    %c0_20 = arith.constant 0 : index
    %c0_21 = arith.constant 0 : index
    %c0_22 = arith.constant 0 : index
    %21 = vector.load %arg4[%c0_20, %c0_21, %c0_22] : memref<2x32x96xf32, #tpu.memory_space<vmem>>, vector<1x32x96xf32>
    %22 = vector.shape_cast %21 : vector<1x32x96xf32> to vector<32x96xf32>
    %c1_23 = arith.constant 1 : index
    %c0_24 = arith.constant 0 : index
    %c0_25 = arith.constant 0 : index
    %23 = vector.load %arg4[%c1_23, %c0_24, %c0_25] : memref<2x32x96xf32, #tpu.memory_space<vmem>>, vector<1x32x96xf32>
    %24 = vector.shape_cast %23 : vector<1x32x96xf32> to vector<32x96xf32>
    %c0_26 = arith.constant 0 : index
    %c0_27 = arith.constant 0 : index
    %c0_28 = arith.constant 0 : index
    %25 = vector.load %arg6[%c0_26, %c0_27, %c0_28] : memref<2x1x32xf32, #tpu.memory_space<vmem>>, vector<1x1x32xf32>
    %26 = vector.shape_cast %25 : vector<1x1x32xf32> to vector<1x32xf32>
    %c1_29 = arith.constant 1 : index
    %c0_30 = arith.constant 0 : index
    %c0_31 = arith.constant 0 : index
    %27 = vector.load %arg6[%c1_29, %c0_30, %c0_31] : memref<2x1x32xf32, #tpu.memory_space<vmem>>, vector<1x1x32xf32>
    %28 = vector.shape_cast %27 : vector<1x1x32xf32> to vector<1x32xf32>
    %c0_32 = arith.constant 0 : index
    %c0_33 = arith.constant 0 : index
    %29 = vector.load %arg9[%c0_32, %c0_33] : memref<8x32xf32, #tpu.memory_space<vmem>>, vector<8x32xf32>
    %c0_34 = arith.constant 0 : index
    %c0_35 = arith.constant 0 : index
    %30 = vector.load %arg10[%c0_34, %c0_35] : memref<8x32xf32, #tpu.memory_space<vmem>>, vector<8x32xf32>
    %31 = vector.extract_strided_slice %11 {offsets = [0, 0], sizes = [8, 96], strides = [1, 1]} : vector<64x96xf32> to vector<8x96xf32>
    %cst_36 = arith.constant dense<0.000000e+00> : vector<8x96xf32>
    %32 = tpu.matmul %29, %22, %cst_36 {dimension_numbers = #tpu.dot_dimension_numbers<[1], [0], [0], [1], [0, 0, 1, 1], [], []>} : vector<8x32xf32>, vector<32x96xf32>, vector<8x96xf32> -> vector<8x96xf32>
    %33 = vector.extract_strided_slice %31 {offsets = [0, 0], sizes = [8, 32], strides = [1, 1]} : vector<8x96xf32> to vector<8x32xf32>
    %34 = vector.extract_strided_slice %32 {offsets = [0, 0], sizes = [8, 32], strides = [1, 1]} : vector<8x96xf32> to vector<8x32xf32>
    %35 = arith.addf %33, %34 : vector<8x32xf32>
    %36 = arith.negf %35 : vector<8x32xf32>
    %37 = math.exp %36 : vector<8x32xf32>
    %cst_37 = arith.constant 1.000000e+00 : f32
    %38 = vector.broadcast %cst_37 : f32 to vector<8x32xf32>
    %39 = arith.addf %38, %37 : vector<8x32xf32>
    %40 = arith.divf %38, %39 : vector<8x32xf32>
    %41 = vector.extract_strided_slice %31 {offsets = [0, 32], sizes = [8, 32], strides = [1, 1]} : vector<8x96xf32> to vector<8x32xf32>
    %42 = vector.extract_strided_slice %32 {offsets = [0, 32], sizes = [8, 32], strides = [1, 1]} : vector<8x96xf32> to vector<8x32xf32>
    %43 = arith.addf %41, %42 : vector<8x32xf32>
    %44 = arith.negf %43 : vector<8x32xf32>
    %45 = math.exp %44 : vector<8x32xf32>
    %cst_38 = arith.constant 1.000000e+00 : f32
    %46 = vector.broadcast %cst_38 : f32 to vector<8x32xf32>
    %47 = arith.addf %46, %45 : vector<8x32xf32>
    %48 = arith.divf %46, %47 : vector<8x32xf32>
    %49 = vector.extract_strided_slice %31 {offsets = [0, 64], sizes = [8, 32], strides = [1, 1]} : vector<8x96xf32> to vector<8x32xf32>
    %50 = vector.extract_strided_slice %32 {offsets = [0, 64], sizes = [8, 32], strides = [1, 1]} : vector<8x96xf32> to vector<8x32xf32>
    %51 = vector.broadcast %26 : vector<1x32xf32> to vector<8x32xf32>
    %52 = arith.addf %50, %51 : vector<8x32xf32>
    %53 = arith.mulf %40, %52 : vector<8x32xf32>
    %54 = arith.addf %49, %53 : vector<8x32xf32>
    %55 = math.tanh %54 : vector<8x32xf32>
    %cst_39 = arith.constant 1.000000e+00 : f32
    %56 = vector.broadcast %cst_39 : f32 to vector<8x32xf32>
    %57 = arith.subf %56, %48 : vector<8x32xf32>
    %58 = arith.mulf %57, %55 : vector<8x32xf32>
    %59 = arith.mulf %48, %29 : vector<8x32xf32>
    %60 = arith.addf %58, %59 : vector<8x32xf32>
    %61 = vector.extract_strided_slice %20 {offsets = [56, 0], sizes = [8, 96], strides = [1, 1]} : vector<64x96xf32> to vector<8x96xf32>
    %cst_40 = arith.constant dense<0.000000e+00> : vector<8x96xf32>
    %62 = tpu.matmul %30, %24, %cst_40 {dimension_numbers = #tpu.dot_dimension_numbers<[1], [0], [0], [1], [0, 0, 1, 1], [], []>} : vector<8x32xf32>, vector<32x96xf32>, vector<8x96xf32> -> vector<8x96xf32>
    %63 = vector.extract_strided_slice %61 {offsets = [0, 0], sizes = [8, 32], strides = [1, 1]} : vector<8x96xf32> to vector<8x32xf32>
    %64 = vector.extract_strided_slice %62 {offsets = [0, 0], sizes = [8, 32], strides = [1, 1]} : vector<8x96xf32> to vector<8x32xf32>
    %65 = arith.addf %63, %64 : vector<8x32xf32>
    %66 = arith.negf %65 : vector<8x32xf32>
    %67 = math.exp %66 : vector<8x32xf32>
    %cst_41 = arith.constant 1.000000e+00 : f32
    %68 = vector.broadcast %cst_41 : f32 to vector<8x32xf32>
    %69 = arith.addf %68, %67 : vector<8x32xf32>
    %70 = arith.divf %68, %69 : vector<8x32xf32>
    %71 = vector.extract_strided_slice %61 {offsets = [0, 32], sizes = [8, 32], strides = [1, 1]} : vector<8x96xf32> to vector<8x32xf32>
    %72 = vector.extract_strided_slice %62 {offsets = [0, 32], sizes = [8, 32], strides = [1, 1]} : vector<8x96xf32> to vector<8x32xf32>
    %73 = arith.addf %71, %72 : vector<8x32xf32>
    %74 = arith.negf %73 : vector<8x32xf32>
    %75 = math.exp %74 : vector<8x32xf32>
    %cst_42 = arith.constant 1.000000e+00 : f32
    %76 = vector.broadcast %cst_42 : f32 to vector<8x32xf32>
    %77 = arith.addf %76, %75 : vector<8x32xf32>
    %78 = arith.divf %76, %77 : vector<8x32xf32>
    %79 = vector.extract_strided_slice %61 {offsets = [0, 64], sizes = [8, 32], strides = [1, 1]} : vector<8x96xf32> to vector<8x32xf32>
    %80 = vector.extract_strided_slice %62 {offsets = [0, 64], sizes = [8, 32], strides = [1, 1]} : vector<8x96xf32> to vector<8x32xf32>
    %81 = vector.broadcast %28 : vector<1x32xf32> to vector<8x32xf32>
    %82 = arith.addf %80, %81 : vector<8x32xf32>
    %83 = arith.mulf %70, %82 : vector<8x32xf32>
    %84 = arith.addf %79, %83 : vector<8x32xf32>
    %85 = math.tanh %84 : vector<8x32xf32>
    %cst_43 = arith.constant 1.000000e+00 : f32
    %86 = vector.broadcast %cst_43 : f32 to vector<8x32xf32>
    %87 = arith.subf %86, %78 : vector<8x32xf32>
    %88 = arith.mulf %87, %85 : vector<8x32xf32>
    %89 = arith.mulf %78, %30 : vector<8x32xf32>
    %90 = arith.addf %88, %89 : vector<8x32xf32>
    %91 = vector.extract_strided_slice %11 {offsets = [8, 0], sizes = [8, 96], strides = [1, 1]} : vector<64x96xf32> to vector<8x96xf32>
    %cst_44 = arith.constant dense<0.000000e+00> : vector<8x96xf32>
    %92 = tpu.matmul %60, %22, %cst_44 {dimension_numbers = #tpu.dot_dimension_numbers<[1], [0], [0], [1], [0, 0, 1, 1], [], []>} : vector<8x32xf32>, vector<32x96xf32>, vector<8x96xf32> -> vector<8x96xf32>
    %93 = vector.extract_strided_slice %91 {offsets = [0, 0], sizes = [8, 32], strides = [1, 1]} : vector<8x96xf32> to vector<8x32xf32>
    %94 = vector.extract_strided_slice %92 {offsets = [0, 0], sizes = [8, 32], strides = [1, 1]} : vector<8x96xf32> to vector<8x32xf32>
    %95 = arith.addf %93, %94 : vector<8x32xf32>
    %96 = arith.negf %95 : vector<8x32xf32>
    %97 = math.exp %96 : vector<8x32xf32>
    %cst_45 = arith.constant 1.000000e+00 : f32
    %98 = vector.broadcast %cst_45 : f32 to vector<8x32xf32>
    %99 = arith.addf %98, %97 : vector<8x32xf32>
    %100 = arith.divf %98, %99 : vector<8x32xf32>
    %101 = vector.extract_strided_slice %91 {offsets = [0, 32], sizes = [8, 32], strides = [1, 1]} : vector<8x96xf32> to vector<8x32xf32>
    %102 = vector.extract_strided_slice %92 {offsets = [0, 32], sizes = [8, 32], strides = [1, 1]} : vector<8x96xf32> to vector<8x32xf32>
    %103 = arith.addf %101, %102 : vector<8x32xf32>
    %104 = arith.negf %103 : vector<8x32xf32>
    %105 = math.exp %104 : vector<8x32xf32>
    %cst_46 = arith.constant 1.000000e+00 : f32
    %106 = vector.broadcast %cst_46 : f32 to vector<8x32xf32>
    %107 = arith.addf %106, %105 : vector<8x32xf32>
    %108 = arith.divf %106, %107 : vector<8x32xf32>
    %109 = vector.extract_strided_slice %91 {offsets = [0, 64], sizes = [8, 32], strides = [1, 1]} : vector<8x96xf32> to vector<8x32xf32>
    %110 = vector.extract_strided_slice %92 {offsets = [0, 64], sizes = [8, 32], strides = [1, 1]} : vector<8x96xf32> to vector<8x32xf32>
    %111 = vector.broadcast %26 : vector<1x32xf32> to vector<8x32xf32>
    %112 = arith.addf %110, %111 : vector<8x32xf32>
    %113 = arith.mulf %100, %112 : vector<8x32xf32>
    %114 = arith.addf %109, %113 : vector<8x32xf32>
    %115 = math.tanh %114 : vector<8x32xf32>
    %cst_47 = arith.constant 1.000000e+00 : f32
    %116 = vector.broadcast %cst_47 : f32 to vector<8x32xf32>
    %117 = arith.subf %116, %108 : vector<8x32xf32>
    %118 = arith.mulf %117, %115 : vector<8x32xf32>
    %119 = arith.mulf %108, %60 : vector<8x32xf32>
    %120 = arith.addf %118, %119 : vector<8x32xf32>
    %121 = vector.extract_strided_slice %20 {offsets = [48, 0], sizes = [8, 96], strides = [1, 1]} : vector<64x96xf32> to vector<8x96xf32>
    %cst_48 = arith.constant dense<0.000000e+00> : vector<8x96xf32>
    %122 = tpu.matmul %90, %24, %cst_48 {dimension_numbers = #tpu.dot_dimension_numbers<[1], [0], [0], [1], [0, 0, 1, 1], [], []>} : vector<8x32xf32>, vector<32x96xf32>, vector<8x96xf32> -> vector<8x96xf32>
    %123 = vector.extract_strided_slice %121 {offsets = [0, 0], sizes = [8, 32], strides = [1, 1]} : vector<8x96xf32> to vector<8x32xf32>
    %124 = vector.extract_strided_slice %122 {offsets = [0, 0], sizes = [8, 32], strides = [1, 1]} : vector<8x96xf32> to vector<8x32xf32>
    %125 = arith.addf %123, %124 : vector<8x32xf32>
    %126 = arith.negf %125 : vector<8x32xf32>
    %127 = math.exp %126 : vector<8x32xf32>
    %cst_49 = arith.constant 1.000000e+00 : f32
    %128 = vector.broadcast %cst_49 : f32 to vector<8x32xf32>
    %129 = arith.addf %128, %127 : vector<8x32xf32>
    %130 = arith.divf %128, %129 : vector<8x32xf32>
    %131 = vector.extract_strided_slice %121 {offsets = [0, 32], sizes = [8, 32], strides = [1, 1]} : vector<8x96xf32> to vector<8x32xf32>
    %132 = vector.extract_strided_slice %122 {offsets = [0, 32], sizes = [8, 32], strides = [1, 1]} : vector<8x96xf32> to vector<8x32xf32>
    %133 = arith.addf %131, %132 : vector<8x32xf32>
    %134 = arith.negf %133 : vector<8x32xf32>
    %135 = math.exp %134 : vector<8x32xf32>
    %cst_50 = arith.constant 1.000000e+00 : f32
    %136 = vector.broadcast %cst_50 : f32 to vector<8x32xf32>
    %137 = arith.addf %136, %135 : vector<8x32xf32>
    %138 = arith.divf %136, %137 : vector<8x32xf32>
    %139 = vector.extract_strided_slice %121 {offsets = [0, 64], sizes = [8, 32], strides = [1, 1]} : vector<8x96xf32> to vector<8x32xf32>
    %140 = vector.extract_strided_slice %122 {offsets = [0, 64], sizes = [8, 32], strides = [1, 1]} : vector<8x96xf32> to vector<8x32xf32>
    %141 = vector.broadcast %28 : vector<1x32xf32> to vector<8x32xf32>
    %142 = arith.addf %140, %141 : vector<8x32xf32>
    %143 = arith.mulf %130, %142 : vector<8x32xf32>
    %144 = arith.addf %139, %143 : vector<8x32xf32>
    %145 = math.tanh %144 : vector<8x32xf32>
    %cst_51 = arith.constant 1.000000e+00 : f32
    %146 = vector.broadcast %cst_51 : f32 to vector<8x32xf32>
    %147 = arith.subf %146, %138 : vector<8x32xf32>
    %148 = arith.mulf %147, %145 : vector<8x32xf32>
    %149 = arith.mulf %138, %90 : vector<8x32xf32>
    %150 = arith.addf %148, %149 : vector<8x32xf32>
    %151 = vector.extract_strided_slice %11 {offsets = [16, 0], sizes = [8, 96], strides = [1, 1]} : vector<64x96xf32> to vector<8x96xf32>
    %cst_52 = arith.constant dense<0.000000e+00> : vector<8x96xf32>
    %152 = tpu.matmul %120, %22, %cst_52 {dimension_numbers = #tpu.dot_dimension_numbers<[1], [0], [0], [1], [0, 0, 1, 1], [], []>} : vector<8x32xf32>, vector<32x96xf32>, vector<8x96xf32> -> vector<8x96xf32>
    %153 = vector.extract_strided_slice %151 {offsets = [0, 0], sizes = [8, 32], strides = [1, 1]} : vector<8x96xf32> to vector<8x32xf32>
    %154 = vector.extract_strided_slice %152 {offsets = [0, 0], sizes = [8, 32], strides = [1, 1]} : vector<8x96xf32> to vector<8x32xf32>
    %155 = arith.addf %153, %154 : vector<8x32xf32>
    %156 = arith.negf %155 : vector<8x32xf32>
    %157 = math.exp %156 : vector<8x32xf32>
    %cst_53 = arith.constant 1.000000e+00 : f32
    %158 = vector.broadcast %cst_53 : f32 to vector<8x32xf32>
    %159 = arith.addf %158, %157 : vector<8x32xf32>
    %160 = arith.divf %158, %159 : vector<8x32xf32>
    %161 = vector.extract_strided_slice %151 {offsets = [0, 32], sizes = [8, 32], strides = [1, 1]} : vector<8x96xf32> to vector<8x32xf32>
    %162 = vector.extract_strided_slice %152 {offsets = [0, 32], sizes = [8, 32], strides = [1, 1]} : vector<8x96xf32> to vector<8x32xf32>
    %163 = arith.addf %161, %162 : vector<8x32xf32>
    %164 = arith.negf %163 : vector<8x32xf32>
    %165 = math.exp %164 : vector<8x32xf32>
    %cst_54 = arith.constant 1.000000e+00 : f32
    %166 = vector.broadcast %cst_54 : f32 to vector<8x32xf32>
    %167 = arith.addf %166, %165 : vector<8x32xf32>
    %168 = arith.divf %166, %167 : vector<8x32xf32>
    %169 = vector.extract_strided_slice %151 {offsets = [0, 64], sizes = [8, 32], strides = [1, 1]} : vector<8x96xf32> to vector<8x32xf32>
    %170 = vector.extract_strided_slice %152 {offsets = [0, 64], sizes = [8, 32], strides = [1, 1]} : vector<8x96xf32> to vector<8x32xf32>
    %171 = vector.broadcast %26 : vector<1x32xf32> to vector<8x32xf32>
    %172 = arith.addf %170, %171 : vector<8x32xf32>
    %173 = arith.mulf %160, %172 : vector<8x32xf32>
    %174 = arith.addf %169, %173 : vector<8x32xf32>
    %175 = math.tanh %174 : vector<8x32xf32>
    %cst_55 = arith.constant 1.000000e+00 : f32
    %176 = vector.broadcast %cst_55 : f32 to vector<8x32xf32>
    %177 = arith.subf %176, %168 : vector<8x32xf32>
    %178 = arith.mulf %177, %175 : vector<8x32xf32>
    %179 = arith.mulf %168, %120 : vector<8x32xf32>
    %180 = arith.addf %178, %179 : vector<8x32xf32>
    %181 = vector.extract_strided_slice %20 {offsets = [40, 0], sizes = [8, 96], strides = [1, 1]} : vector<64x96xf32> to vector<8x96xf32>
    %cst_56 = arith.constant dense<0.000000e+00> : vector<8x96xf32>
    %182 = tpu.matmul %150, %24, %cst_56 {dimension_numbers = #tpu.dot_dimension_numbers<[1], [0], [0], [1], [0, 0, 1, 1], [], []>} : vector<8x32xf32>, vector<32x96xf32>, vector<8x96xf32> -> vector<8x96xf32>
    %183 = vector.extract_strided_slice %181 {offsets = [0, 0], sizes = [8, 32], strides = [1, 1]} : vector<8x96xf32> to vector<8x32xf32>
    %184 = vector.extract_strided_slice %182 {offsets = [0, 0], sizes = [8, 32], strides = [1, 1]} : vector<8x96xf32> to vector<8x32xf32>
    %185 = arith.addf %183, %184 : vector<8x32xf32>
    %186 = arith.negf %185 : vector<8x32xf32>
    %187 = math.exp %186 : vector<8x32xf32>
    %cst_57 = arith.constant 1.000000e+00 : f32
    %188 = vector.broadcast %cst_57 : f32 to vector<8x32xf32>
    %189 = arith.addf %188, %187 : vector<8x32xf32>
    %190 = arith.divf %188, %189 : vector<8x32xf32>
    %191 = vector.extract_strided_slice %181 {offsets = [0, 32], sizes = [8, 32], strides = [1, 1]} : vector<8x96xf32> to vector<8x32xf32>
    %192 = vector.extract_strided_slice %182 {offsets = [0, 32], sizes = [8, 32], strides = [1, 1]} : vector<8x96xf32> to vector<8x32xf32>
    %193 = arith.addf %191, %192 : vector<8x32xf32>
    %194 = arith.negf %193 : vector<8x32xf32>
    %195 = math.exp %194 : vector<8x32xf32>
    %cst_58 = arith.constant 1.000000e+00 : f32
    %196 = vector.broadcast %cst_58 : f32 to vector<8x32xf32>
    %197 = arith.addf %196, %195 : vector<8x32xf32>
    %198 = arith.divf %196, %197 : vector<8x32xf32>
    %199 = vector.extract_strided_slice %181 {offsets = [0, 64], sizes = [8, 32], strides = [1, 1]} : vector<8x96xf32> to vector<8x32xf32>
    %200 = vector.extract_strided_slice %182 {offsets = [0, 64], sizes = [8, 32], strides = [1, 1]} : vector<8x96xf32> to vector<8x32xf32>
    %201 = vector.broadcast %28 : vector<1x32xf32> to vector<8x32xf32>
    %202 = arith.addf %200, %201 : vector<8x32xf32>
    %203 = arith.mulf %190, %202 : vector<8x32xf32>
    %204 = arith.addf %199, %203 : vector<8x32xf32>
    %205 = math.tanh %204 : vector<8x32xf32>
    %cst_59 = arith.constant 1.000000e+00 : f32
    %206 = vector.broadcast %cst_59 : f32 to vector<8x32xf32>
    %207 = arith.subf %206, %198 : vector<8x32xf32>
    %208 = arith.mulf %207, %205 : vector<8x32xf32>
    %209 = arith.mulf %198, %150 : vector<8x32xf32>
    %210 = arith.addf %208, %209 : vector<8x32xf32>
    %211 = vector.extract_strided_slice %11 {offsets = [24, 0], sizes = [8, 96], strides = [1, 1]} : vector<64x96xf32> to vector<8x96xf32>
    %cst_60 = arith.constant dense<0.000000e+00> : vector<8x96xf32>
    %212 = tpu.matmul %180, %22, %cst_60 {dimension_numbers = #tpu.dot_dimension_numbers<[1], [0], [0], [1], [0, 0, 1, 1], [], []>} : vector<8x32xf32>, vector<32x96xf32>, vector<8x96xf32> -> vector<8x96xf32>
    %213 = vector.extract_strided_slice %211 {offsets = [0, 0], sizes = [8, 32], strides = [1, 1]} : vector<8x96xf32> to vector<8x32xf32>
    %214 = vector.extract_strided_slice %212 {offsets = [0, 0], sizes = [8, 32], strides = [1, 1]} : vector<8x96xf32> to vector<8x32xf32>
    %215 = arith.addf %213, %214 : vector<8x32xf32>
    %216 = arith.negf %215 : vector<8x32xf32>
    %217 = math.exp %216 : vector<8x32xf32>
    %cst_61 = arith.constant 1.000000e+00 : f32
    %218 = vector.broadcast %cst_61 : f32 to vector<8x32xf32>
    %219 = arith.addf %218, %217 : vector<8x32xf32>
    %220 = arith.divf %218, %219 : vector<8x32xf32>
    %221 = vector.extract_strided_slice %211 {offsets = [0, 32], sizes = [8, 32], strides = [1, 1]} : vector<8x96xf32> to vector<8x32xf32>
    %222 = vector.extract_strided_slice %212 {offsets = [0, 32], sizes = [8, 32], strides = [1, 1]} : vector<8x96xf32> to vector<8x32xf32>
    %223 = arith.addf %221, %222 : vector<8x32xf32>
    %224 = arith.negf %223 : vector<8x32xf32>
    %225 = math.exp %224 : vector<8x32xf32>
    %cst_62 = arith.constant 1.000000e+00 : f32
    %226 = vector.broadcast %cst_62 : f32 to vector<8x32xf32>
    %227 = arith.addf %226, %225 : vector<8x32xf32>
    %228 = arith.divf %226, %227 : vector<8x32xf32>
    %229 = vector.extract_strided_slice %211 {offsets = [0, 64], sizes = [8, 32], strides = [1, 1]} : vector<8x96xf32> to vector<8x32xf32>
    %230 = vector.extract_strided_slice %212 {offsets = [0, 64], sizes = [8, 32], strides = [1, 1]} : vector<8x96xf32> to vector<8x32xf32>
    %231 = vector.broadcast %26 : vector<1x32xf32> to vector<8x32xf32>
    %232 = arith.addf %230, %231 : vector<8x32xf32>
    %233 = arith.mulf %220, %232 : vector<8x32xf32>
    %234 = arith.addf %229, %233 : vector<8x32xf32>
    %235 = math.tanh %234 : vector<8x32xf32>
    %cst_63 = arith.constant 1.000000e+00 : f32
    %236 = vector.broadcast %cst_63 : f32 to vector<8x32xf32>
    %237 = arith.subf %236, %228 : vector<8x32xf32>
    %238 = arith.mulf %237, %235 : vector<8x32xf32>
    %239 = arith.mulf %228, %180 : vector<8x32xf32>
    %240 = arith.addf %238, %239 : vector<8x32xf32>
    %241 = vector.extract_strided_slice %20 {offsets = [32, 0], sizes = [8, 96], strides = [1, 1]} : vector<64x96xf32> to vector<8x96xf32>
    %cst_64 = arith.constant dense<0.000000e+00> : vector<8x96xf32>
    %242 = tpu.matmul %210, %24, %cst_64 {dimension_numbers = #tpu.dot_dimension_numbers<[1], [0], [0], [1], [0, 0, 1, 1], [], []>} : vector<8x32xf32>, vector<32x96xf32>, vector<8x96xf32> -> vector<8x96xf32>
    %243 = vector.extract_strided_slice %241 {offsets = [0, 0], sizes = [8, 32], strides = [1, 1]} : vector<8x96xf32> to vector<8x32xf32>
    %244 = vector.extract_strided_slice %242 {offsets = [0, 0], sizes = [8, 32], strides = [1, 1]} : vector<8x96xf32> to vector<8x32xf32>
    %245 = arith.addf %243, %244 : vector<8x32xf32>
    %246 = arith.negf %245 : vector<8x32xf32>
    %247 = math.exp %246 : vector<8x32xf32>
    %cst_65 = arith.constant 1.000000e+00 : f32
    %248 = vector.broadcast %cst_65 : f32 to vector<8x32xf32>
    %249 = arith.addf %248, %247 : vector<8x32xf32>
    %250 = arith.divf %248, %249 : vector<8x32xf32>
    %251 = vector.extract_strided_slice %241 {offsets = [0, 32], sizes = [8, 32], strides = [1, 1]} : vector<8x96xf32> to vector<8x32xf32>
    %252 = vector.extract_strided_slice %242 {offsets = [0, 32], sizes = [8, 32], strides = [1, 1]} : vector<8x96xf32> to vector<8x32xf32>
    %253 = arith.addf %251, %252 : vector<8x32xf32>
    %254 = arith.negf %253 : vector<8x32xf32>
    %255 = math.exp %254 : vector<8x32xf32>
    %cst_66 = arith.constant 1.000000e+00 : f32
    %256 = vector.broadcast %cst_66 : f32 to vector<8x32xf32>
    %257 = arith.addf %256, %255 : vector<8x32xf32>
    %258 = arith.divf %256, %257 : vector<8x32xf32>
    %259 = vector.extract_strided_slice %241 {offsets = [0, 64], sizes = [8, 32], strides = [1, 1]} : vector<8x96xf32> to vector<8x32xf32>
    %260 = vector.extract_strided_slice %242 {offsets = [0, 64], sizes = [8, 32], strides = [1, 1]} : vector<8x96xf32> to vector<8x32xf32>
    %261 = vector.broadcast %28 : vector<1x32xf32> to vector<8x32xf32>
    %262 = arith.addf %260, %261 : vector<8x32xf32>
    %263 = arith.mulf %250, %262 : vector<8x32xf32>
    %264 = arith.addf %259, %263 : vector<8x32xf32>
    %265 = math.tanh %264 : vector<8x32xf32>
    %cst_67 = arith.constant 1.000000e+00 : f32
    %266 = vector.broadcast %cst_67 : f32 to vector<8x32xf32>
    %267 = arith.subf %266, %258 : vector<8x32xf32>
    %268 = arith.mulf %267, %265 : vector<8x32xf32>
    %269 = arith.mulf %258, %210 : vector<8x32xf32>
    %270 = arith.addf %268, %269 : vector<8x32xf32>
    %271 = vector.extract_strided_slice %11 {offsets = [32, 0], sizes = [8, 96], strides = [1, 1]} : vector<64x96xf32> to vector<8x96xf32>
    %cst_68 = arith.constant dense<0.000000e+00> : vector<8x96xf32>
    %272 = tpu.matmul %240, %22, %cst_68 {dimension_numbers = #tpu.dot_dimension_numbers<[1], [0], [0], [1], [0, 0, 1, 1], [], []>} : vector<8x32xf32>, vector<32x96xf32>, vector<8x96xf32> -> vector<8x96xf32>
    %273 = vector.extract_strided_slice %271 {offsets = [0, 0], sizes = [8, 32], strides = [1, 1]} : vector<8x96xf32> to vector<8x32xf32>
    %274 = vector.extract_strided_slice %272 {offsets = [0, 0], sizes = [8, 32], strides = [1, 1]} : vector<8x96xf32> to vector<8x32xf32>
    %275 = arith.addf %273, %274 : vector<8x32xf32>
    %276 = arith.negf %275 : vector<8x32xf32>
    %277 = math.exp %276 : vector<8x32xf32>
    %cst_69 = arith.constant 1.000000e+00 : f32
    %278 = vector.broadcast %cst_69 : f32 to vector<8x32xf32>
    %279 = arith.addf %278, %277 : vector<8x32xf32>
    %280 = arith.divf %278, %279 : vector<8x32xf32>
    %281 = vector.extract_strided_slice %271 {offsets = [0, 32], sizes = [8, 32], strides = [1, 1]} : vector<8x96xf32> to vector<8x32xf32>
    %282 = vector.extract_strided_slice %272 {offsets = [0, 32], sizes = [8, 32], strides = [1, 1]} : vector<8x96xf32> to vector<8x32xf32>
    %283 = arith.addf %281, %282 : vector<8x32xf32>
    %284 = arith.negf %283 : vector<8x32xf32>
    %285 = math.exp %284 : vector<8x32xf32>
    %cst_70 = arith.constant 1.000000e+00 : f32
    %286 = vector.broadcast %cst_70 : f32 to vector<8x32xf32>
    %287 = arith.addf %286, %285 : vector<8x32xf32>
    %288 = arith.divf %286, %287 : vector<8x32xf32>
    %289 = vector.extract_strided_slice %271 {offsets = [0, 64], sizes = [8, 32], strides = [1, 1]} : vector<8x96xf32> to vector<8x32xf32>
    %290 = vector.extract_strided_slice %272 {offsets = [0, 64], sizes = [8, 32], strides = [1, 1]} : vector<8x96xf32> to vector<8x32xf32>
    %291 = vector.broadcast %26 : vector<1x32xf32> to vector<8x32xf32>
    %292 = arith.addf %290, %291 : vector<8x32xf32>
    %293 = arith.mulf %280, %292 : vector<8x32xf32>
    %294 = arith.addf %289, %293 : vector<8x32xf32>
    %295 = math.tanh %294 : vector<8x32xf32>
    %cst_71 = arith.constant 1.000000e+00 : f32
    %296 = vector.broadcast %cst_71 : f32 to vector<8x32xf32>
    %297 = arith.subf %296, %288 : vector<8x32xf32>
    %298 = arith.mulf %297, %295 : vector<8x32xf32>
    %299 = arith.mulf %288, %240 : vector<8x32xf32>
    %300 = arith.addf %298, %299 : vector<8x32xf32>
    %301 = vector.extract_strided_slice %20 {offsets = [24, 0], sizes = [8, 96], strides = [1, 1]} : vector<64x96xf32> to vector<8x96xf32>
    %cst_72 = arith.constant dense<0.000000e+00> : vector<8x96xf32>
    %302 = tpu.matmul %270, %24, %cst_72 {dimension_numbers = #tpu.dot_dimension_numbers<[1], [0], [0], [1], [0, 0, 1, 1], [], []>} : vector<8x32xf32>, vector<32x96xf32>, vector<8x96xf32> -> vector<8x96xf32>
    %303 = vector.extract_strided_slice %301 {offsets = [0, 0], sizes = [8, 32], strides = [1, 1]} : vector<8x96xf32> to vector<8x32xf32>
    %304 = vector.extract_strided_slice %302 {offsets = [0, 0], sizes = [8, 32], strides = [1, 1]} : vector<8x96xf32> to vector<8x32xf32>
    %305 = arith.addf %303, %304 : vector<8x32xf32>
    %306 = arith.negf %305 : vector<8x32xf32>
    %307 = math.exp %306 : vector<8x32xf32>
    %cst_73 = arith.constant 1.000000e+00 : f32
    %308 = vector.broadcast %cst_73 : f32 to vector<8x32xf32>
    %309 = arith.addf %308, %307 : vector<8x32xf32>
    %310 = arith.divf %308, %309 : vector<8x32xf32>
    %311 = vector.extract_strided_slice %301 {offsets = [0, 32], sizes = [8, 32], strides = [1, 1]} : vector<8x96xf32> to vector<8x32xf32>
    %312 = vector.extract_strided_slice %302 {offsets = [0, 32], sizes = [8, 32], strides = [1, 1]} : vector<8x96xf32> to vector<8x32xf32>
    %313 = arith.addf %311, %312 : vector<8x32xf32>
    %314 = arith.negf %313 : vector<8x32xf32>
    %315 = math.exp %314 : vector<8x32xf32>
    %cst_74 = arith.constant 1.000000e+00 : f32
    %316 = vector.broadcast %cst_74 : f32 to vector<8x32xf32>
    %317 = arith.addf %316, %315 : vector<8x32xf32>
    %318 = arith.divf %316, %317 : vector<8x32xf32>
    %319 = vector.extract_strided_slice %301 {offsets = [0, 64], sizes = [8, 32], strides = [1, 1]} : vector<8x96xf32> to vector<8x32xf32>
    %320 = vector.extract_strided_slice %302 {offsets = [0, 64], sizes = [8, 32], strides = [1, 1]} : vector<8x96xf32> to vector<8x32xf32>
    %321 = vector.broadcast %28 : vector<1x32xf32> to vector<8x32xf32>
    %322 = arith.addf %320, %321 : vector<8x32xf32>
    %323 = arith.mulf %310, %322 : vector<8x32xf32>
    %324 = arith.addf %319, %323 : vector<8x32xf32>
    %325 = math.tanh %324 : vector<8x32xf32>
    %cst_75 = arith.constant 1.000000e+00 : f32
    %326 = vector.broadcast %cst_75 : f32 to vector<8x32xf32>
    %327 = arith.subf %326, %318 : vector<8x32xf32>
    %328 = arith.mulf %327, %325 : vector<8x32xf32>
    %329 = arith.mulf %318, %270 : vector<8x32xf32>
    %330 = arith.addf %328, %329 : vector<8x32xf32>
    %331 = vector.extract_strided_slice %11 {offsets = [40, 0], sizes = [8, 96], strides = [1, 1]} : vector<64x96xf32> to vector<8x96xf32>
    %cst_76 = arith.constant dense<0.000000e+00> : vector<8x96xf32>
    %332 = tpu.matmul %300, %22, %cst_76 {dimension_numbers = #tpu.dot_dimension_numbers<[1], [0], [0], [1], [0, 0, 1, 1], [], []>} : vector<8x32xf32>, vector<32x96xf32>, vector<8x96xf32> -> vector<8x96xf32>
    %333 = vector.extract_strided_slice %331 {offsets = [0, 0], sizes = [8, 32], strides = [1, 1]} : vector<8x96xf32> to vector<8x32xf32>
    %334 = vector.extract_strided_slice %332 {offsets = [0, 0], sizes = [8, 32], strides = [1, 1]} : vector<8x96xf32> to vector<8x32xf32>
    %335 = arith.addf %333, %334 : vector<8x32xf32>
    %336 = arith.negf %335 : vector<8x32xf32>
    %337 = math.exp %336 : vector<8x32xf32>
    %cst_77 = arith.constant 1.000000e+00 : f32
    %338 = vector.broadcast %cst_77 : f32 to vector<8x32xf32>
    %339 = arith.addf %338, %337 : vector<8x32xf32>
    %340 = arith.divf %338, %339 : vector<8x32xf32>
    %341 = vector.extract_strided_slice %331 {offsets = [0, 32], sizes = [8, 32], strides = [1, 1]} : vector<8x96xf32> to vector<8x32xf32>
    %342 = vector.extract_strided_slice %332 {offsets = [0, 32], sizes = [8, 32], strides = [1, 1]} : vector<8x96xf32> to vector<8x32xf32>
    %343 = arith.addf %341, %342 : vector<8x32xf32>
    %344 = arith.negf %343 : vector<8x32xf32>
    %345 = math.exp %344 : vector<8x32xf32>
    %cst_78 = arith.constant 1.000000e+00 : f32
    %346 = vector.broadcast %cst_78 : f32 to vector<8x32xf32>
    %347 = arith.addf %346, %345 : vector<8x32xf32>
    %348 = arith.divf %346, %347 : vector<8x32xf32>
    %349 = vector.extract_strided_slice %331 {offsets = [0, 64], sizes = [8, 32], strides = [1, 1]} : vector<8x96xf32> to vector<8x32xf32>
    %350 = vector.extract_strided_slice %332 {offsets = [0, 64], sizes = [8, 32], strides = [1, 1]} : vector<8x96xf32> to vector<8x32xf32>
    %351 = vector.broadcast %26 : vector<1x32xf32> to vector<8x32xf32>
    %352 = arith.addf %350, %351 : vector<8x32xf32>
    %353 = arith.mulf %340, %352 : vector<8x32xf32>
    %354 = arith.addf %349, %353 : vector<8x32xf32>
    %355 = math.tanh %354 : vector<8x32xf32>
    %cst_79 = arith.constant 1.000000e+00 : f32
    %356 = vector.broadcast %cst_79 : f32 to vector<8x32xf32>
    %357 = arith.subf %356, %348 : vector<8x32xf32>
    %358 = arith.mulf %357, %355 : vector<8x32xf32>
    %359 = arith.mulf %348, %300 : vector<8x32xf32>
    %360 = arith.addf %358, %359 : vector<8x32xf32>
    %361 = vector.extract_strided_slice %20 {offsets = [16, 0], sizes = [8, 96], strides = [1, 1]} : vector<64x96xf32> to vector<8x96xf32>
    %cst_80 = arith.constant dense<0.000000e+00> : vector<8x96xf32>
    %362 = tpu.matmul %330, %24, %cst_80 {dimension_numbers = #tpu.dot_dimension_numbers<[1], [0], [0], [1], [0, 0, 1, 1], [], []>} : vector<8x32xf32>, vector<32x96xf32>, vector<8x96xf32> -> vector<8x96xf32>
    %363 = vector.extract_strided_slice %361 {offsets = [0, 0], sizes = [8, 32], strides = [1, 1]} : vector<8x96xf32> to vector<8x32xf32>
    %364 = vector.extract_strided_slice %362 {offsets = [0, 0], sizes = [8, 32], strides = [1, 1]} : vector<8x96xf32> to vector<8x32xf32>
    %365 = arith.addf %363, %364 : vector<8x32xf32>
    %366 = arith.negf %365 : vector<8x32xf32>
    %367 = math.exp %366 : vector<8x32xf32>
    %cst_81 = arith.constant 1.000000e+00 : f32
    %368 = vector.broadcast %cst_81 : f32 to vector<8x32xf32>
    %369 = arith.addf %368, %367 : vector<8x32xf32>
    %370 = arith.divf %368, %369 : vector<8x32xf32>
    %371 = vector.extract_strided_slice %361 {offsets = [0, 32], sizes = [8, 32], strides = [1, 1]} : vector<8x96xf32> to vector<8x32xf32>
    %372 = vector.extract_strided_slice %362 {offsets = [0, 32], sizes = [8, 32], strides = [1, 1]} : vector<8x96xf32> to vector<8x32xf32>
    %373 = arith.addf %371, %372 : vector<8x32xf32>
    %374 = arith.negf %373 : vector<8x32xf32>
    %375 = math.exp %374 : vector<8x32xf32>
    %cst_82 = arith.constant 1.000000e+00 : f32
    %376 = vector.broadcast %cst_82 : f32 to vector<8x32xf32>
    %377 = arith.addf %376, %375 : vector<8x32xf32>
    %378 = arith.divf %376, %377 : vector<8x32xf32>
    %379 = vector.extract_strided_slice %361 {offsets = [0, 64], sizes = [8, 32], strides = [1, 1]} : vector<8x96xf32> to vector<8x32xf32>
    %380 = vector.extract_strided_slice %362 {offsets = [0, 64], sizes = [8, 32], strides = [1, 1]} : vector<8x96xf32> to vector<8x32xf32>
    %381 = vector.broadcast %28 : vector<1x32xf32> to vector<8x32xf32>
    %382 = arith.addf %380, %381 : vector<8x32xf32>
    %383 = arith.mulf %370, %382 : vector<8x32xf32>
    %384 = arith.addf %379, %383 : vector<8x32xf32>
    %385 = math.tanh %384 : vector<8x32xf32>
    %cst_83 = arith.constant 1.000000e+00 : f32
    %386 = vector.broadcast %cst_83 : f32 to vector<8x32xf32>
    %387 = arith.subf %386, %378 : vector<8x32xf32>
    %388 = arith.mulf %387, %385 : vector<8x32xf32>
    %389 = arith.mulf %378, %330 : vector<8x32xf32>
    %390 = arith.addf %388, %389 : vector<8x32xf32>
    %391 = vector.extract_strided_slice %11 {offsets = [48, 0], sizes = [8, 96], strides = [1, 1]} : vector<64x96xf32> to vector<8x96xf32>
    %cst_84 = arith.constant dense<0.000000e+00> : vector<8x96xf32>
    %392 = tpu.matmul %360, %22, %cst_84 {dimension_numbers = #tpu.dot_dimension_numbers<[1], [0], [0], [1], [0, 0, 1, 1], [], []>} : vector<8x32xf32>, vector<32x96xf32>, vector<8x96xf32> -> vector<8x96xf32>
    %393 = vector.extract_strided_slice %391 {offsets = [0, 0], sizes = [8, 32], strides = [1, 1]} : vector<8x96xf32> to vector<8x32xf32>
    %394 = vector.extract_strided_slice %392 {offsets = [0, 0], sizes = [8, 32], strides = [1, 1]} : vector<8x96xf32> to vector<8x32xf32>
    %395 = arith.addf %393, %394 : vector<8x32xf32>
    %396 = arith.negf %395 : vector<8x32xf32>
    %397 = math.exp %396 : vector<8x32xf32>
    %cst_85 = arith.constant 1.000000e+00 : f32
    %398 = vector.broadcast %cst_85 : f32 to vector<8x32xf32>
    %399 = arith.addf %398, %397 : vector<8x32xf32>
    %400 = arith.divf %398, %399 : vector<8x32xf32>
    %401 = vector.extract_strided_slice %391 {offsets = [0, 32], sizes = [8, 32], strides = [1, 1]} : vector<8x96xf32> to vector<8x32xf32>
    %402 = vector.extract_strided_slice %392 {offsets = [0, 32], sizes = [8, 32], strides = [1, 1]} : vector<8x96xf32> to vector<8x32xf32>
    %403 = arith.addf %401, %402 : vector<8x32xf32>
    %404 = arith.negf %403 : vector<8x32xf32>
    %405 = math.exp %404 : vector<8x32xf32>
    %cst_86 = arith.constant 1.000000e+00 : f32
    %406 = vector.broadcast %cst_86 : f32 to vector<8x32xf32>
    %407 = arith.addf %406, %405 : vector<8x32xf32>
    %408 = arith.divf %406, %407 : vector<8x32xf32>
    %409 = vector.extract_strided_slice %391 {offsets = [0, 64], sizes = [8, 32], strides = [1, 1]} : vector<8x96xf32> to vector<8x32xf32>
    %410 = vector.extract_strided_slice %392 {offsets = [0, 64], sizes = [8, 32], strides = [1, 1]} : vector<8x96xf32> to vector<8x32xf32>
    %411 = vector.broadcast %26 : vector<1x32xf32> to vector<8x32xf32>
    %412 = arith.addf %410, %411 : vector<8x32xf32>
    %413 = arith.mulf %400, %412 : vector<8x32xf32>
    %414 = arith.addf %409, %413 : vector<8x32xf32>
    %415 = math.tanh %414 : vector<8x32xf32>
    %cst_87 = arith.constant 1.000000e+00 : f32
    %416 = vector.broadcast %cst_87 : f32 to vector<8x32xf32>
    %417 = arith.subf %416, %408 : vector<8x32xf32>
    %418 = arith.mulf %417, %415 : vector<8x32xf32>
    %419 = arith.mulf %408, %360 : vector<8x32xf32>
    %420 = arith.addf %418, %419 : vector<8x32xf32>
    %421 = vector.extract_strided_slice %20 {offsets = [8, 0], sizes = [8, 96], strides = [1, 1]} : vector<64x96xf32> to vector<8x96xf32>
    %cst_88 = arith.constant dense<0.000000e+00> : vector<8x96xf32>
    %422 = tpu.matmul %390, %24, %cst_88 {dimension_numbers = #tpu.dot_dimension_numbers<[1], [0], [0], [1], [0, 0, 1, 1], [], []>} : vector<8x32xf32>, vector<32x96xf32>, vector<8x96xf32> -> vector<8x96xf32>
    %423 = vector.extract_strided_slice %421 {offsets = [0, 0], sizes = [8, 32], strides = [1, 1]} : vector<8x96xf32> to vector<8x32xf32>
    %424 = vector.extract_strided_slice %422 {offsets = [0, 0], sizes = [8, 32], strides = [1, 1]} : vector<8x96xf32> to vector<8x32xf32>
    %425 = arith.addf %423, %424 : vector<8x32xf32>
    %426 = arith.negf %425 : vector<8x32xf32>
    %427 = math.exp %426 : vector<8x32xf32>
    %cst_89 = arith.constant 1.000000e+00 : f32
    %428 = vector.broadcast %cst_89 : f32 to vector<8x32xf32>
    %429 = arith.addf %428, %427 : vector<8x32xf32>
    %430 = arith.divf %428, %429 : vector<8x32xf32>
    %431 = vector.extract_strided_slice %421 {offsets = [0, 32], sizes = [8, 32], strides = [1, 1]} : vector<8x96xf32> to vector<8x32xf32>
    %432 = vector.extract_strided_slice %422 {offsets = [0, 32], sizes = [8, 32], strides = [1, 1]} : vector<8x96xf32> to vector<8x32xf32>
    %433 = arith.addf %431, %432 : vector<8x32xf32>
    %434 = arith.negf %433 : vector<8x32xf32>
    %435 = math.exp %434 : vector<8x32xf32>
    %cst_90 = arith.constant 1.000000e+00 : f32
    %436 = vector.broadcast %cst_90 : f32 to vector<8x32xf32>
    %437 = arith.addf %436, %435 : vector<8x32xf32>
    %438 = arith.divf %436, %437 : vector<8x32xf32>
    %439 = vector.extract_strided_slice %421 {offsets = [0, 64], sizes = [8, 32], strides = [1, 1]} : vector<8x96xf32> to vector<8x32xf32>
    %440 = vector.extract_strided_slice %422 {offsets = [0, 64], sizes = [8, 32], strides = [1, 1]} : vector<8x96xf32> to vector<8x32xf32>
    %441 = vector.broadcast %28 : vector<1x32xf32> to vector<8x32xf32>
    %442 = arith.addf %440, %441 : vector<8x32xf32>
    %443 = arith.mulf %430, %442 : vector<8x32xf32>
    %444 = arith.addf %439, %443 : vector<8x32xf32>
    %445 = math.tanh %444 : vector<8x32xf32>
    %cst_91 = arith.constant 1.000000e+00 : f32
    %446 = vector.broadcast %cst_91 : f32 to vector<8x32xf32>
    %447 = arith.subf %446, %438 : vector<8x32xf32>
    %448 = arith.mulf %447, %445 : vector<8x32xf32>
    %449 = arith.mulf %438, %390 : vector<8x32xf32>
    %450 = arith.addf %448, %449 : vector<8x32xf32>
    %451 = vector.extract_strided_slice %11 {offsets = [56, 0], sizes = [8, 96], strides = [1, 1]} : vector<64x96xf32> to vector<8x96xf32>
    %cst_92 = arith.constant dense<0.000000e+00> : vector<8x96xf32>
    %452 = tpu.matmul %420, %22, %cst_92 {dimension_numbers = #tpu.dot_dimension_numbers<[1], [0], [0], [1], [0, 0, 1, 1], [], []>} : vector<8x32xf32>, vector<32x96xf32>, vector<8x96xf32> -> vector<8x96xf32>
    %453 = vector.extract_strided_slice %451 {offsets = [0, 0], sizes = [8, 32], strides = [1, 1]} : vector<8x96xf32> to vector<8x32xf32>
    %454 = vector.extract_strided_slice %452 {offsets = [0, 0], sizes = [8, 32], strides = [1, 1]} : vector<8x96xf32> to vector<8x32xf32>
    %455 = arith.addf %453, %454 : vector<8x32xf32>
    %456 = arith.negf %455 : vector<8x32xf32>
    %457 = math.exp %456 : vector<8x32xf32>
    %cst_93 = arith.constant 1.000000e+00 : f32
    %458 = vector.broadcast %cst_93 : f32 to vector<8x32xf32>
    %459 = arith.addf %458, %457 : vector<8x32xf32>
    %460 = arith.divf %458, %459 : vector<8x32xf32>
    %461 = vector.extract_strided_slice %451 {offsets = [0, 32], sizes = [8, 32], strides = [1, 1]} : vector<8x96xf32> to vector<8x32xf32>
    %462 = vector.extract_strided_slice %452 {offsets = [0, 32], sizes = [8, 32], strides = [1, 1]} : vector<8x96xf32> to vector<8x32xf32>
    %463 = arith.addf %461, %462 : vector<8x32xf32>
    %464 = arith.negf %463 : vector<8x32xf32>
    %465 = math.exp %464 : vector<8x32xf32>
    %cst_94 = arith.constant 1.000000e+00 : f32
    %466 = vector.broadcast %cst_94 : f32 to vector<8x32xf32>
    %467 = arith.addf %466, %465 : vector<8x32xf32>
    %468 = arith.divf %466, %467 : vector<8x32xf32>
    %469 = vector.extract_strided_slice %451 {offsets = [0, 64], sizes = [8, 32], strides = [1, 1]} : vector<8x96xf32> to vector<8x32xf32>
    %470 = vector.extract_strided_slice %452 {offsets = [0, 64], sizes = [8, 32], strides = [1, 1]} : vector<8x96xf32> to vector<8x32xf32>
    %471 = vector.broadcast %26 : vector<1x32xf32> to vector<8x32xf32>
    %472 = arith.addf %470, %471 : vector<8x32xf32>
    %473 = arith.mulf %460, %472 : vector<8x32xf32>
    %474 = arith.addf %469, %473 : vector<8x32xf32>
    %475 = math.tanh %474 : vector<8x32xf32>
    %cst_95 = arith.constant 1.000000e+00 : f32
    %476 = vector.broadcast %cst_95 : f32 to vector<8x32xf32>
    %477 = arith.subf %476, %468 : vector<8x32xf32>
    %478 = arith.mulf %477, %475 : vector<8x32xf32>
    %479 = arith.mulf %468, %420 : vector<8x32xf32>
    %480 = arith.addf %478, %479 : vector<8x32xf32>
    %481 = vector.extract_strided_slice %20 {offsets = [0, 0], sizes = [8, 96], strides = [1, 1]} : vector<64x96xf32> to vector<8x96xf32>
    %cst_96 = arith.constant dense<0.000000e+00> : vector<8x96xf32>
    %482 = tpu.matmul %450, %24, %cst_96 {dimension_numbers = #tpu.dot_dimension_numbers<[1], [0], [0], [1], [0, 0, 1, 1], [], []>} : vector<8x32xf32>, vector<32x96xf32>, vector<8x96xf32> -> vector<8x96xf32>
    %483 = vector.extract_strided_slice %481 {offsets = [0, 0], sizes = [8, 32], strides = [1, 1]} : vector<8x96xf32> to vector<8x32xf32>
    %484 = vector.extract_strided_slice %482 {offsets = [0, 0], sizes = [8, 32], strides = [1, 1]} : vector<8x96xf32> to vector<8x32xf32>
    %485 = arith.addf %483, %484 : vector<8x32xf32>
    %486 = arith.negf %485 : vector<8x32xf32>
    %487 = math.exp %486 : vector<8x32xf32>
    %cst_97 = arith.constant 1.000000e+00 : f32
    %488 = vector.broadcast %cst_97 : f32 to vector<8x32xf32>
    %489 = arith.addf %488, %487 : vector<8x32xf32>
    %490 = arith.divf %488, %489 : vector<8x32xf32>
    %491 = vector.extract_strided_slice %481 {offsets = [0, 32], sizes = [8, 32], strides = [1, 1]} : vector<8x96xf32> to vector<8x32xf32>
    %492 = vector.extract_strided_slice %482 {offsets = [0, 32], sizes = [8, 32], strides = [1, 1]} : vector<8x96xf32> to vector<8x32xf32>
    %493 = arith.addf %491, %492 : vector<8x32xf32>
    %494 = arith.negf %493 : vector<8x32xf32>
    %495 = math.exp %494 : vector<8x32xf32>
    %cst_98 = arith.constant 1.000000e+00 : f32
    %496 = vector.broadcast %cst_98 : f32 to vector<8x32xf32>
    %497 = arith.addf %496, %495 : vector<8x32xf32>
    %498 = arith.divf %496, %497 : vector<8x32xf32>
    %499 = vector.extract_strided_slice %481 {offsets = [0, 64], sizes = [8, 32], strides = [1, 1]} : vector<8x96xf32> to vector<8x32xf32>
    %500 = vector.extract_strided_slice %482 {offsets = [0, 64], sizes = [8, 32], strides = [1, 1]} : vector<8x96xf32> to vector<8x32xf32>
    %501 = vector.broadcast %28 : vector<1x32xf32> to vector<8x32xf32>
    %502 = arith.addf %500, %501 : vector<8x32xf32>
    %503 = arith.mulf %490, %502 : vector<8x32xf32>
    %504 = arith.addf %499, %503 : vector<8x32xf32>
    %505 = math.tanh %504 : vector<8x32xf32>
    %cst_99 = arith.constant 1.000000e+00 : f32
    %506 = vector.broadcast %cst_99 : f32 to vector<8x32xf32>
    %507 = arith.subf %506, %498 : vector<8x32xf32>
    %508 = arith.mulf %507, %505 : vector<8x32xf32>
    %509 = arith.mulf %498, %450 : vector<8x32xf32>
    %510 = arith.addf %508, %509 : vector<8x32xf32>
    %511 = tpu.concatenate %60, %120, %180, %240, %300, %360, %420, %480 in 0 : vector<8x32xf32>, vector<8x32xf32>, vector<8x32xf32>, vector<8x32xf32>, vector<8x32xf32>, vector<8x32xf32>, vector<8x32xf32>, vector<8x32xf32> -> vector<64x32xf32>
    %c0_100 = arith.constant 0 : index
    %c0_101 = arith.constant 0 : index
    %512 = vector.load %arg7[%c0_100, %c0_101] : memref<64x32xf32, #tpu.memory_space<vmem>>, vector<64x32xf32>
    tpu.vector_store %arg7[%c0_100, %c0_101], %511 {strides = array<i32>} : memref<64x32xf32, #tpu.memory_space<vmem>>, vector<64x32xf32>,
    %513 = tpu.concatenate %510, %450, %390, %330, %270, %210, %150, %90 in 0 : vector<8x32xf32>, vector<8x32xf32>, vector<8x32xf32>, vector<8x32xf32>, vector<8x32xf32>, vector<8x32xf32>, vector<8x32xf32>, vector<8x32xf32> -> vector<64x32xf32>
    %c0_102 = arith.constant 0 : index
    %c0_103 = arith.constant 0 : index
    %514 = vector.load %arg8[%c0_102, %c0_103] : memref<64x32xf32, #tpu.memory_space<vmem>>, vector<64x32xf32>
    tpu.vector_store %arg8[%c0_102, %c0_103], %513 {strides = array<i32>} : memref<64x32xf32, #tpu.memory_space<vmem>>, vector<64x32xf32>,
    %c0_104 = arith.constant 0 : index
    %c0_105 = arith.constant 0 : index
    %515 = vector.load %arg9[%c0_104, %c0_105] : memref<8x32xf32, #tpu.memory_space<vmem>>, vector<8x32xf32>
    tpu.vector_store %arg9[%c0_104, %c0_105], %480 {strides = array<i32>} : memref<8x32xf32, #tpu.memory_space<vmem>>, vector<8x32xf32>,
    %c0_106 = arith.constant 0 : index
    %c0_107 = arith.constant 0 : index
    %516 = vector.load %arg10[%c0_106, %c0_107] : memref<8x32xf32, #tpu.memory_space<vmem>>, vector<8x32xf32>
    tpu.vector_store %arg10[%c0_106, %c0_107], %510 {strides = array<i32>} : memref<8x32xf32, #tpu.memory_space<vmem>>, vector<8x32xf32>,
    return
  }
  func.func @transform_0(%arg0: i32) -> (i32, i32, i32) {
    %c0_i32 = arith.constant 0 : i32
    %c0_i32_0 = arith.constant 0 : i32
    %c0_i32_1 = arith.constant 0 : i32
    return %c0_i32, %arg0, %c0_i32_0 : i32, i32, i32
  }
  func.func @transform_1(%arg0: i32) -> (i32, i32, i32) {
    %c0_i32 = arith.constant 0 : i32
    %0 = arith.subi %c0_i32, %arg0 : i32
    %c0_i32_0 = arith.constant 0 : i32
    %c0_i32_1 = arith.constant 0 : i32
    %c0_i32_2 = arith.constant 0 : i32
    return %c0_i32_0, %0, %c0_i32_1 : i32, i32, i32
  }
  func.func @transform_2(%arg0: i32) -> (i32, i32, i32, i32) {
    %c0_i32 = arith.constant 0 : i32
    %c0_i32_0 = arith.constant 0 : i32
    %c0_i32_1 = arith.constant 0 : i32
    %c0_i32_2 = arith.constant 0 : i32
    %c0_i32_3 = arith.constant 0 : i32
    return %c0_i32, %c0_i32_0, %c0_i32_1, %c0_i32_2 : i32, i32, i32, i32
  }
  func.func @transform_3(%arg0: i32) -> (i32, i32, i32) {
    %c0_i32 = arith.constant 0 : i32
    %c0_i32_0 = arith.constant 0 : i32
    %c0_i32_1 = arith.constant 0 : i32
    %c0_i32_2 = arith.constant 0 : i32
    return %c0_i32, %c0_i32_0, %c0_i32_1 : i32, i32, i32
  }
  func.func @transform_4(%arg0: i32) -> (i32, i32, i32) {
    %c0_i32 = arith.constant 0 : i32
    %c0_i32_0 = arith.constant 0 : i32
    %c0_i32_1 = arith.constant 0 : i32
    %c0_i32_2 = arith.constant 0 : i32
    return %c0_i32, %c0_i32_0, %c0_i32_1 : i32, i32, i32
  }
  func.func @transform_5(%arg0: i32) -> (i32, i32, i32) {
    %c0_i32 = arith.constant 0 : i32
    %c0_i32_0 = arith.constant 0 : i32
    %c0_i32_1 = arith.constant 0 : i32
    %c0_i32_2 = arith.constant 0 : i32
    return %c0_i32, %c0_i32_0, %c0_i32_1 : i32, i32, i32
  }
  func.func @transform_6(%arg0: i32) -> (i32, i32) {
    %c0_i32 = arith.constant 0 : i32
    %c0_i32_0 = arith.constant 0 : i32
    return %arg0, %c0_i32 : i32, i32
  }
  func.func @transform_7(%arg0: i32) -> (i32, i32) {
    %c0_i32 = arith.constant 0 : i32
    %0 = arith.subi %c0_i32, %arg0 : i32
    %c0_i32_0 = arith.constant 0 : i32
    %c0_i32_1 = arith.constant 0 : i32
    return %0, %c0_i32_0 : i32, i32
  }
}

module attributes {stable_mosaic.version = 11 : i64} {
  func.func @kernel(%arg0: i32, %arg1: memref<2x64x32xf32, #tpu.memory_space<vmem>>, %arg2: memref<2x64x32xf32, #tpu.memory_space<vmem>>, %arg3: memref<2x2x32x96xf32, #tpu.memory_space<vmem>>, %arg4: memref<2x32x96xf32, #tpu.memory_space<vmem>>, %arg5: memref<2x1x96xf32, #tpu.memory_space<vmem>>, %arg6: memref<2x1x32xf32, #tpu.memory_space<vmem>>, %arg7: memref<64x32xf32, #tpu.memory_space<vmem>>, %arg8: memref<64x32xf32, #tpu.memory_space<vmem>>, %arg9: memref<8x32xf32, #tpu.memory_space<vmem>>, %arg10: memref<8x32xf32, #tpu.memory_space<vmem>>) attributes {dimension_semantics = [#tpu.dimension_semantics<arbitrary>], iteration_bounds = array<i64: 1>, scalar_prefetch = 0 : i64, scratch_operands = 2 : i64, tpu.core_type = #tpu.core_type<tc>, window_params = [{transform_indices = @transform_0, window_bounds = array<i64: 2, 64, 32>}, {transform_indices = @transform_1, window_bounds = array<i64: 2, 64, 32>}, {pipeline_mode = #tpu.pipeline_mode<synchronous>, transform_indices = @transform_2, window_bounds = array<i64: 2, 2, 32, 96>}, {pipeline_mode = #tpu.pipeline_mode<synchronous>, transform_indices = @transform_3, window_bounds = array<i64: 2, 32, 96>}, {pipeline_mode = #tpu.pipeline_mode<synchronous>, transform_indices = @transform_4, window_bounds = array<i64: 2, 1, 96>}, {pipeline_mode = #tpu.pipeline_mode<synchronous>, transform_indices = @transform_5, window_bounds = array<i64: 2, 1, 32>}, {transform_indices = @transform_6, window_bounds = array<i64: 64, 32>}, {transform_indices = @transform_7, window_bounds = array<i64: 64, 32>}]} {
    %c0_i32 = arith.constant 0 : i32
    %0 = arith.cmpi eq, %arg0, %c0_i32 : i32
    %1 = arith.extui %0 : i1 to i32
    %c0_i32_0 = arith.constant 0 : i32
    %2 = arith.cmpi ne, %1, %c0_i32_0 : i32
    scf.if %2 {
      %cst_124 = arith.constant 0.000000e+00 : f32
      %529 = vector.broadcast %cst_124 : f32 to vector<8x32xf32>
      %c0_125 = arith.constant 0 : index
      %c0_126 = arith.constant 0 : index
      %530 = vector.load %arg9[%c0_125, %c0_126] : memref<8x32xf32, #tpu.memory_space<vmem>>, vector<8x32xf32>
      tpu.vector_store %arg9[%c0_125, %c0_126], %529 {strides = array<i32>} : memref<8x32xf32, #tpu.memory_space<vmem>>, vector<8x32xf32>,
      %cst_127 = arith.constant 0.000000e+00 : f32
      %531 = vector.broadcast %cst_127 : f32 to vector<8x32xf32>
      %c0_128 = arith.constant 0 : index
      %c0_129 = arith.constant 0 : index
      %532 = vector.load %arg10[%c0_128, %c0_129] : memref<8x32xf32, #tpu.memory_space<vmem>>, vector<8x32xf32>
      tpu.vector_store %arg10[%c0_128, %c0_129], %531 {strides = array<i32>} : memref<8x32xf32, #tpu.memory_space<vmem>>, vector<8x32xf32>,
    } else {
    }
    %c0 = arith.constant 0 : index
    %c0_1 = arith.constant 0 : index
    %c0_2 = arith.constant 0 : index
    %3 = vector.load %arg1[%c0, %c0_1, %c0_2] : memref<2x64x32xf32, #tpu.memory_space<vmem>>, vector<1x64x32xf32>
    %4 = vector.shape_cast %3 : vector<1x64x32xf32> to vector<64x32xf32>
    %c0_3 = arith.constant 0 : index
    %c0_4 = arith.constant 0 : index
    %c0_5 = arith.constant 0 : index
    %c0_6 = arith.constant 0 : index
    %5 = vector.load %arg3[%c0_3, %c0_4, %c0_5, %c0_6] : memref<2x2x32x96xf32, #tpu.memory_space<vmem>>, vector<1x1x32x96xf32>
    %6 = vector.shape_cast %5 : vector<1x1x32x96xf32> to vector<32x96xf32>
    %cst = arith.constant dense<0.000000e+00> : vector<64x96xf32>
    %7 = tpu.matmul %4, %6, %cst {dimension_numbers = #tpu.dot_dimension_numbers<[1], [0], [0], [1], [0, 0, 1, 1], [], []>} : vector<64x32xf32>, vector<32x96xf32>, vector<64x96xf32> -> vector<64x96xf32>
    %c1 = arith.constant 1 : index
    %c0_7 = arith.constant 0 : index
    %c0_8 = arith.constant 0 : index
    %8 = vector.load %arg1[%c1, %c0_7, %c0_8] : memref<2x64x32xf32, #tpu.memory_space<vmem>>, vector<1x64x32xf32>
    %9 = vector.shape_cast %8 : vector<1x64x32xf32> to vector<64x32xf32>
    %c0_9 = arith.constant 0 : index
    %c1_10 = arith.constant 1 : index
    %c0_11 = arith.constant 0 : index
    %c0_12 = arith.constant 0 : index
    %10 = vector.load %arg3[%c0_9, %c1_10, %c0_11, %c0_12] : memref<2x2x32x96xf32, #tpu.memory_space<vmem>>, vector<1x1x32x96xf32>
    %11 = vector.shape_cast %10 : vector<1x1x32x96xf32> to vector<32x96xf32>
    %cst_13 = arith.constant dense<0.000000e+00> : vector<64x96xf32>
    %12 = tpu.matmul %9, %11, %cst_13 {dimension_numbers = #tpu.dot_dimension_numbers<[1], [0], [0], [1], [0, 0, 1, 1], [], []>} : vector<64x32xf32>, vector<32x96xf32>, vector<64x96xf32> -> vector<64x96xf32>
    %13 = arith.addf %7, %12 : vector<64x96xf32>
    %c0_14 = arith.constant 0 : index
    %c0_15 = arith.constant 0 : index
    %c0_16 = arith.constant 0 : index
    %14 = vector.load %arg5[%c0_14, %c0_15, %c0_16] : memref<2x1x96xf32, #tpu.memory_space<vmem>>, vector<1x1x96xf32>
    %15 = vector.shape_cast %14 : vector<1x1x96xf32> to vector<1x96xf32>
    %16 = vector.broadcast %15 : vector<1x96xf32> to vector<64x96xf32>
    %17 = arith.addf %13, %16 : vector<64x96xf32>
    %c0_17 = arith.constant 0 : index
    %c0_18 = arith.constant 0 : index
    %c0_19 = arith.constant 0 : index
    %18 = vector.load %arg2[%c0_17, %c0_18, %c0_19] : memref<2x64x32xf32, #tpu.memory_space<vmem>>, vector<1x64x32xf32>
    %19 = vector.shape_cast %18 : vector<1x64x32xf32> to vector<64x32xf32>
    %c1_20 = arith.constant 1 : index
    %c0_21 = arith.constant 0 : index
    %c0_22 = arith.constant 0 : index
    %c0_23 = arith.constant 0 : index
    %20 = vector.load %arg3[%c1_20, %c0_21, %c0_22, %c0_23] : memref<2x2x32x96xf32, #tpu.memory_space<vmem>>, vector<1x1x32x96xf32>
    %21 = vector.shape_cast %20 : vector<1x1x32x96xf32> to vector<32x96xf32>
    %cst_24 = arith.constant dense<0.000000e+00> : vector<64x96xf32>
    %22 = tpu.matmul %19, %21, %cst_24 {dimension_numbers = #tpu.dot_dimension_numbers<[1], [0], [0], [1], [0, 0, 1, 1], [], []>} : vector<64x32xf32>, vector<32x96xf32>, vector<64x96xf32> -> vector<64x96xf32>
    %c1_25 = arith.constant 1 : index
    %c0_26 = arith.constant 0 : index
    %c0_27 = arith.constant 0 : index
    %23 = vector.load %arg2[%c1_25, %c0_26, %c0_27] : memref<2x64x32xf32, #tpu.memory_space<vmem>>, vector<1x64x32xf32>
    %24 = vector.shape_cast %23 : vector<1x64x32xf32> to vector<64x32xf32>
    %c1_28 = arith.constant 1 : index
    %c1_29 = arith.constant 1 : index
    %c0_30 = arith.constant 0 : index
    %c0_31 = arith.constant 0 : index
    %25 = vector.load %arg3[%c1_28, %c1_29, %c0_30, %c0_31] : memref<2x2x32x96xf32, #tpu.memory_space<vmem>>, vector<1x1x32x96xf32>
    %26 = vector.shape_cast %25 : vector<1x1x32x96xf32> to vector<32x96xf32>
    %cst_32 = arith.constant dense<0.000000e+00> : vector<64x96xf32>
    %27 = tpu.matmul %24, %26, %cst_32 {dimension_numbers = #tpu.dot_dimension_numbers<[1], [0], [0], [1], [0, 0, 1, 1], [], []>} : vector<64x32xf32>, vector<32x96xf32>, vector<64x96xf32> -> vector<64x96xf32>
    %28 = arith.addf %22, %27 : vector<64x96xf32>
    %c1_33 = arith.constant 1 : index
    %c0_34 = arith.constant 0 : index
    %c0_35 = arith.constant 0 : index
    %29 = vector.load %arg5[%c1_33, %c0_34, %c0_35] : memref<2x1x96xf32, #tpu.memory_space<vmem>>, vector<1x1x96xf32>
    %30 = vector.shape_cast %29 : vector<1x1x96xf32> to vector<1x96xf32>
    %31 = vector.broadcast %30 : vector<1x96xf32> to vector<64x96xf32>
    %32 = arith.addf %28, %31 : vector<64x96xf32>
    %c0_36 = arith.constant 0 : index
    %c0_37 = arith.constant 0 : index
    %c0_38 = arith.constant 0 : index
    %33 = vector.load %arg4[%c0_36, %c0_37, %c0_38] : memref<2x32x96xf32, #tpu.memory_space<vmem>>, vector<1x32x96xf32>
    %34 = vector.shape_cast %33 : vector<1x32x96xf32> to vector<32x96xf32>
    %c1_39 = arith.constant 1 : index
    %c0_40 = arith.constant 0 : index
    %c0_41 = arith.constant 0 : index
    %35 = vector.load %arg4[%c1_39, %c0_40, %c0_41] : memref<2x32x96xf32, #tpu.memory_space<vmem>>, vector<1x32x96xf32>
    %36 = vector.shape_cast %35 : vector<1x32x96xf32> to vector<32x96xf32>
    %c0_42 = arith.constant 0 : index
    %c0_43 = arith.constant 0 : index
    %c0_44 = arith.constant 0 : index
    %37 = vector.load %arg6[%c0_42, %c0_43, %c0_44] : memref<2x1x32xf32, #tpu.memory_space<vmem>>, vector<1x1x32xf32>
    %38 = vector.shape_cast %37 : vector<1x1x32xf32> to vector<1x32xf32>
    %c1_45 = arith.constant 1 : index
    %c0_46 = arith.constant 0 : index
    %c0_47 = arith.constant 0 : index
    %39 = vector.load %arg6[%c1_45, %c0_46, %c0_47] : memref<2x1x32xf32, #tpu.memory_space<vmem>>, vector<1x1x32xf32>
    %40 = vector.shape_cast %39 : vector<1x1x32xf32> to vector<1x32xf32>
    %c0_48 = arith.constant 0 : index
    %c0_49 = arith.constant 0 : index
    %41 = vector.load %arg9[%c0_48, %c0_49] : memref<8x32xf32, #tpu.memory_space<vmem>>, vector<8x32xf32>
    %c0_50 = arith.constant 0 : index
    %c0_51 = arith.constant 0 : index
    %42 = vector.load %arg10[%c0_50, %c0_51] : memref<8x32xf32, #tpu.memory_space<vmem>>, vector<8x32xf32>
    %43 = vector.extract_strided_slice %17 {offsets = [0, 0], sizes = [8, 96], strides = [1, 1]} : vector<64x96xf32> to vector<8x96xf32>
    %cst_52 = arith.constant dense<0.000000e+00> : vector<8x96xf32>
    %44 = tpu.matmul %41, %34, %cst_52 {dimension_numbers = #tpu.dot_dimension_numbers<[1], [0], [0], [1], [0, 0, 1, 1], [], []>} : vector<8x32xf32>, vector<32x96xf32>, vector<8x96xf32> -> vector<8x96xf32>
    %45 = vector.extract_strided_slice %43 {offsets = [0, 0], sizes = [8, 32], strides = [1, 1]} : vector<8x96xf32> to vector<8x32xf32>
    %46 = vector.extract_strided_slice %44 {offsets = [0, 0], sizes = [8, 32], strides = [1, 1]} : vector<8x96xf32> to vector<8x32xf32>
    %47 = arith.addf %45, %46 : vector<8x32xf32>
    %48 = arith.negf %47 : vector<8x32xf32>
    %49 = math.exp %48 : vector<8x32xf32>
    %cst_53 = arith.constant 1.000000e+00 : f32
    %50 = vector.broadcast %cst_53 : f32 to vector<8x32xf32>
    %51 = arith.addf %50, %49 : vector<8x32xf32>
    %52 = arith.divf %50, %51 : vector<8x32xf32>
    %53 = vector.extract_strided_slice %43 {offsets = [0, 32], sizes = [8, 32], strides = [1, 1]} : vector<8x96xf32> to vector<8x32xf32>
    %54 = vector.extract_strided_slice %44 {offsets = [0, 32], sizes = [8, 32], strides = [1, 1]} : vector<8x96xf32> to vector<8x32xf32>
    %55 = arith.addf %53, %54 : vector<8x32xf32>
    %56 = arith.negf %55 : vector<8x32xf32>
    %57 = math.exp %56 : vector<8x32xf32>
    %cst_54 = arith.constant 1.000000e+00 : f32
    %58 = vector.broadcast %cst_54 : f32 to vector<8x32xf32>
    %59 = arith.addf %58, %57 : vector<8x32xf32>
    %60 = arith.divf %58, %59 : vector<8x32xf32>
    %61 = vector.extract_strided_slice %43 {offsets = [0, 64], sizes = [8, 32], strides = [1, 1]} : vector<8x96xf32> to vector<8x32xf32>
    %62 = vector.extract_strided_slice %44 {offsets = [0, 64], sizes = [8, 32], strides = [1, 1]} : vector<8x96xf32> to vector<8x32xf32>
    %63 = vector.broadcast %38 : vector<1x32xf32> to vector<8x32xf32>
    %64 = arith.addf %62, %63 : vector<8x32xf32>
    %65 = arith.mulf %52, %64 : vector<8x32xf32>
    %66 = arith.addf %61, %65 : vector<8x32xf32>
    %67 = math.tanh %66 : vector<8x32xf32>
    %cst_55 = arith.constant 1.000000e+00 : f32
    %68 = vector.broadcast %cst_55 : f32 to vector<8x32xf32>
    %69 = arith.subf %68, %60 : vector<8x32xf32>
    %70 = arith.mulf %69, %67 : vector<8x32xf32>
    %71 = arith.mulf %60, %41 : vector<8x32xf32>
    %72 = arith.addf %70, %71 : vector<8x32xf32>
    %73 = vector.extract_strided_slice %32 {offsets = [56, 0], sizes = [8, 96], strides = [1, 1]} : vector<64x96xf32> to vector<8x96xf32>
    %cst_56 = arith.constant dense<0.000000e+00> : vector<8x96xf32>
    %74 = tpu.matmul %42, %36, %cst_56 {dimension_numbers = #tpu.dot_dimension_numbers<[1], [0], [0], [1], [0, 0, 1, 1], [], []>} : vector<8x32xf32>, vector<32x96xf32>, vector<8x96xf32> -> vector<8x96xf32>
    %75 = vector.extract_strided_slice %73 {offsets = [0, 0], sizes = [8, 32], strides = [1, 1]} : vector<8x96xf32> to vector<8x32xf32>
    %76 = vector.extract_strided_slice %74 {offsets = [0, 0], sizes = [8, 32], strides = [1, 1]} : vector<8x96xf32> to vector<8x32xf32>
    %77 = arith.addf %75, %76 : vector<8x32xf32>
    %78 = arith.negf %77 : vector<8x32xf32>
    %79 = math.exp %78 : vector<8x32xf32>
    %cst_57 = arith.constant 1.000000e+00 : f32
    %80 = vector.broadcast %cst_57 : f32 to vector<8x32xf32>
    %81 = arith.addf %80, %79 : vector<8x32xf32>
    %82 = arith.divf %80, %81 : vector<8x32xf32>
    %83 = vector.extract_strided_slice %73 {offsets = [0, 32], sizes = [8, 32], strides = [1, 1]} : vector<8x96xf32> to vector<8x32xf32>
    %84 = vector.extract_strided_slice %74 {offsets = [0, 32], sizes = [8, 32], strides = [1, 1]} : vector<8x96xf32> to vector<8x32xf32>
    %85 = arith.addf %83, %84 : vector<8x32xf32>
    %86 = arith.negf %85 : vector<8x32xf32>
    %87 = math.exp %86 : vector<8x32xf32>
    %cst_58 = arith.constant 1.000000e+00 : f32
    %88 = vector.broadcast %cst_58 : f32 to vector<8x32xf32>
    %89 = arith.addf %88, %87 : vector<8x32xf32>
    %90 = arith.divf %88, %89 : vector<8x32xf32>
    %91 = vector.extract_strided_slice %73 {offsets = [0, 64], sizes = [8, 32], strides = [1, 1]} : vector<8x96xf32> to vector<8x32xf32>
    %92 = vector.extract_strided_slice %74 {offsets = [0, 64], sizes = [8, 32], strides = [1, 1]} : vector<8x96xf32> to vector<8x32xf32>
    %93 = vector.broadcast %40 : vector<1x32xf32> to vector<8x32xf32>
    %94 = arith.addf %92, %93 : vector<8x32xf32>
    %95 = arith.mulf %82, %94 : vector<8x32xf32>
    %96 = arith.addf %91, %95 : vector<8x32xf32>
    %97 = math.tanh %96 : vector<8x32xf32>
    %cst_59 = arith.constant 1.000000e+00 : f32
    %98 = vector.broadcast %cst_59 : f32 to vector<8x32xf32>
    %99 = arith.subf %98, %90 : vector<8x32xf32>
    %100 = arith.mulf %99, %97 : vector<8x32xf32>
    %101 = arith.mulf %90, %42 : vector<8x32xf32>
    %102 = arith.addf %100, %101 : vector<8x32xf32>
    %103 = vector.extract_strided_slice %17 {offsets = [8, 0], sizes = [8, 96], strides = [1, 1]} : vector<64x96xf32> to vector<8x96xf32>
    %cst_60 = arith.constant dense<0.000000e+00> : vector<8x96xf32>
    %104 = tpu.matmul %72, %34, %cst_60 {dimension_numbers = #tpu.dot_dimension_numbers<[1], [0], [0], [1], [0, 0, 1, 1], [], []>} : vector<8x32xf32>, vector<32x96xf32>, vector<8x96xf32> -> vector<8x96xf32>
    %105 = vector.extract_strided_slice %103 {offsets = [0, 0], sizes = [8, 32], strides = [1, 1]} : vector<8x96xf32> to vector<8x32xf32>
    %106 = vector.extract_strided_slice %104 {offsets = [0, 0], sizes = [8, 32], strides = [1, 1]} : vector<8x96xf32> to vector<8x32xf32>
    %107 = arith.addf %105, %106 : vector<8x32xf32>
    %108 = arith.negf %107 : vector<8x32xf32>
    %109 = math.exp %108 : vector<8x32xf32>
    %cst_61 = arith.constant 1.000000e+00 : f32
    %110 = vector.broadcast %cst_61 : f32 to vector<8x32xf32>
    %111 = arith.addf %110, %109 : vector<8x32xf32>
    %112 = arith.divf %110, %111 : vector<8x32xf32>
    %113 = vector.extract_strided_slice %103 {offsets = [0, 32], sizes = [8, 32], strides = [1, 1]} : vector<8x96xf32> to vector<8x32xf32>
    %114 = vector.extract_strided_slice %104 {offsets = [0, 32], sizes = [8, 32], strides = [1, 1]} : vector<8x96xf32> to vector<8x32xf32>
    %115 = arith.addf %113, %114 : vector<8x32xf32>
    %116 = arith.negf %115 : vector<8x32xf32>
    %117 = math.exp %116 : vector<8x32xf32>
    %cst_62 = arith.constant 1.000000e+00 : f32
    %118 = vector.broadcast %cst_62 : f32 to vector<8x32xf32>
    %119 = arith.addf %118, %117 : vector<8x32xf32>
    %120 = arith.divf %118, %119 : vector<8x32xf32>
    %121 = vector.extract_strided_slice %103 {offsets = [0, 64], sizes = [8, 32], strides = [1, 1]} : vector<8x96xf32> to vector<8x32xf32>
    %122 = vector.extract_strided_slice %104 {offsets = [0, 64], sizes = [8, 32], strides = [1, 1]} : vector<8x96xf32> to vector<8x32xf32>
    %123 = vector.broadcast %38 : vector<1x32xf32> to vector<8x32xf32>
    %124 = arith.addf %122, %123 : vector<8x32xf32>
    %125 = arith.mulf %112, %124 : vector<8x32xf32>
    %126 = arith.addf %121, %125 : vector<8x32xf32>
    %127 = math.tanh %126 : vector<8x32xf32>
    %cst_63 = arith.constant 1.000000e+00 : f32
    %128 = vector.broadcast %cst_63 : f32 to vector<8x32xf32>
    %129 = arith.subf %128, %120 : vector<8x32xf32>
    %130 = arith.mulf %129, %127 : vector<8x32xf32>
    %131 = arith.mulf %120, %72 : vector<8x32xf32>
    %132 = arith.addf %130, %131 : vector<8x32xf32>
    %133 = vector.extract_strided_slice %32 {offsets = [48, 0], sizes = [8, 96], strides = [1, 1]} : vector<64x96xf32> to vector<8x96xf32>
    %cst_64 = arith.constant dense<0.000000e+00> : vector<8x96xf32>
    %134 = tpu.matmul %102, %36, %cst_64 {dimension_numbers = #tpu.dot_dimension_numbers<[1], [0], [0], [1], [0, 0, 1, 1], [], []>} : vector<8x32xf32>, vector<32x96xf32>, vector<8x96xf32> -> vector<8x96xf32>
    %135 = vector.extract_strided_slice %133 {offsets = [0, 0], sizes = [8, 32], strides = [1, 1]} : vector<8x96xf32> to vector<8x32xf32>
    %136 = vector.extract_strided_slice %134 {offsets = [0, 0], sizes = [8, 32], strides = [1, 1]} : vector<8x96xf32> to vector<8x32xf32>
    %137 = arith.addf %135, %136 : vector<8x32xf32>
    %138 = arith.negf %137 : vector<8x32xf32>
    %139 = math.exp %138 : vector<8x32xf32>
    %cst_65 = arith.constant 1.000000e+00 : f32
    %140 = vector.broadcast %cst_65 : f32 to vector<8x32xf32>
    %141 = arith.addf %140, %139 : vector<8x32xf32>
    %142 = arith.divf %140, %141 : vector<8x32xf32>
    %143 = vector.extract_strided_slice %133 {offsets = [0, 32], sizes = [8, 32], strides = [1, 1]} : vector<8x96xf32> to vector<8x32xf32>
    %144 = vector.extract_strided_slice %134 {offsets = [0, 32], sizes = [8, 32], strides = [1, 1]} : vector<8x96xf32> to vector<8x32xf32>
    %145 = arith.addf %143, %144 : vector<8x32xf32>
    %146 = arith.negf %145 : vector<8x32xf32>
    %147 = math.exp %146 : vector<8x32xf32>
    %cst_66 = arith.constant 1.000000e+00 : f32
    %148 = vector.broadcast %cst_66 : f32 to vector<8x32xf32>
    %149 = arith.addf %148, %147 : vector<8x32xf32>
    %150 = arith.divf %148, %149 : vector<8x32xf32>
    %151 = vector.extract_strided_slice %133 {offsets = [0, 64], sizes = [8, 32], strides = [1, 1]} : vector<8x96xf32> to vector<8x32xf32>
    %152 = vector.extract_strided_slice %134 {offsets = [0, 64], sizes = [8, 32], strides = [1, 1]} : vector<8x96xf32> to vector<8x32xf32>
    %153 = vector.broadcast %40 : vector<1x32xf32> to vector<8x32xf32>
    %154 = arith.addf %152, %153 : vector<8x32xf32>
    %155 = arith.mulf %142, %154 : vector<8x32xf32>
    %156 = arith.addf %151, %155 : vector<8x32xf32>
    %157 = math.tanh %156 : vector<8x32xf32>
    %cst_67 = arith.constant 1.000000e+00 : f32
    %158 = vector.broadcast %cst_67 : f32 to vector<8x32xf32>
    %159 = arith.subf %158, %150 : vector<8x32xf32>
    %160 = arith.mulf %159, %157 : vector<8x32xf32>
    %161 = arith.mulf %150, %102 : vector<8x32xf32>
    %162 = arith.addf %160, %161 : vector<8x32xf32>
    %163 = vector.extract_strided_slice %17 {offsets = [16, 0], sizes = [8, 96], strides = [1, 1]} : vector<64x96xf32> to vector<8x96xf32>
    %cst_68 = arith.constant dense<0.000000e+00> : vector<8x96xf32>
    %164 = tpu.matmul %132, %34, %cst_68 {dimension_numbers = #tpu.dot_dimension_numbers<[1], [0], [0], [1], [0, 0, 1, 1], [], []>} : vector<8x32xf32>, vector<32x96xf32>, vector<8x96xf32> -> vector<8x96xf32>
    %165 = vector.extract_strided_slice %163 {offsets = [0, 0], sizes = [8, 32], strides = [1, 1]} : vector<8x96xf32> to vector<8x32xf32>
    %166 = vector.extract_strided_slice %164 {offsets = [0, 0], sizes = [8, 32], strides = [1, 1]} : vector<8x96xf32> to vector<8x32xf32>
    %167 = arith.addf %165, %166 : vector<8x32xf32>
    %168 = arith.negf %167 : vector<8x32xf32>
    %169 = math.exp %168 : vector<8x32xf32>
    %cst_69 = arith.constant 1.000000e+00 : f32
    %170 = vector.broadcast %cst_69 : f32 to vector<8x32xf32>
    %171 = arith.addf %170, %169 : vector<8x32xf32>
    %172 = arith.divf %170, %171 : vector<8x32xf32>
    %173 = vector.extract_strided_slice %163 {offsets = [0, 32], sizes = [8, 32], strides = [1, 1]} : vector<8x96xf32> to vector<8x32xf32>
    %174 = vector.extract_strided_slice %164 {offsets = [0, 32], sizes = [8, 32], strides = [1, 1]} : vector<8x96xf32> to vector<8x32xf32>
    %175 = arith.addf %173, %174 : vector<8x32xf32>
    %176 = arith.negf %175 : vector<8x32xf32>
    %177 = math.exp %176 : vector<8x32xf32>
    %cst_70 = arith.constant 1.000000e+00 : f32
    %178 = vector.broadcast %cst_70 : f32 to vector<8x32xf32>
    %179 = arith.addf %178, %177 : vector<8x32xf32>
    %180 = arith.divf %178, %179 : vector<8x32xf32>
    %181 = vector.extract_strided_slice %163 {offsets = [0, 64], sizes = [8, 32], strides = [1, 1]} : vector<8x96xf32> to vector<8x32xf32>
    %182 = vector.extract_strided_slice %164 {offsets = [0, 64], sizes = [8, 32], strides = [1, 1]} : vector<8x96xf32> to vector<8x32xf32>
    %183 = vector.broadcast %38 : vector<1x32xf32> to vector<8x32xf32>
    %184 = arith.addf %182, %183 : vector<8x32xf32>
    %185 = arith.mulf %172, %184 : vector<8x32xf32>
    %186 = arith.addf %181, %185 : vector<8x32xf32>
    %187 = math.tanh %186 : vector<8x32xf32>
    %cst_71 = arith.constant 1.000000e+00 : f32
    %188 = vector.broadcast %cst_71 : f32 to vector<8x32xf32>
    %189 = arith.subf %188, %180 : vector<8x32xf32>
    %190 = arith.mulf %189, %187 : vector<8x32xf32>
    %191 = arith.mulf %180, %132 : vector<8x32xf32>
    %192 = arith.addf %190, %191 : vector<8x32xf32>
    %193 = vector.extract_strided_slice %32 {offsets = [40, 0], sizes = [8, 96], strides = [1, 1]} : vector<64x96xf32> to vector<8x96xf32>
    %cst_72 = arith.constant dense<0.000000e+00> : vector<8x96xf32>
    %194 = tpu.matmul %162, %36, %cst_72 {dimension_numbers = #tpu.dot_dimension_numbers<[1], [0], [0], [1], [0, 0, 1, 1], [], []>} : vector<8x32xf32>, vector<32x96xf32>, vector<8x96xf32> -> vector<8x96xf32>
    %195 = vector.extract_strided_slice %193 {offsets = [0, 0], sizes = [8, 32], strides = [1, 1]} : vector<8x96xf32> to vector<8x32xf32>
    %196 = vector.extract_strided_slice %194 {offsets = [0, 0], sizes = [8, 32], strides = [1, 1]} : vector<8x96xf32> to vector<8x32xf32>
    %197 = arith.addf %195, %196 : vector<8x32xf32>
    %198 = arith.negf %197 : vector<8x32xf32>
    %199 = math.exp %198 : vector<8x32xf32>
    %cst_73 = arith.constant 1.000000e+00 : f32
    %200 = vector.broadcast %cst_73 : f32 to vector<8x32xf32>
    %201 = arith.addf %200, %199 : vector<8x32xf32>
    %202 = arith.divf %200, %201 : vector<8x32xf32>
    %203 = vector.extract_strided_slice %193 {offsets = [0, 32], sizes = [8, 32], strides = [1, 1]} : vector<8x96xf32> to vector<8x32xf32>
    %204 = vector.extract_strided_slice %194 {offsets = [0, 32], sizes = [8, 32], strides = [1, 1]} : vector<8x96xf32> to vector<8x32xf32>
    %205 = arith.addf %203, %204 : vector<8x32xf32>
    %206 = arith.negf %205 : vector<8x32xf32>
    %207 = math.exp %206 : vector<8x32xf32>
    %cst_74 = arith.constant 1.000000e+00 : f32
    %208 = vector.broadcast %cst_74 : f32 to vector<8x32xf32>
    %209 = arith.addf %208, %207 : vector<8x32xf32>
    %210 = arith.divf %208, %209 : vector<8x32xf32>
    %211 = vector.extract_strided_slice %193 {offsets = [0, 64], sizes = [8, 32], strides = [1, 1]} : vector<8x96xf32> to vector<8x32xf32>
    %212 = vector.extract_strided_slice %194 {offsets = [0, 64], sizes = [8, 32], strides = [1, 1]} : vector<8x96xf32> to vector<8x32xf32>
    %213 = vector.broadcast %40 : vector<1x32xf32> to vector<8x32xf32>
    %214 = arith.addf %212, %213 : vector<8x32xf32>
    %215 = arith.mulf %202, %214 : vector<8x32xf32>
    %216 = arith.addf %211, %215 : vector<8x32xf32>
    %217 = math.tanh %216 : vector<8x32xf32>
    %cst_75 = arith.constant 1.000000e+00 : f32
    %218 = vector.broadcast %cst_75 : f32 to vector<8x32xf32>
    %219 = arith.subf %218, %210 : vector<8x32xf32>
    %220 = arith.mulf %219, %217 : vector<8x32xf32>
    %221 = arith.mulf %210, %162 : vector<8x32xf32>
    %222 = arith.addf %220, %221 : vector<8x32xf32>
    %223 = vector.extract_strided_slice %17 {offsets = [24, 0], sizes = [8, 96], strides = [1, 1]} : vector<64x96xf32> to vector<8x96xf32>
    %cst_76 = arith.constant dense<0.000000e+00> : vector<8x96xf32>
    %224 = tpu.matmul %192, %34, %cst_76 {dimension_numbers = #tpu.dot_dimension_numbers<[1], [0], [0], [1], [0, 0, 1, 1], [], []>} : vector<8x32xf32>, vector<32x96xf32>, vector<8x96xf32> -> vector<8x96xf32>
    %225 = vector.extract_strided_slice %223 {offsets = [0, 0], sizes = [8, 32], strides = [1, 1]} : vector<8x96xf32> to vector<8x32xf32>
    %226 = vector.extract_strided_slice %224 {offsets = [0, 0], sizes = [8, 32], strides = [1, 1]} : vector<8x96xf32> to vector<8x32xf32>
    %227 = arith.addf %225, %226 : vector<8x32xf32>
    %228 = arith.negf %227 : vector<8x32xf32>
    %229 = math.exp %228 : vector<8x32xf32>
    %cst_77 = arith.constant 1.000000e+00 : f32
    %230 = vector.broadcast %cst_77 : f32 to vector<8x32xf32>
    %231 = arith.addf %230, %229 : vector<8x32xf32>
    %232 = arith.divf %230, %231 : vector<8x32xf32>
    %233 = vector.extract_strided_slice %223 {offsets = [0, 32], sizes = [8, 32], strides = [1, 1]} : vector<8x96xf32> to vector<8x32xf32>
    %234 = vector.extract_strided_slice %224 {offsets = [0, 32], sizes = [8, 32], strides = [1, 1]} : vector<8x96xf32> to vector<8x32xf32>
    %235 = arith.addf %233, %234 : vector<8x32xf32>
    %236 = arith.negf %235 : vector<8x32xf32>
    %237 = math.exp %236 : vector<8x32xf32>
    %cst_78 = arith.constant 1.000000e+00 : f32
    %238 = vector.broadcast %cst_78 : f32 to vector<8x32xf32>
    %239 = arith.addf %238, %237 : vector<8x32xf32>
    %240 = arith.divf %238, %239 : vector<8x32xf32>
    %241 = vector.extract_strided_slice %223 {offsets = [0, 64], sizes = [8, 32], strides = [1, 1]} : vector<8x96xf32> to vector<8x32xf32>
    %242 = vector.extract_strided_slice %224 {offsets = [0, 64], sizes = [8, 32], strides = [1, 1]} : vector<8x96xf32> to vector<8x32xf32>
    %243 = vector.broadcast %38 : vector<1x32xf32> to vector<8x32xf32>
    %244 = arith.addf %242, %243 : vector<8x32xf32>
    %245 = arith.mulf %232, %244 : vector<8x32xf32>
    %246 = arith.addf %241, %245 : vector<8x32xf32>
    %247 = math.tanh %246 : vector<8x32xf32>
    %cst_79 = arith.constant 1.000000e+00 : f32
    %248 = vector.broadcast %cst_79 : f32 to vector<8x32xf32>
    %249 = arith.subf %248, %240 : vector<8x32xf32>
    %250 = arith.mulf %249, %247 : vector<8x32xf32>
    %251 = arith.mulf %240, %192 : vector<8x32xf32>
    %252 = arith.addf %250, %251 : vector<8x32xf32>
    %253 = vector.extract_strided_slice %32 {offsets = [32, 0], sizes = [8, 96], strides = [1, 1]} : vector<64x96xf32> to vector<8x96xf32>
    %cst_80 = arith.constant dense<0.000000e+00> : vector<8x96xf32>
    %254 = tpu.matmul %222, %36, %cst_80 {dimension_numbers = #tpu.dot_dimension_numbers<[1], [0], [0], [1], [0, 0, 1, 1], [], []>} : vector<8x32xf32>, vector<32x96xf32>, vector<8x96xf32> -> vector<8x96xf32>
    %255 = vector.extract_strided_slice %253 {offsets = [0, 0], sizes = [8, 32], strides = [1, 1]} : vector<8x96xf32> to vector<8x32xf32>
    %256 = vector.extract_strided_slice %254 {offsets = [0, 0], sizes = [8, 32], strides = [1, 1]} : vector<8x96xf32> to vector<8x32xf32>
    %257 = arith.addf %255, %256 : vector<8x32xf32>
    %258 = arith.negf %257 : vector<8x32xf32>
    %259 = math.exp %258 : vector<8x32xf32>
    %cst_81 = arith.constant 1.000000e+00 : f32
    %260 = vector.broadcast %cst_81 : f32 to vector<8x32xf32>
    %261 = arith.addf %260, %259 : vector<8x32xf32>
    %262 = arith.divf %260, %261 : vector<8x32xf32>
    %263 = vector.extract_strided_slice %253 {offsets = [0, 32], sizes = [8, 32], strides = [1, 1]} : vector<8x96xf32> to vector<8x32xf32>
    %264 = vector.extract_strided_slice %254 {offsets = [0, 32], sizes = [8, 32], strides = [1, 1]} : vector<8x96xf32> to vector<8x32xf32>
    %265 = arith.addf %263, %264 : vector<8x32xf32>
    %266 = arith.negf %265 : vector<8x32xf32>
    %267 = math.exp %266 : vector<8x32xf32>
    %cst_82 = arith.constant 1.000000e+00 : f32
    %268 = vector.broadcast %cst_82 : f32 to vector<8x32xf32>
    %269 = arith.addf %268, %267 : vector<8x32xf32>
    %270 = arith.divf %268, %269 : vector<8x32xf32>
    %271 = vector.extract_strided_slice %253 {offsets = [0, 64], sizes = [8, 32], strides = [1, 1]} : vector<8x96xf32> to vector<8x32xf32>
    %272 = vector.extract_strided_slice %254 {offsets = [0, 64], sizes = [8, 32], strides = [1, 1]} : vector<8x96xf32> to vector<8x32xf32>
    %273 = vector.broadcast %40 : vector<1x32xf32> to vector<8x32xf32>
    %274 = arith.addf %272, %273 : vector<8x32xf32>
    %275 = arith.mulf %262, %274 : vector<8x32xf32>
    %276 = arith.addf %271, %275 : vector<8x32xf32>
    %277 = math.tanh %276 : vector<8x32xf32>
    %cst_83 = arith.constant 1.000000e+00 : f32
    %278 = vector.broadcast %cst_83 : f32 to vector<8x32xf32>
    %279 = arith.subf %278, %270 : vector<8x32xf32>
    %280 = arith.mulf %279, %277 : vector<8x32xf32>
    %281 = arith.mulf %270, %222 : vector<8x32xf32>
    %282 = arith.addf %280, %281 : vector<8x32xf32>
    %283 = vector.extract_strided_slice %17 {offsets = [32, 0], sizes = [8, 96], strides = [1, 1]} : vector<64x96xf32> to vector<8x96xf32>
    %cst_84 = arith.constant dense<0.000000e+00> : vector<8x96xf32>
    %284 = tpu.matmul %252, %34, %cst_84 {dimension_numbers = #tpu.dot_dimension_numbers<[1], [0], [0], [1], [0, 0, 1, 1], [], []>} : vector<8x32xf32>, vector<32x96xf32>, vector<8x96xf32> -> vector<8x96xf32>
    %285 = vector.extract_strided_slice %283 {offsets = [0, 0], sizes = [8, 32], strides = [1, 1]} : vector<8x96xf32> to vector<8x32xf32>
    %286 = vector.extract_strided_slice %284 {offsets = [0, 0], sizes = [8, 32], strides = [1, 1]} : vector<8x96xf32> to vector<8x32xf32>
    %287 = arith.addf %285, %286 : vector<8x32xf32>
    %288 = arith.negf %287 : vector<8x32xf32>
    %289 = math.exp %288 : vector<8x32xf32>
    %cst_85 = arith.constant 1.000000e+00 : f32
    %290 = vector.broadcast %cst_85 : f32 to vector<8x32xf32>
    %291 = arith.addf %290, %289 : vector<8x32xf32>
    %292 = arith.divf %290, %291 : vector<8x32xf32>
    %293 = vector.extract_strided_slice %283 {offsets = [0, 32], sizes = [8, 32], strides = [1, 1]} : vector<8x96xf32> to vector<8x32xf32>
    %294 = vector.extract_strided_slice %284 {offsets = [0, 32], sizes = [8, 32], strides = [1, 1]} : vector<8x96xf32> to vector<8x32xf32>
    %295 = arith.addf %293, %294 : vector<8x32xf32>
    %296 = arith.negf %295 : vector<8x32xf32>
    %297 = math.exp %296 : vector<8x32xf32>
    %cst_86 = arith.constant 1.000000e+00 : f32
    %298 = vector.broadcast %cst_86 : f32 to vector<8x32xf32>
    %299 = arith.addf %298, %297 : vector<8x32xf32>
    %300 = arith.divf %298, %299 : vector<8x32xf32>
    %301 = vector.extract_strided_slice %283 {offsets = [0, 64], sizes = [8, 32], strides = [1, 1]} : vector<8x96xf32> to vector<8x32xf32>
    %302 = vector.extract_strided_slice %284 {offsets = [0, 64], sizes = [8, 32], strides = [1, 1]} : vector<8x96xf32> to vector<8x32xf32>
    %303 = vector.broadcast %38 : vector<1x32xf32> to vector<8x32xf32>
    %304 = arith.addf %302, %303 : vector<8x32xf32>
    %305 = arith.mulf %292, %304 : vector<8x32xf32>
    %306 = arith.addf %301, %305 : vector<8x32xf32>
    %307 = math.tanh %306 : vector<8x32xf32>
    %cst_87 = arith.constant 1.000000e+00 : f32
    %308 = vector.broadcast %cst_87 : f32 to vector<8x32xf32>
    %309 = arith.subf %308, %300 : vector<8x32xf32>
    %310 = arith.mulf %309, %307 : vector<8x32xf32>
    %311 = arith.mulf %300, %252 : vector<8x32xf32>
    %312 = arith.addf %310, %311 : vector<8x32xf32>
    %313 = vector.extract_strided_slice %32 {offsets = [24, 0], sizes = [8, 96], strides = [1, 1]} : vector<64x96xf32> to vector<8x96xf32>
    %cst_88 = arith.constant dense<0.000000e+00> : vector<8x96xf32>
    %314 = tpu.matmul %282, %36, %cst_88 {dimension_numbers = #tpu.dot_dimension_numbers<[1], [0], [0], [1], [0, 0, 1, 1], [], []>} : vector<8x32xf32>, vector<32x96xf32>, vector<8x96xf32> -> vector<8x96xf32>
    %315 = vector.extract_strided_slice %313 {offsets = [0, 0], sizes = [8, 32], strides = [1, 1]} : vector<8x96xf32> to vector<8x32xf32>
    %316 = vector.extract_strided_slice %314 {offsets = [0, 0], sizes = [8, 32], strides = [1, 1]} : vector<8x96xf32> to vector<8x32xf32>
    %317 = arith.addf %315, %316 : vector<8x32xf32>
    %318 = arith.negf %317 : vector<8x32xf32>
    %319 = math.exp %318 : vector<8x32xf32>
    %cst_89 = arith.constant 1.000000e+00 : f32
    %320 = vector.broadcast %cst_89 : f32 to vector<8x32xf32>
    %321 = arith.addf %320, %319 : vector<8x32xf32>
    %322 = arith.divf %320, %321 : vector<8x32xf32>
    %323 = vector.extract_strided_slice %313 {offsets = [0, 32], sizes = [8, 32], strides = [1, 1]} : vector<8x96xf32> to vector<8x32xf32>
    %324 = vector.extract_strided_slice %314 {offsets = [0, 32], sizes = [8, 32], strides = [1, 1]} : vector<8x96xf32> to vector<8x32xf32>
    %325 = arith.addf %323, %324 : vector<8x32xf32>
    %326 = arith.negf %325 : vector<8x32xf32>
    %327 = math.exp %326 : vector<8x32xf32>
    %cst_90 = arith.constant 1.000000e+00 : f32
    %328 = vector.broadcast %cst_90 : f32 to vector<8x32xf32>
    %329 = arith.addf %328, %327 : vector<8x32xf32>
    %330 = arith.divf %328, %329 : vector<8x32xf32>
    %331 = vector.extract_strided_slice %313 {offsets = [0, 64], sizes = [8, 32], strides = [1, 1]} : vector<8x96xf32> to vector<8x32xf32>
    %332 = vector.extract_strided_slice %314 {offsets = [0, 64], sizes = [8, 32], strides = [1, 1]} : vector<8x96xf32> to vector<8x32xf32>
    %333 = vector.broadcast %40 : vector<1x32xf32> to vector<8x32xf32>
    %334 = arith.addf %332, %333 : vector<8x32xf32>
    %335 = arith.mulf %322, %334 : vector<8x32xf32>
    %336 = arith.addf %331, %335 : vector<8x32xf32>
    %337 = math.tanh %336 : vector<8x32xf32>
    %cst_91 = arith.constant 1.000000e+00 : f32
    %338 = vector.broadcast %cst_91 : f32 to vector<8x32xf32>
    %339 = arith.subf %338, %330 : vector<8x32xf32>
    %340 = arith.mulf %339, %337 : vector<8x32xf32>
    %341 = arith.mulf %330, %282 : vector<8x32xf32>
    %342 = arith.addf %340, %341 : vector<8x32xf32>
    %343 = vector.extract_strided_slice %17 {offsets = [40, 0], sizes = [8, 96], strides = [1, 1]} : vector<64x96xf32> to vector<8x96xf32>
    %cst_92 = arith.constant dense<0.000000e+00> : vector<8x96xf32>
    %344 = tpu.matmul %312, %34, %cst_92 {dimension_numbers = #tpu.dot_dimension_numbers<[1], [0], [0], [1], [0, 0, 1, 1], [], []>} : vector<8x32xf32>, vector<32x96xf32>, vector<8x96xf32> -> vector<8x96xf32>
    %345 = vector.extract_strided_slice %343 {offsets = [0, 0], sizes = [8, 32], strides = [1, 1]} : vector<8x96xf32> to vector<8x32xf32>
    %346 = vector.extract_strided_slice %344 {offsets = [0, 0], sizes = [8, 32], strides = [1, 1]} : vector<8x96xf32> to vector<8x32xf32>
    %347 = arith.addf %345, %346 : vector<8x32xf32>
    %348 = arith.negf %347 : vector<8x32xf32>
    %349 = math.exp %348 : vector<8x32xf32>
    %cst_93 = arith.constant 1.000000e+00 : f32
    %350 = vector.broadcast %cst_93 : f32 to vector<8x32xf32>
    %351 = arith.addf %350, %349 : vector<8x32xf32>
    %352 = arith.divf %350, %351 : vector<8x32xf32>
    %353 = vector.extract_strided_slice %343 {offsets = [0, 32], sizes = [8, 32], strides = [1, 1]} : vector<8x96xf32> to vector<8x32xf32>
    %354 = vector.extract_strided_slice %344 {offsets = [0, 32], sizes = [8, 32], strides = [1, 1]} : vector<8x96xf32> to vector<8x32xf32>
    %355 = arith.addf %353, %354 : vector<8x32xf32>
    %356 = arith.negf %355 : vector<8x32xf32>
    %357 = math.exp %356 : vector<8x32xf32>
    %cst_94 = arith.constant 1.000000e+00 : f32
    %358 = vector.broadcast %cst_94 : f32 to vector<8x32xf32>
    %359 = arith.addf %358, %357 : vector<8x32xf32>
    %360 = arith.divf %358, %359 : vector<8x32xf32>
    %361 = vector.extract_strided_slice %343 {offsets = [0, 64], sizes = [8, 32], strides = [1, 1]} : vector<8x96xf32> to vector<8x32xf32>
    %362 = vector.extract_strided_slice %344 {offsets = [0, 64], sizes = [8, 32], strides = [1, 1]} : vector<8x96xf32> to vector<8x32xf32>
    %363 = vector.broadcast %38 : vector<1x32xf32> to vector<8x32xf32>
    %364 = arith.addf %362, %363 : vector<8x32xf32>
    %365 = arith.mulf %352, %364 : vector<8x32xf32>
    %366 = arith.addf %361, %365 : vector<8x32xf32>
    %367 = math.tanh %366 : vector<8x32xf32>
    %cst_95 = arith.constant 1.000000e+00 : f32
    %368 = vector.broadcast %cst_95 : f32 to vector<8x32xf32>
    %369 = arith.subf %368, %360 : vector<8x32xf32>
    %370 = arith.mulf %369, %367 : vector<8x32xf32>
    %371 = arith.mulf %360, %312 : vector<8x32xf32>
    %372 = arith.addf %370, %371 : vector<8x32xf32>
    %373 = vector.extract_strided_slice %32 {offsets = [16, 0], sizes = [8, 96], strides = [1, 1]} : vector<64x96xf32> to vector<8x96xf32>
    %cst_96 = arith.constant dense<0.000000e+00> : vector<8x96xf32>
    %374 = tpu.matmul %342, %36, %cst_96 {dimension_numbers = #tpu.dot_dimension_numbers<[1], [0], [0], [1], [0, 0, 1, 1], [], []>} : vector<8x32xf32>, vector<32x96xf32>, vector<8x96xf32> -> vector<8x96xf32>
    %375 = vector.extract_strided_slice %373 {offsets = [0, 0], sizes = [8, 32], strides = [1, 1]} : vector<8x96xf32> to vector<8x32xf32>
    %376 = vector.extract_strided_slice %374 {offsets = [0, 0], sizes = [8, 32], strides = [1, 1]} : vector<8x96xf32> to vector<8x32xf32>
    %377 = arith.addf %375, %376 : vector<8x32xf32>
    %378 = arith.negf %377 : vector<8x32xf32>
    %379 = math.exp %378 : vector<8x32xf32>
    %cst_97 = arith.constant 1.000000e+00 : f32
    %380 = vector.broadcast %cst_97 : f32 to vector<8x32xf32>
    %381 = arith.addf %380, %379 : vector<8x32xf32>
    %382 = arith.divf %380, %381 : vector<8x32xf32>
    %383 = vector.extract_strided_slice %373 {offsets = [0, 32], sizes = [8, 32], strides = [1, 1]} : vector<8x96xf32> to vector<8x32xf32>
    %384 = vector.extract_strided_slice %374 {offsets = [0, 32], sizes = [8, 32], strides = [1, 1]} : vector<8x96xf32> to vector<8x32xf32>
    %385 = arith.addf %383, %384 : vector<8x32xf32>
    %386 = arith.negf %385 : vector<8x32xf32>
    %387 = math.exp %386 : vector<8x32xf32>
    %cst_98 = arith.constant 1.000000e+00 : f32
    %388 = vector.broadcast %cst_98 : f32 to vector<8x32xf32>
    %389 = arith.addf %388, %387 : vector<8x32xf32>
    %390 = arith.divf %388, %389 : vector<8x32xf32>
    %391 = vector.extract_strided_slice %373 {offsets = [0, 64], sizes = [8, 32], strides = [1, 1]} : vector<8x96xf32> to vector<8x32xf32>
    %392 = vector.extract_strided_slice %374 {offsets = [0, 64], sizes = [8, 32], strides = [1, 1]} : vector<8x96xf32> to vector<8x32xf32>
    %393 = vector.broadcast %40 : vector<1x32xf32> to vector<8x32xf32>
    %394 = arith.addf %392, %393 : vector<8x32xf32>
    %395 = arith.mulf %382, %394 : vector<8x32xf32>
    %396 = arith.addf %391, %395 : vector<8x32xf32>
    %397 = math.tanh %396 : vector<8x32xf32>
    %cst_99 = arith.constant 1.000000e+00 : f32
    %398 = vector.broadcast %cst_99 : f32 to vector<8x32xf32>
    %399 = arith.subf %398, %390 : vector<8x32xf32>
    %400 = arith.mulf %399, %397 : vector<8x32xf32>
    %401 = arith.mulf %390, %342 : vector<8x32xf32>
    %402 = arith.addf %400, %401 : vector<8x32xf32>
    %403 = vector.extract_strided_slice %17 {offsets = [48, 0], sizes = [8, 96], strides = [1, 1]} : vector<64x96xf32> to vector<8x96xf32>
    %cst_100 = arith.constant dense<0.000000e+00> : vector<8x96xf32>
    %404 = tpu.matmul %372, %34, %cst_100 {dimension_numbers = #tpu.dot_dimension_numbers<[1], [0], [0], [1], [0, 0, 1, 1], [], []>} : vector<8x32xf32>, vector<32x96xf32>, vector<8x96xf32> -> vector<8x96xf32>
    %405 = vector.extract_strided_slice %403 {offsets = [0, 0], sizes = [8, 32], strides = [1, 1]} : vector<8x96xf32> to vector<8x32xf32>
    %406 = vector.extract_strided_slice %404 {offsets = [0, 0], sizes = [8, 32], strides = [1, 1]} : vector<8x96xf32> to vector<8x32xf32>
    %407 = arith.addf %405, %406 : vector<8x32xf32>
    %408 = arith.negf %407 : vector<8x32xf32>
    %409 = math.exp %408 : vector<8x32xf32>
    %cst_101 = arith.constant 1.000000e+00 : f32
    %410 = vector.broadcast %cst_101 : f32 to vector<8x32xf32>
    %411 = arith.addf %410, %409 : vector<8x32xf32>
    %412 = arith.divf %410, %411 : vector<8x32xf32>
    %413 = vector.extract_strided_slice %403 {offsets = [0, 32], sizes = [8, 32], strides = [1, 1]} : vector<8x96xf32> to vector<8x32xf32>
    %414 = vector.extract_strided_slice %404 {offsets = [0, 32], sizes = [8, 32], strides = [1, 1]} : vector<8x96xf32> to vector<8x32xf32>
    %415 = arith.addf %413, %414 : vector<8x32xf32>
    %416 = arith.negf %415 : vector<8x32xf32>
    %417 = math.exp %416 : vector<8x32xf32>
    %cst_102 = arith.constant 1.000000e+00 : f32
    %418 = vector.broadcast %cst_102 : f32 to vector<8x32xf32>
    %419 = arith.addf %418, %417 : vector<8x32xf32>
    %420 = arith.divf %418, %419 : vector<8x32xf32>
    %421 = vector.extract_strided_slice %403 {offsets = [0, 64], sizes = [8, 32], strides = [1, 1]} : vector<8x96xf32> to vector<8x32xf32>
    %422 = vector.extract_strided_slice %404 {offsets = [0, 64], sizes = [8, 32], strides = [1, 1]} : vector<8x96xf32> to vector<8x32xf32>
    %423 = vector.broadcast %38 : vector<1x32xf32> to vector<8x32xf32>
    %424 = arith.addf %422, %423 : vector<8x32xf32>
    %425 = arith.mulf %412, %424 : vector<8x32xf32>
    %426 = arith.addf %421, %425 : vector<8x32xf32>
    %427 = math.tanh %426 : vector<8x32xf32>
    %cst_103 = arith.constant 1.000000e+00 : f32
    %428 = vector.broadcast %cst_103 : f32 to vector<8x32xf32>
    %429 = arith.subf %428, %420 : vector<8x32xf32>
    %430 = arith.mulf %429, %427 : vector<8x32xf32>
    %431 = arith.mulf %420, %372 : vector<8x32xf32>
    %432 = arith.addf %430, %431 : vector<8x32xf32>
    %433 = vector.extract_strided_slice %32 {offsets = [8, 0], sizes = [8, 96], strides = [1, 1]} : vector<64x96xf32> to vector<8x96xf32>
    %cst_104 = arith.constant dense<0.000000e+00> : vector<8x96xf32>
    %434 = tpu.matmul %402, %36, %cst_104 {dimension_numbers = #tpu.dot_dimension_numbers<[1], [0], [0], [1], [0, 0, 1, 1], [], []>} : vector<8x32xf32>, vector<32x96xf32>, vector<8x96xf32> -> vector<8x96xf32>
    %435 = vector.extract_strided_slice %433 {offsets = [0, 0], sizes = [8, 32], strides = [1, 1]} : vector<8x96xf32> to vector<8x32xf32>
    %436 = vector.extract_strided_slice %434 {offsets = [0, 0], sizes = [8, 32], strides = [1, 1]} : vector<8x96xf32> to vector<8x32xf32>
    %437 = arith.addf %435, %436 : vector<8x32xf32>
    %438 = arith.negf %437 : vector<8x32xf32>
    %439 = math.exp %438 : vector<8x32xf32>
    %cst_105 = arith.constant 1.000000e+00 : f32
    %440 = vector.broadcast %cst_105 : f32 to vector<8x32xf32>
    %441 = arith.addf %440, %439 : vector<8x32xf32>
    %442 = arith.divf %440, %441 : vector<8x32xf32>
    %443 = vector.extract_strided_slice %433 {offsets = [0, 32], sizes = [8, 32], strides = [1, 1]} : vector<8x96xf32> to vector<8x32xf32>
    %444 = vector.extract_strided_slice %434 {offsets = [0, 32], sizes = [8, 32], strides = [1, 1]} : vector<8x96xf32> to vector<8x32xf32>
    %445 = arith.addf %443, %444 : vector<8x32xf32>
    %446 = arith.negf %445 : vector<8x32xf32>
    %447 = math.exp %446 : vector<8x32xf32>
    %cst_106 = arith.constant 1.000000e+00 : f32
    %448 = vector.broadcast %cst_106 : f32 to vector<8x32xf32>
    %449 = arith.addf %448, %447 : vector<8x32xf32>
    %450 = arith.divf %448, %449 : vector<8x32xf32>
    %451 = vector.extract_strided_slice %433 {offsets = [0, 64], sizes = [8, 32], strides = [1, 1]} : vector<8x96xf32> to vector<8x32xf32>
    %452 = vector.extract_strided_slice %434 {offsets = [0, 64], sizes = [8, 32], strides = [1, 1]} : vector<8x96xf32> to vector<8x32xf32>
    %453 = vector.broadcast %40 : vector<1x32xf32> to vector<8x32xf32>
    %454 = arith.addf %452, %453 : vector<8x32xf32>
    %455 = arith.mulf %442, %454 : vector<8x32xf32>
    %456 = arith.addf %451, %455 : vector<8x32xf32>
    %457 = math.tanh %456 : vector<8x32xf32>
    %cst_107 = arith.constant 1.000000e+00 : f32
    %458 = vector.broadcast %cst_107 : f32 to vector<8x32xf32>
    %459 = arith.subf %458, %450 : vector<8x32xf32>
    %460 = arith.mulf %459, %457 : vector<8x32xf32>
    %461 = arith.mulf %450, %402 : vector<8x32xf32>
    %462 = arith.addf %460, %461 : vector<8x32xf32>
    %463 = vector.extract_strided_slice %17 {offsets = [56, 0], sizes = [8, 96], strides = [1, 1]} : vector<64x96xf32> to vector<8x96xf32>
    %cst_108 = arith.constant dense<0.000000e+00> : vector<8x96xf32>
    %464 = tpu.matmul %432, %34, %cst_108 {dimension_numbers = #tpu.dot_dimension_numbers<[1], [0], [0], [1], [0, 0, 1, 1], [], []>} : vector<8x32xf32>, vector<32x96xf32>, vector<8x96xf32> -> vector<8x96xf32>
    %465 = vector.extract_strided_slice %463 {offsets = [0, 0], sizes = [8, 32], strides = [1, 1]} : vector<8x96xf32> to vector<8x32xf32>
    %466 = vector.extract_strided_slice %464 {offsets = [0, 0], sizes = [8, 32], strides = [1, 1]} : vector<8x96xf32> to vector<8x32xf32>
    %467 = arith.addf %465, %466 : vector<8x32xf32>
    %468 = arith.negf %467 : vector<8x32xf32>
    %469 = math.exp %468 : vector<8x32xf32>
    %cst_109 = arith.constant 1.000000e+00 : f32
    %470 = vector.broadcast %cst_109 : f32 to vector<8x32xf32>
    %471 = arith.addf %470, %469 : vector<8x32xf32>
    %472 = arith.divf %470, %471 : vector<8x32xf32>
    %473 = vector.extract_strided_slice %463 {offsets = [0, 32], sizes = [8, 32], strides = [1, 1]} : vector<8x96xf32> to vector<8x32xf32>
    %474 = vector.extract_strided_slice %464 {offsets = [0, 32], sizes = [8, 32], strides = [1, 1]} : vector<8x96xf32> to vector<8x32xf32>
    %475 = arith.addf %473, %474 : vector<8x32xf32>
    %476 = arith.negf %475 : vector<8x32xf32>
    %477 = math.exp %476 : vector<8x32xf32>
    %cst_110 = arith.constant 1.000000e+00 : f32
    %478 = vector.broadcast %cst_110 : f32 to vector<8x32xf32>
    %479 = arith.addf %478, %477 : vector<8x32xf32>
    %480 = arith.divf %478, %479 : vector<8x32xf32>
    %481 = vector.extract_strided_slice %463 {offsets = [0, 64], sizes = [8, 32], strides = [1, 1]} : vector<8x96xf32> to vector<8x32xf32>
    %482 = vector.extract_strided_slice %464 {offsets = [0, 64], sizes = [8, 32], strides = [1, 1]} : vector<8x96xf32> to vector<8x32xf32>
    %483 = vector.broadcast %38 : vector<1x32xf32> to vector<8x32xf32>
    %484 = arith.addf %482, %483 : vector<8x32xf32>
    %485 = arith.mulf %472, %484 : vector<8x32xf32>
    %486 = arith.addf %481, %485 : vector<8x32xf32>
    %487 = math.tanh %486 : vector<8x32xf32>
    %cst_111 = arith.constant 1.000000e+00 : f32
    %488 = vector.broadcast %cst_111 : f32 to vector<8x32xf32>
    %489 = arith.subf %488, %480 : vector<8x32xf32>
    %490 = arith.mulf %489, %487 : vector<8x32xf32>
    %491 = arith.mulf %480, %432 : vector<8x32xf32>
    %492 = arith.addf %490, %491 : vector<8x32xf32>
    %493 = vector.extract_strided_slice %32 {offsets = [0, 0], sizes = [8, 96], strides = [1, 1]} : vector<64x96xf32> to vector<8x96xf32>
    %cst_112 = arith.constant dense<0.000000e+00> : vector<8x96xf32>
    %494 = tpu.matmul %462, %36, %cst_112 {dimension_numbers = #tpu.dot_dimension_numbers<[1], [0], [0], [1], [0, 0, 1, 1], [], []>} : vector<8x32xf32>, vector<32x96xf32>, vector<8x96xf32> -> vector<8x96xf32>
    %495 = vector.extract_strided_slice %493 {offsets = [0, 0], sizes = [8, 32], strides = [1, 1]} : vector<8x96xf32> to vector<8x32xf32>
    %496 = vector.extract_strided_slice %494 {offsets = [0, 0], sizes = [8, 32], strides = [1, 1]} : vector<8x96xf32> to vector<8x32xf32>
    %497 = arith.addf %495, %496 : vector<8x32xf32>
    %498 = arith.negf %497 : vector<8x32xf32>
    %499 = math.exp %498 : vector<8x32xf32>
    %cst_113 = arith.constant 1.000000e+00 : f32
    %500 = vector.broadcast %cst_113 : f32 to vector<8x32xf32>
    %501 = arith.addf %500, %499 : vector<8x32xf32>
    %502 = arith.divf %500, %501 : vector<8x32xf32>
    %503 = vector.extract_strided_slice %493 {offsets = [0, 32], sizes = [8, 32], strides = [1, 1]} : vector<8x96xf32> to vector<8x32xf32>
    %504 = vector.extract_strided_slice %494 {offsets = [0, 32], sizes = [8, 32], strides = [1, 1]} : vector<8x96xf32> to vector<8x32xf32>
    %505 = arith.addf %503, %504 : vector<8x32xf32>
    %506 = arith.negf %505 : vector<8x32xf32>
    %507 = math.exp %506 : vector<8x32xf32>
    %cst_114 = arith.constant 1.000000e+00 : f32
    %508 = vector.broadcast %cst_114 : f32 to vector<8x32xf32>
    %509 = arith.addf %508, %507 : vector<8x32xf32>
    %510 = arith.divf %508, %509 : vector<8x32xf32>
    %511 = vector.extract_strided_slice %493 {offsets = [0, 64], sizes = [8, 32], strides = [1, 1]} : vector<8x96xf32> to vector<8x32xf32>
    %512 = vector.extract_strided_slice %494 {offsets = [0, 64], sizes = [8, 32], strides = [1, 1]} : vector<8x96xf32> to vector<8x32xf32>
    %513 = vector.broadcast %40 : vector<1x32xf32> to vector<8x32xf32>
    %514 = arith.addf %512, %513 : vector<8x32xf32>
    %515 = arith.mulf %502, %514 : vector<8x32xf32>
    %516 = arith.addf %511, %515 : vector<8x32xf32>
    %517 = math.tanh %516 : vector<8x32xf32>
    %cst_115 = arith.constant 1.000000e+00 : f32
    %518 = vector.broadcast %cst_115 : f32 to vector<8x32xf32>
    %519 = arith.subf %518, %510 : vector<8x32xf32>
    %520 = arith.mulf %519, %517 : vector<8x32xf32>
    %521 = arith.mulf %510, %462 : vector<8x32xf32>
    %522 = arith.addf %520, %521 : vector<8x32xf32>
    %523 = tpu.concatenate %72, %132, %192, %252, %312, %372, %432, %492 in 0 : vector<8x32xf32>, vector<8x32xf32>, vector<8x32xf32>, vector<8x32xf32>, vector<8x32xf32>, vector<8x32xf32>, vector<8x32xf32>, vector<8x32xf32> -> vector<64x32xf32>
    %c0_116 = arith.constant 0 : index
    %c0_117 = arith.constant 0 : index
    %524 = vector.load %arg7[%c0_116, %c0_117] : memref<64x32xf32, #tpu.memory_space<vmem>>, vector<64x32xf32>
    tpu.vector_store %arg7[%c0_116, %c0_117], %523 {strides = array<i32>} : memref<64x32xf32, #tpu.memory_space<vmem>>, vector<64x32xf32>,
    %525 = tpu.concatenate %522, %462, %402, %342, %282, %222, %162, %102 in 0 : vector<8x32xf32>, vector<8x32xf32>, vector<8x32xf32>, vector<8x32xf32>, vector<8x32xf32>, vector<8x32xf32>, vector<8x32xf32>, vector<8x32xf32> -> vector<64x32xf32>
    %c0_118 = arith.constant 0 : index
    %c0_119 = arith.constant 0 : index
    %526 = vector.load %arg8[%c0_118, %c0_119] : memref<64x32xf32, #tpu.memory_space<vmem>>, vector<64x32xf32>
    tpu.vector_store %arg8[%c0_118, %c0_119], %525 {strides = array<i32>} : memref<64x32xf32, #tpu.memory_space<vmem>>, vector<64x32xf32>,
    %c0_120 = arith.constant 0 : index
    %c0_121 = arith.constant 0 : index
    %527 = vector.load %arg9[%c0_120, %c0_121] : memref<8x32xf32, #tpu.memory_space<vmem>>, vector<8x32xf32>
    tpu.vector_store %arg9[%c0_120, %c0_121], %492 {strides = array<i32>} : memref<8x32xf32, #tpu.memory_space<vmem>>, vector<8x32xf32>,
    %c0_122 = arith.constant 0 : index
    %c0_123 = arith.constant 0 : index
    %528 = vector.load %arg10[%c0_122, %c0_123] : memref<8x32xf32, #tpu.memory_space<vmem>>, vector<8x32xf32>
    tpu.vector_store %arg10[%c0_122, %c0_123], %522 {strides = array<i32>} : memref<8x32xf32, #tpu.memory_space<vmem>>, vector<8x32xf32>,
    return
  }
  func.func @transform_0(%arg0: i32) -> (i32, i32, i32) {
    %c0_i32 = arith.constant 0 : i32
    %c0_i32_0 = arith.constant 0 : i32
    %c0_i32_1 = arith.constant 0 : i32
    return %c0_i32, %arg0, %c0_i32_0 : i32, i32, i32
  }
  func.func @transform_1(%arg0: i32) -> (i32, i32, i32) {
    %c0_i32 = arith.constant 0 : i32
    %0 = arith.subi %c0_i32, %arg0 : i32
    %c0_i32_0 = arith.constant 0 : i32
    %c0_i32_1 = arith.constant 0 : i32
    %c0_i32_2 = arith.constant 0 : i32
    return %c0_i32_0, %0, %c0_i32_1 : i32, i32, i32
  }
  func.func @transform_2(%arg0: i32) -> (i32, i32, i32, i32) {
    %c0_i32 = arith.constant 0 : i32
    %c0_i32_0 = arith.constant 0 : i32
    %c0_i32_1 = arith.constant 0 : i32
    %c0_i32_2 = arith.constant 0 : i32
    %c0_i32_3 = arith.constant 0 : i32
    return %c0_i32, %c0_i32_0, %c0_i32_1, %c0_i32_2 : i32, i32, i32, i32
  }
  func.func @transform_3(%arg0: i32) -> (i32, i32, i32) {
    %c0_i32 = arith.constant 0 : i32
    %c0_i32_0 = arith.constant 0 : i32
    %c0_i32_1 = arith.constant 0 : i32
    %c0_i32_2 = arith.constant 0 : i32
    return %c0_i32, %c0_i32_0, %c0_i32_1 : i32, i32, i32
  }
  func.func @transform_4(%arg0: i32) -> (i32, i32, i32) {
    %c0_i32 = arith.constant 0 : i32
    %c0_i32_0 = arith.constant 0 : i32
    %c0_i32_1 = arith.constant 0 : i32
    %c0_i32_2 = arith.constant 0 : i32
    return %c0_i32, %c0_i32_0, %c0_i32_1 : i32, i32, i32
  }
  func.func @transform_5(%arg0: i32) -> (i32, i32, i32) {
    %c0_i32 = arith.constant 0 : i32
    %c0_i32_0 = arith.constant 0 : i32
    %c0_i32_1 = arith.constant 0 : i32
    %c0_i32_2 = arith.constant 0 : i32
    return %c0_i32, %c0_i32_0, %c0_i32_1 : i32, i32, i32
  }
  func.func @transform_6(%arg0: i32) -> (i32, i32) {
    %c0_i32 = arith.constant 0 : i32
    %c0_i32_0 = arith.constant 0 : i32
    return %arg0, %c0_i32 : i32, i32
  }
  func.func @transform_7(%arg0: i32) -> (i32, i32) {
    %c0_i32 = arith.constant 0 : i32
    %0 = arith.subi %c0_i32, %arg0 : i32
    %c0_i32_0 = arith.constant 0 : i32
    %c0_i32_1 = arith.constant 0 : i32
    return %0, %c0_i32_0 : i32, i32
  }
}

</mosaic_0001>

<bundles_post_ra>
// kernel: bgru_forward.2
= control target key start
LH: loop header
LB: loop body
LE: loop exit
PB: predicated region body
PF: predicated region fallthrough
CT: control target
= control target key end

     0   :  { %vm65_vm0 = vcmask 261120   ;;  %v1541_v3 = vmov 0.0   ;;  %vm82_vm1 = vcmask 130048   ;;  %s1542_s9 = smov 64   ;;  %s1544_s26 = smov 96   ;;  %s2068_s2 = inlined_call_operand.vmem [shape: f32[2,1,16,96], index: 2, kind: input, shape index: {}]   ;;  %s2069_s3 = inlined_call_operand.vmem [shape: f32[2,32,96], index: 3, kind: input, shape index: {}]   ;;  %s2070_s1 = inlined_call_operand.vmem [shape: f32[1,64,16], index: 1, kind: input, shape index: {}, may-alias: {0,1}]   ;;  %s2071_s0 = inlined_call_operand.vmem [shape: f32[1,64,16], index: 0, kind: input, shape index: {}, may-alias: {0,1}]   ;;  %s2072_s5 = inlined_call_operand.vmem [shape: f32[2,1,32], index: 5, kind: input, shape index: {}]   ;;  %s2073_s4 = inlined_call_operand.vmem [shape: f32[2,1,96], index: 4, kind: input, shape index: {}]   ;;  %s2074_s7 = inlined_call_operand.vmem [shape: f32[64,32], index: 7, kind: output, shape index: {1}]   ;;  %s2075_s6 = inlined_call_operand.vmem [shape: f32[64,32], index: 6, kind: output, shape index: {0}]  }
   0x1   :  { %v1381_v0 = vld [vmem:[%s2068_s2 + $0x18] sm:$0xff]  ;;  %v1380_v2 = vld [vmem:[%s2068_s2 + $0x10] sm:$0xff]  ;;  %66 = vst.msk [vmem:[#allocation2] sm:$0xff] %vm65_vm0, %v1541_v3  ;;  %v148_v5 = vld [vmem:[%s2070_s1] sm:$0xff] }
   0x2   :  { %v1591_v1 = vld [vmem:[%s2069_s3 + $0x18] sm:$0xff]  ;;  %202 = vmatpush.msra.mxu1 %v1381_v0  ;;  %v1601_v4 = vld [vmem:[%s2069_s3 + $0x10] sm:$0xff]  ;;  %67 = vst.msk [vmem:[#allocation3] sm:$0xff] %vm65_vm0, %v1541_v3  ;;  %v1610_v6 = vld [vmem:[%s2069_s3 + $0x8] sm:$0xff] }
   0x3   :  { %259 = vmatpush.msra.mxu2 %v1591_v1  ;;  %v77_v7 = vld [vmem:[%s2068_s2 + $0x8] sm:$0xff]  ;;  %v1618_v8 = vld [vmem:[%s2069_s3 + $0x38] sm:$0xff]  ;;  %v76_v9 = vld [vmem:[%s2068_s2] sm:$0xff] }
   0x4   :  { %203 = vmatpush.msra.mxu1 %v1380_v2  ;;  %v1628_v10 = vld [vmem:[%s2069_s3] sm:$0xff]  ;;  %121 = vmatpush.msra.mxu0 %v77_v7  ;;  %v1633_v11 = vld [vmem:[%s2069_s3 + $0x30] sm:$0xff]  ;;  %v1643_v13 = vld [vmem:[%s2069_s3 + $0x28] sm:$0xff] }
   0x5   :  { %260 = vmatpush.msra.mxu2 %v1601_v4  ;;  %1383 = vmatmul.msk.f32.vlgmr.msra.gmra.mxu1 %vm82_vm1, %v148_v5  ;;  %v68_v12 = vld [vmem:[%s2071_s0] sm:$0xff]  ;;  %v149_v17 = vld [vmem:[%s2070_s1 + $0x8] sm:$0xff]  ;;  %v150_v20 = vld [vmem:[%s2070_s1 + $0x10] sm:$0xff] }
   0x6   :  { %330 = vmatpush.msra.mxu3 %v1618_v8  ;;  %122 = vmatpush.msra.mxu0 %v76_v9  ;;  %v1432_v14 = vld [vmem:[%s2072_s5] ss:$0 sm:$0xff]  ;;  %v1433_v19 = vld [vmem:[%s2072_s5 + $0x1] ss:$0 sm:$0xff]  ;;  %v151_v21 = vld [vmem:[%s2070_s1 + $0x18] sm:$0xff] }
   0x7   :  { %261 = vmatpush.msra.mxu2 %v1610_v6  ;;  %1372 = vmatmul.msk.f32.vlgmr.msra.gmra.mxu0 %vm82_vm1, %v68_v12  ;;  %v1655_v16 = vld [vmem:[%s2069_s3 + $0x20] sm:$0xff]  ;;  %v153_v23 = vld [vmem:[%s2070_s1 + $0x28] sm:$0xff]  ;;  %v154_v24 = vld [vmem:[%s2070_s1 + $0x30] sm:$0xff] }
   0x8   :  { %v241_v15 = vld [vmem:[#allocation2] sm:$0xff]  ;;  %331 = vmatpush.msra.mxu3 %v1633_v11  ;;  %289 = vrot.lane.b32.xlu0 %v1432_v14, %s1542_s9  ;;  %v155_v25 = vld [vmem:[%s2070_s1 + $0x38] sm:$0xff] }
   0x9   :  { %262 = vmatpush.msra.mxu2 %v1628_v10  ;;  %v1661_v18 = vld [vmem:[#allocation3] sm:$0xff]  ;;  %v152_v22 = vld [vmem:[%s2070_s1 + $0x20] sm:$0xff]  ;;  %s1543_s1 = smov 32  }
   0xa   :  { %1396 = vmatmul.msk.f32.vlgmr.msra.gmra.mxu2 %vm65_vm0, %v241_v15  ;;  %332 = vmatpush.msra.mxu3 %v1643_v13  ;;  %v1434_v26 = vld [vmem:[%s2073_s4 + $0x1] ss:$0 sm:$0xff]  ;;  %v1741_v47 = vld [vmem:[%s2073_s4] ss:$0 sm:$0xff] }
   0xb   :  { %403 = vmatpush.msrb.mxu2 %v1591_v1 }
   0xc   :  { %333 = vmatpush.msra.mxu3 %v1655_v16 }
   0xd   :  { %1384 = vmatmul.msk.f32.gmra.mxu1 %vm82_vm1, %v149_v17  ;;  %1398 = vmatmul.msk.f32.vlgmr.msra.gmra.mxu3 %vm65_vm0, %v1661_v18 }
   0xe   :  { %468 = vmatpush.msrb.mxu3 %v1618_v8  ;;  %404 = vmatpush.msrb.mxu2 %v1601_v4 }
  0x10   :  { %469 = vmatpush.msrb.mxu3 %v1633_v11  ;;  %405 = vmatpush.msrb.mxu2 %v1610_v6 }
  0x11   :  { %360 = vrot.lane.b32.xlu0 %v1433_v19, %s1542_s9 }
  0x12   :  { %470 = vmatpush.msrb.mxu3 %v1643_v13  ;;  %406 = vmatpush.msrb.mxu2 %v1628_v10 }
  0x14   :  { %471 = vmatpush.msrb.mxu3 %v1655_v16  ;;  %533 = vmatpush.msra.mxu2 %v1591_v1 }
  0x15   :  { %1385 = vmatmul.msk.f32.gmra.mxu1 %vm82_vm1, %v150_v20 }
  0x16   :  { %598 = vmatpush.msra.mxu3 %v1618_v8  ;;  %534 = vmatpush.msra.mxu2 %v1601_v4 }
  0x18   :  { %599 = vmatpush.msra.mxu3 %v1633_v11  ;;  %535 = vmatpush.msra.mxu2 %v1610_v6 }
  0x1a   :  { %600 = vmatpush.msra.mxu3 %v1643_v13  ;;  %536 = vmatpush.msra.mxu2 %v1628_v10 }
  0x1c   :  { %601 = vmatpush.msra.mxu3 %v1655_v16 }
  0x1d   :  { %1386 = vmatmul.msk.f32.gmra.mxu1 %vm82_vm1, %v151_v21 }
  0x25   :  { %1387 = vmatmul.msk.f32.gmra.mxu1 %vm82_vm1, %v152_v22 }
  0x2d   :  { %1388 = vmatmul.msk.f32.gmra.mxu1 %vm82_vm1, %v153_v23 }
  0x35   :  { %1389 = vmatmul.msk.f32.gmra.mxu1 %vm82_vm1, %v154_v24 }
  0x3d   :  { %1390 = vmatmul.msk.f32.gmra.mxu1 %vm82_vm1, %v155_v25 }
  0x7a   :  { %v1717_v29 = vpop.permute.xlu0 %289 }
  0x82   :  { %v205_v27 = vpop.f32.mrf.mxu1 }
  0x83   :  { %v1715_v28 = vadd.f32 %v1434_v26, %v205_v27  ;;  %v1723_v34 = vpop.permute.xlu0 %360 }
  0x84   :  { %v124_v48 = vpop.f32.mrf.mxu0 }
  0x85   :  { %v125_v49 = vadd.f32 %v1741_v47, %v124_v48 }
  0x8a   :  { %v208_v30 = vpop.f32.mrf.mxu1 }
  0x8b   :  { %v1719_v31 = vadd.f32 %v1434_v26, %v208_v30 }
  0x8d   :  { %v264_v32 = vpop.f32.mrf.mxu2 }
  0x8e   :  { %v292_v33 = vadd.f32 %v1717_v29, %v264_v32  ;;  %v267_v50 = vadd.f32 %v264_v32, %v125_v49 }
  0x90   :  { %294 = vrot.lane.b32.xlu1 %v292_v33, %s1542_s9  ;;  %v335_v35 = vpop.f32.mrf.mxu3  ;;  %v1397_v52 = vmul.f32 -1.442695, %v267_v50 }
  0x91   :  { %v363_v38 = vadd.f32 %v1723_v34, %v335_v35 }
  0x92   :  { %v211_v36 = vpop.f32.mrf.mxu1  ;;  %1436 = vpow2.f32 %v1397_v52 }
  0x93   :  { %v1725_v37 = vadd.f32 %v1434_v26, %v211_v36 }
  0x98   :  { %365 = vrot.lane.b32.xlu1 %v363_v38, %s1542_s9  ;;  %v1437_v56 = vpop.eup %1436 }
  0x99   :  { %v271_v57 = vadd.f32 1.0, %v1437_v56 }
  0x9a   :  { %v214_v39 = vpop.f32.mrf.mxu1 }
  0x9b   :  { %v1729_v40 = vadd.f32 %v1434_v26, %v214_v39  ;;  %v283_v7 = vand.u32 2147483648, %v271_v57  ;;  %vm277_vm3 = vweird.f32 %v271_v57  ;;  %v281_v9 = vand.u32 2147483647, %v271_v57 }
  0x9d   :  { %vm282_vm5 = vcmp.eq.f32.partialorder %v281_v9, 8.507059e+37 }
  0xa0   :  { %310 = vrot.lane.b32.xlu1 %v241_v15, %s1543_s1  ;;  %v284_v15 = vor.u32 1.1754944e-38, %v283_v7 }
  0xa2   :  { %v217_v41 = vpop.f32.mrf.mxu1 }
  0xa3   :  { %v1732_v42 = vadd.f32 %v1434_v26, %v217_v41 }
  0xaa   :  { %v220_v43 = vpop.f32.mrf.mxu1 }
  0xab   :  { %v1734_v44 = vadd.f32 %v1434_v26, %v220_v43 }
  0xb2   :  { %v223_v45 = vpop.f32.mrf.mxu1 }
  0xb3   :  { %v1736_v46 = vadd.f32 %v1434_v26, %v223_v45 }
  0xba   :  { %v226_v51 = vpop.f32.mrf.mxu1 }
  0xbb   :  { %v227_v53 = vadd.f32 %v1434_v26, %v226_v51 }
  0xbd   :  { %v338_v54 = vadd.f32 %v335_v35, %v227_v53 }
  0xbf   :  { %v1399_v55 = vmul.f32 -1.442695, %v338_v54 }
  0xc1   :  { %1438 = vpow2.f32 %v1399_v55 }
  0xc2   :  { %1440 = vrcp.f32 %v271_v57 }
  0xc7   :  { %v1439_v58 = vpop.eup %1438 }
  0xc8   :  { %v342_v59 = vadd.f32 1.0, %v1439_v58  ;;  %v1441_v60 = vpop.eup %1440 }
  0xc9   :  { %v273_v61 = vmul.f32 %v1441_v60, %v271_v57  ;;  %vm278_vm2 = vweird.f32 %v1441_v60 }
  0xca   :  { %1442 = vrcp.f32 %v342_v59  ;;  %vm279_vm4 = vmor %vm277_vm3, %vm278_vm2  ;;  %v354_v22 = vand.u32 2147483648, %v342_v59  ;;  %vm348_vm7 = vweird.f32 %v342_v59  ;;  %v352_v23 = vand.u32 2147483647, %v342_v59 }
  0xcb   :  { %v274_v62 = vsub.f32 1.0, %v273_v61 }
  0xcc   :  { %v355_v25 = vor.u32 1.1754944e-38, %v354_v22  ;;  %vm353_vm9 = vcmp.eq.f32.partialorder %v352_v23, 8.507059e+37 }
  0xcd   :  { %v275_v0 = vmul.f32 %v1441_v60, %v274_v62 }
  0xcf   :  { %v276_v3 = vadd.f32 %v1441_v60, %v275_v0 }
  0xd0   :  { %v1443_v63 = vpop.eup %1442 }
  0xd1   :  { %v344_v2 = vmul.f32 %v1443_v63, %v342_v59  ;;  %v280_v12 = vsel %vm279_vm4, %v1441_v60, %v276_v3  ;;  %vm349_vm6 = vweird.f32 %v1443_v63 }
  0xd2   :  { %v285_v19 = vsel %vm282_vm5, %v284_v15, %v280_v12  ;;  %vm350_vm8 = vmor %vm348_vm7, %vm349_vm6 }
  0xd3   :  { %v345_v5 = vsub.f32 1.0, %v344_v2  ;;  %v304_v43 = vsub.f32 1.0, %v285_v19 }
  0xd5   :  { %v346_v14 = vmul.f32 %v1443_v63, %v345_v5 }
  0xd7   :  { %v347_v21 = vadd.f32 %v1443_v63, %v346_v14 }
  0xd9   :  { %v351_v24 = vsel %vm350_vm8, %v1443_v63, %v347_v21 }
  0xda   :  { %v356_v27 = vsel %vm353_vm9, %v355_v25, %v351_v24 }
  0xdb   :  { %v375_v52 = vsub.f32 1.0, %v356_v27 }
 0x102   :  { %v295_v17 = vpop.permute.xlu1 %294 }
 0x103   :  { %v297_v20 = vmul.f32 %v295_v17, %v285_v19 }
 0x105   :  { %299 = vrot.lane.b32.xlu2 %v297_v20, %s1542_s9 }
 0x10a   :  { %v366_v26 = vpop.permute.xlu1 %365 }
 0x10b   :  { %v368_v30 = vmul.f32 %v366_v26, %v356_v27 }
 0x10d   :  { %370 = vrot.lane.b32.xlu2 %v368_v30, %s1542_s9 }
 0x112   :  { %v311_v41 = vpop.permute.xlu1 %310 }
 0x113   :  { %v313_v48 = vmul.f32 %v311_v41, %v285_v19 }
 0x15f   :  { %v300_v32 = vpop.permute.xlu2 %299 }
 0x160   :  { %v302_v33 = vadd.f32 %v300_v32, %v125_v49 }
 0x162   :  { %1444 = vtanh.f32 %v302_v33 }
 0x167   :  { %v371_v35 = vpop.permute.xlu2 %370 }
 0x168   :  { %v1445_v36 = vpop.eup %1444  ;;  %v373_v38 = vadd.f32 %v371_v35, %v227_v53 }
 0x169   :  { %306 = vrot.lane.b32.xlu0 %v1445_v36, %s1544_s26 }
 0x16a   :  { %1446 = vtanh.f32 %v373_v38 }
 0x170   :  { %v1447_v39 = vpop.eup %1446 }
 0x171   :  { %381 = vrot.lane.b32.xlu0 %v1661_v18, %s1543_s1  ;;  %377 = vrot.lane.b32.xlu2 %v1447_v39, %s1544_s26  ;;  %v69_v18 = vld [vmem:[%s2071_s0 + $0x8] sm:$0xff] }
 0x172   :  { %1373 = vmatmul.msk.f32.gmra.mxu0 %vm82_vm1, %v69_v18 }
 0x1cb   :  { %v378_v51 = vpop.permute.xlu2 %377 }
 0x1cc   :  { %v380_v54 = vmul.f32 %v378_v51, %v375_v52 }
 0x1db   :  { %v307_v45 = vpop.permute.xlu0 %306 }
 0x1dc   :  { %v309_v50 = vmul.f32 %v307_v45, %v304_v43 }
 0x1de   :  { %v1750_v49 = vadd.f32 %v313_v48, %v309_v50 }
 0x1e0   :  { %387 = vrot.lane.b32.xlu1 %v1750_v49, %s1544_s26 }
 0x1e3   :  { %v382_v53 = vpop.permute.xlu0 %381 }
 0x1e4   :  { %v384_v55 = vmul.f32 %v382_v53, %v356_v27 }
 0x1e6   :  { %v1754_v56 = vadd.f32 %v384_v55, %v380_v54 }
 0x1e8   :  { %452 = vrot.lane.b32.xlu2 %v1754_v56, %s1544_s26 }
 0x1ef   :  { %v127_v2 = vpop.f32.mrf.mxu0 }
 0x1f0   :  { %v128_v3 = vadd.f32 %v1741_v47, %v127_v2 }
 0x242   :  { %v453_v57 = vpop.permute.xlu2 %452 }
 0x243   :  { %1333 = vst.msk [vmem:[%s2074_s7 + $0x38] sm:$0xff] %vm65_vm0, %v453_v57  ;;  %1402 = vmatmul.msk.f32.vlgmr.msrb.gmra.mxu3 %vm65_vm0, %v453_v57 }
 0x244   :  { %728 = vmatpush.msrb.mxu3 %v1618_v8 }
 0x246   :  { %729 = vmatpush.msrb.mxu3 %v1633_v11 }
 0x248   :  { %730 = vmatpush.msrb.mxu3 %v1643_v13 }
 0x24a   :  { %731 = vmatpush.msrb.mxu3 %v1655_v16 }
 0x252   :  { %v388_v58 = vpop.permute.xlu1 %387 }
 0x253   :  { %1307 = vst.msk [vmem:[%s2075_s6] sm:$0xff] %vm65_vm0, %v388_v58  ;;  %1400 = vmatmul.msk.f32.vlgmr.msrb.gmra.mxu2 %vm65_vm0, %v388_v58 }
 0x254   :  { %663 = vmatpush.msrb.mxu2 %v1591_v1 }
 0x256   :  { %664 = vmatpush.msrb.mxu2 %v1601_v4 }
 0x258   :  { %665 = vmatpush.msrb.mxu2 %v1610_v6 }
 0x25a   :  { %666 = vmatpush.msrb.mxu2 %v1628_v10 }
 0x2c6   :  { %v473_v59 = vpop.f32.mrf.mxu3 }
 0x2c7   :  { %v496_v60 = vadd.f32 %v473_v59, %v1723_v34  ;;  %v476_v63 = vadd.f32 %v473_v59, %v1736_v46 }
 0x2c9   :  { %498 = vrot.lane.b32.xlu1 %v496_v60, %s1542_s9  ;;  %v1403_v0 = vmul.f32 -1.442695, %v476_v63 }
 0x2cb   :  { %1448 = vpow2.f32 %v1403_v0 }
 0x2d1   :  { %v1449_v5 = vpop.eup %1448 }
 0x2d2   :  { %v480_v9 = vadd.f32 1.0, %v1449_v5 }
 0x2d4   :  { %1450 = vrcp.f32 %v480_v9  ;;  %v492_v24 = vand.u32 2147483648, %v480_v9  ;;  %vm486_vm11 = vweird.f32 %v480_v9  ;;  %v490_v25 = vand.u32 2147483647, %v480_v9 }
 0x2d6   :  { %v408_v61 = vpop.f32.mrf.mxu2  ;;  %v493_v30 = vor.u32 1.1754944e-38, %v492_v24  ;;  %vm491_vm13 = vcmp.eq.f32.partialorder %v490_v25, 8.507059e+37 }
 0x2d7   :  { %v431_v62 = vadd.f32 %v408_v61, %v1717_v29  ;;  %v411_v7 = vadd.f32 %v408_v61, %v128_v3 }
 0x2d9   :  { %433 = vrot.lane.b32.xlu0 %v431_v62, %s1542_s9  ;;  %v1401_v12 = vmul.f32 -1.442695, %v411_v7 }
 0x2da   :  { %v1451_v14 = vpop.eup %1450 }
 0x2db   :  { %1452 = vpow2.f32 %v1401_v12  ;;  %v482_v17 = vmul.f32 %v1451_v14, %v480_v9  ;;  %vm487_vm10 = vweird.f32 %v1451_v14 }
 0x2dc   :  { %vm488_vm12 = vmor %vm486_vm11, %vm487_vm10 }
 0x2dd   :  { %v483_v20 = vsub.f32 1.0, %v482_v17 }
 0x2df   :  { %v484_v21 = vmul.f32 %v1451_v14, %v483_v20 }
 0x2e1   :  { %v1453_v15 = vpop.eup %1452  ;;  %v485_v22 = vadd.f32 %v1451_v14, %v484_v21 }
 0x2e2   :  { %v415_v19 = vadd.f32 1.0, %v1453_v15 }
 0x2e3   :  { %v489_v26 = vsel %vm488_vm12, %v1451_v14, %v485_v22 }
 0x2e4   :  { %1454 = vrcp.f32 %v415_v19  ;;  %v494_v33 = vsel %vm491_vm13, %v493_v30, %v489_v26  ;;  %v427_v41 = vand.u32 2147483648, %v415_v19  ;;  %vm421_vm15 = vweird.f32 %v415_v19 }
 0x2e5   :  { %v425_v43 = vand.u32 2147483647, %v415_v19  ;;  %v508_v59 = vsub.f32 1.0, %v494_v33  ;;  %v514_v61 = vmul.f32 %v494_v33, %v1754_v56  ;;  %v70_v56 = vld [vmem:[%s2071_s0 + $0x10] sm:$0xff] }
 0x2e6   :  { %v428_v48 = vor.u32 1.1754944e-38, %v427_v41  ;;  %1374 = vmatmul.msk.f32.gmra.mxu0 %vm82_vm1, %v70_v56 }
 0x2e7   :  { %vm426_vm3 = vcmp.eq.f32.partialorder %v425_v43, 8.507059e+37 }
 0x2ea   :  { %v1455_v23 = vpop.eup %1454 }
 0x2eb   :  { %v417_v27 = vmul.f32 %v1455_v23, %v415_v19  ;;  %vm422_vm14 = vweird.f32 %v1455_v23 }
 0x2ec   :  { %vm423_vm2 = vmor %vm421_vm15, %vm422_vm14 }
 0x2ed   :  { %v418_v36 = vsub.f32 1.0, %v417_v27 }
 0x2ef   :  { %v419_v38 = vmul.f32 %v1455_v23, %v418_v36 }
 0x2f1   :  { %v420_v39 = vadd.f32 %v1455_v23, %v419_v38 }
 0x2f3   :  { %v424_v45 = vsel %vm423_vm2, %v1455_v23, %v420_v39 }
 0x2f4   :  { %v429_v50 = vsel %vm426_vm3, %v428_v48, %v424_v45 }
 0x2f5   :  { %v443_v0 = vsub.f32 1.0, %v429_v50 }
 0x33b   :  { %v499_v32 = vpop.permute.xlu1 %498 }
 0x33c   :  { %v501_v35 = vmul.f32 %v499_v32, %v494_v33 }
 0x33e   :  { %503 = vrot.lane.b32.xlu0 %v501_v35, %s1542_s9 }
 0x34b   :  { %v434_v51 = vpop.permute.xlu0 %433 }
 0x34c   :  { %v436_v52 = vmul.f32 %v434_v51, %v429_v50 }
 0x34e   :  { %438 = vrot.lane.b32.xlu2 %v436_v52, %s1542_s9 }
 0x363   :  { %v130_v17 = vpop.f32.mrf.mxu0 }
 0x364   :  { %v131_v19 = vadd.f32 %v1741_v47, %v130_v17 }
 0x3a8   :  { %v439_v53 = vpop.permute.xlu2 %438 }
 0x3a9   :  { %v441_v54 = vadd.f32 %v439_v53, %v128_v3 }
 0x3ab   :  { %1456 = vtanh.f32 %v441_v54 }
 0x3b0   :  { %v504_v55 = vpop.permute.xlu0 %503 }
 0x3b1   :  { %v1457_v18 = vpop.eup %1456  ;;  %v506_v57 = vadd.f32 %v504_v55, %v1736_v46  ;;  %v449_v46 = vmul.f32 %v429_v50, %v1750_v49 }
 0x3b2   :  { %445 = vrot.lane.b32.xlu1 %v1457_v18, %s1544_s26 }
 0x3b3   :  { %1458 = vtanh.f32 %v506_v57 }
 0x3b9   :  { %v1459_v58 = vpop.eup %1458 }
 0x3ba   :  { %510 = vrot.lane.b32.xlu2 %v1459_v58, %s1544_s26 }
 0x414   :  { %v511_v60 = vpop.permute.xlu2 %510 }
 0x415   :  { %v513_v62 = vmul.f32 %v511_v60, %v508_v59 }
 0x417   :  { %v1792_v63 = vadd.f32 %v514_v61, %v513_v62 }
 0x419   :  { %582 = vrot.lane.b32.xlu1 %v1792_v63, %s1544_s26 }
 0x424   :  { %v446_v2 = vpop.permute.xlu1 %445 }
 0x425   :  { %v448_v3 = vmul.f32 %v446_v2, %v443_v0 }
 0x427   :  { %v1797_v5 = vadd.f32 %v449_v46, %v448_v3 }
 0x429   :  { %517 = vrot.lane.b32.xlu0 %v1797_v5, %s1544_s26 }
 0x48b   :  { %v583_v7 = vpop.permute.xlu1 %582 }
 0x48c   :  { %1332 = vst.msk [vmem:[%s2074_s7 + $0x30] sm:$0xff] %vm65_vm0, %v583_v7  ;;  %1406 = vmatmul.msk.f32.vlgmr.msra.gmra.mxu3 %vm65_vm0, %v583_v7 }
 0x48d   :  { %858 = vmatpush.msra.mxu3 %v1618_v8 }
 0x48f   :  { %859 = vmatpush.msra.mxu3 %v1633_v11 }
 0x491   :  { %860 = vmatpush.msra.mxu3 %v1643_v13 }
 0x493   :  { %861 = vmatpush.msra.mxu3 %v1655_v16 }
 0x49b   :  { %v518_v49 = vpop.permute.xlu0 %517 }
 0x49c   :  { %1308 = vst.msk [vmem:[%s2075_s6 + $0x8] sm:$0xff] %vm65_vm0, %v518_v49  ;;  %1404 = vmatmul.msk.f32.vlgmr.msra.gmra.mxu2 %vm65_vm0, %v518_v49 }
 0x49d   :  { %793 = vmatpush.msra.mxu2 %v1591_v1 }
 0x49f   :  { %794 = vmatpush.msra.mxu2 %v1601_v4 }
 0x4a1   :  { %795 = vmatpush.msra.mxu2 %v1610_v6 }
 0x4a3   :  { %796 = vmatpush.msra.mxu2 %v1628_v10 }
 0x50f   :  { %v603_v9 = vpop.f32.mrf.mxu3 }
 0x510   :  { %v626_v12 = vadd.f32 %v603_v9, %v1723_v34  ;;  %v606_v22 = vadd.f32 %v603_v9, %v1734_v44 }
 0x512   :  { %628 = vrot.lane.b32.xlu0 %v626_v12, %s1542_s9  ;;  %v1407_v23 = vmul.f32 -1.442695, %v606_v22 }
 0x51f   :  { %v538_v14 = vpop.f32.mrf.mxu2 }
 0x520   :  { %v561_v15 = vadd.f32 %v538_v14, %v1717_v29  ;;  %v541_v20 = vadd.f32 %v538_v14, %v131_v19 }
 0x522   :  { %563 = vrot.lane.b32.xlu2 %v561_v15, %s1542_s9  ;;  %v1405_v21 = vmul.f32 -1.442695, %v541_v20 }
 0x524   :  { %1460 = vpow2.f32 %v1405_v21 }
 0x525   :  { %1462 = vpow2.f32 %v1407_v23 }
 0x52a   :  { %v1461_v24 = vpop.eup %1460 }
 0x52b   :  { %v545_v25 = vadd.f32 1.0, %v1461_v24  ;;  %v1463_v26 = vpop.eup %1462 }
 0x52c   :  { %v610_v27 = vadd.f32 1.0, %v1463_v26 }
 0x52d   :  { %1464 = vrcp.f32 %v545_v25  ;;  %v557_v43 = vand.u32 2147483648, %v545_v25  ;;  %vm551_vm5 = vweird.f32 %v545_v25  ;;  %v555_v45 = vand.u32 2147483647, %v545_v25 }
 0x52e   :  { %1466 = vrcp.f32 %v610_v27  ;;  %v622_v18 = vand.u32 2147483648, %v610_v27  ;;  %vm616_vm9 = vweird.f32 %v610_v27  ;;  %v620_v57 = vand.u32 2147483647, %v610_v27 }
 0x52f   :  { %v558_v51 = vor.u32 1.1754944e-38, %v557_v43  ;;  %vm556_vm7 = vcmp.eq.f32.partialorder %v555_v45, 8.507059e+37 }
 0x530   :  { %v623_v59 = vor.u32 1.1754944e-38, %v622_v18  ;;  %vm621_vm11 = vcmp.eq.f32.partialorder %v620_v57, 8.507059e+37 }
 0x533   :  { %v1465_v30 = vpop.eup %1464 }
 0x534   :  { %v547_v32 = vmul.f32 %v1465_v30, %v545_v25  ;;  %v1467_v35 = vpop.eup %1466  ;;  %vm552_vm4 = vweird.f32 %v1465_v30 }
 0x535   :  { %v612_v38 = vmul.f32 %v1467_v35, %v610_v27  ;;  %vm553_vm6 = vmor %vm551_vm5, %vm552_vm4  ;;  %vm617_vm8 = vweird.f32 %v1467_v35 }
 0x536   :  { %v548_v33 = vsub.f32 1.0, %v547_v32  ;;  %vm618_vm10 = vmor %vm616_vm9, %vm617_vm8 }
 0x537   :  { %v613_v41 = vsub.f32 1.0, %v612_v38 }
 0x538   :  { %v549_v36 = vmul.f32 %v1465_v30, %v548_v33 }
 0x539   :  { %v614_v50 = vmul.f32 %v1467_v35, %v613_v41 }
 0x53a   :  { %v550_v39 = vadd.f32 %v1465_v30, %v549_v36 }
 0x53b   :  { %v615_v55 = vadd.f32 %v1467_v35, %v614_v50 }
 0x53c   :  { %v554_v48 = vsel %vm553_vm6, %v1465_v30, %v550_v39 }
 0x53d   :  { %v559_v52 = vsel %vm556_vm7, %v558_v51, %v554_v48  ;;  %v619_v58 = vsel %vm618_vm10, %v1467_v35, %v615_v55 }
 0x53e   :  { %v624_v61 = vsel %vm621_vm11, %v623_v59, %v619_v58  ;;  %v579_v20 = vmul.f32 %v559_v52, %v1797_v5 }
 0x53f   :  { %v638_v49 = vsub.f32 1.0, %v624_v61  ;;  %v644_v12 = vmul.f32 %v624_v61, %v1792_v63  ;;  %v71_v63 = vld [vmem:[%s2071_s0 + $0x18] sm:$0xff] }
 0x540   :  { %1375 = vmatmul.msk.f32.gmra.mxu0 %vm82_vm1, %v71_v63 }
 0x57c   :  { %v564_v53 = vpop.permute.xlu2 %563 }
 0x57d   :  { %v566_v54 = vmul.f32 %v564_v53, %v559_v52 }
 0x57f   :  { %568 = vrot.lane.b32.xlu1 %v566_v54, %s1542_s9 }
 0x584   :  { %v629_v60 = vpop.permute.xlu0 %628 }
 0x585   :  { %v631_v62 = vmul.f32 %v629_v60, %v624_v61 }
 0x587   :  { %633 = vrot.lane.b32.xlu2 %v631_v62, %s1542_s9 }
 0x5bd   :  { %v133_v32 = vpop.f32.mrf.mxu0 }
 0x5be   :  { %v134_v33 = vadd.f32 %v1741_v47, %v133_v32 }
 0x5e1   :  { %v634_v0 = vpop.permute.xlu2 %633 }
 0x5e2   :  { %v636_v2 = vadd.f32 %v634_v0, %v1734_v44  ;;  %v573_v44 = vsub.f32 1.0, %v559_v52 }
 0x5e4   :  { %1468 = vtanh.f32 %v636_v2 }
 0x5ea   :  { %v1469_v46 = vpop.eup %1468 }
 0x5eb   :  { %640 = vrot.lane.b32.xlu1 %v1469_v46, %s1544_s26 }
 0x5f1   :  { %v569_v3 = vpop.permute.xlu1 %568 }
 0x5f2   :  { %v571_v56 = vadd.f32 %v569_v3, %v131_v19 }
 0x5f4   :  { %1470 = vtanh.f32 %v571_v56 }
 0x5fa   :  { %v1471_v7 = vpop.eup %1470 }
 0x5fb   :  { %575 = vrot.lane.b32.xlu0 %v1471_v7, %s1544_s26 }
 0x65d   :  { %v641_v9 = vpop.permute.xlu1 %640 }
 0x65e   :  { %v643_v14 = vmul.f32 %v641_v9, %v638_v49 }
 0x660   :  { %v1835_v15 = vadd.f32 %v644_v12, %v643_v14 }
 0x662   :  { %712 = vrot.lane.b32.xlu0 %v1835_v15, %s1544_s26 }
 0x66d   :  { %v576_v17 = vpop.permute.xlu0 %575 }
 0x66e   :  { %v578_v21 = vmul.f32 %v576_v17, %v573_v44 }
 0x670   :  { %v1840_v19 = vadd.f32 %v579_v20, %v578_v21 }
 0x672   :  { %647 = vrot.lane.b32.xlu2 %v1840_v19, %s1544_s26 }
 0x6cc   :  { %v648_v22 = vpop.permute.xlu2 %647 }
 0x6cd   :  { %1309 = vst.msk [vmem:[%s2075_s6 + $0x10] sm:$0xff] %vm65_vm0, %v648_v22  ;;  %1408 = vmatmul.msk.f32.vlgmr.msrb.gmra.mxu2 %vm65_vm0, %v648_v22 }
 0x6ce   :  { %923 = vmatpush.msrb.mxu2 %v1591_v1 }
 0x6d0   :  { %924 = vmatpush.msrb.mxu2 %v1601_v4 }
 0x6d2   :  { %925 = vmatpush.msrb.mxu2 %v1610_v6 }
 0x6d4   :  { %v713_v5 = vpop.permute.xlu0 %712  ;;  %926 = vmatpush.msrb.mxu2 %v1628_v10 }
 0x6d5   :  { %1331 = vst.msk [vmem:[%s2074_s7 + $0x28] sm:$0xff] %vm65_vm0, %v713_v5  ;;  %1410 = vmatmul.msk.f32.vlgmr.msrb.gmra.mxu3 %vm65_vm0, %v713_v5 }
 0x6d6   :  { %988 = vmatpush.msrb.mxu3 %v1618_v8 }
 0x6d8   :  { %989 = vmatpush.msrb.mxu3 %v1633_v11 }
 0x6da   :  { %990 = vmatpush.msrb.mxu3 %v1643_v13 }
 0x6dc   :  { %991 = vmatpush.msrb.mxu3 %v1655_v16 }
 0x750   :  { %v668_v23 = vpop.f32.mrf.mxu2 }
 0x751   :  { %v691_v24 = vadd.f32 %v668_v23, %v1717_v29  ;;  %v671_v36 = vadd.f32 %v668_v23, %v134_v33 }
 0x753   :  { %693 = vrot.lane.b32.xlu1 %v691_v24, %s1542_s9  ;;  %v1409_v39 = vmul.f32 -1.442695, %v671_v36 }
 0x758   :  { %v733_v25 = vpop.f32.mrf.mxu3 }
 0x759   :  { %v756_v26 = vadd.f32 %v733_v25, %v1723_v34  ;;  %v736_v27 = vadd.f32 %v733_v25, %v1732_v42 }
 0x75b   :  { %758 = vrot.lane.b32.xlu2 %v756_v26, %s1542_s9  ;;  %v1411_v30 = vmul.f32 -1.442695, %v736_v27 }
 0x75d   :  { %1472 = vpow2.f32 %v1411_v30 }
 0x763   :  { %v1473_v35 = vpop.eup %1472 }
 0x764   :  { %v740_v38 = vadd.f32 1.0, %v1473_v35 }
 0x766   :  { %1474 = vrcp.f32 %v740_v38  ;;  %v752_v54 = vand.u32 2147483648, %v740_v38  ;;  %vm746_vm13 = vweird.f32 %v740_v38  ;;  %v750_v55 = vand.u32 2147483647, %v740_v38 }
 0x767   :  { %1476 = vpow2.f32 %v1409_v39 }
 0x768   :  { %v753_v58 = vor.u32 1.1754944e-38, %v752_v54  ;;  %vm751_vm15 = vcmp.eq.f32.partialorder %v750_v55, 8.507059e+37 }
 0x76c   :  { %v1475_v41 = vpop.eup %1474 }
 0x76d   :  { %v1477_v43 = vpop.eup %1476  ;;  %v742_v45 = vmul.f32 %v1475_v41, %v740_v38  ;;  %vm747_vm12 = vweird.f32 %v1475_v41 }
 0x76e   :  { %v675_v48 = vadd.f32 1.0, %v1477_v43  ;;  %vm748_vm14 = vmor %vm746_vm13, %vm747_vm12 }
 0x76f   :  { %v743_v50 = vsub.f32 1.0, %v742_v45 }
 0x770   :  { %1478 = vrcp.f32 %v675_v48  ;;  %v687_v46 = vand.u32 2147483648, %v675_v48  ;;  %vm681_vm3 = vweird.f32 %v675_v48  ;;  %v685_v3 = vand.u32 2147483647, %v675_v48 }
 0x771   :  { %v744_v51 = vmul.f32 %v1475_v41, %v743_v50 }
 0x772   :  { %v688_v7 = vor.u32 1.1754944e-38, %v687_v46  ;;  %vm686_vm5 = vcmp.eq.f32.partialorder %v685_v3, 8.507059e+37 }
 0x773   :  { %v745_v52 = vadd.f32 %v1475_v41, %v744_v51 }
 0x775   :  { %v749_v18 = vsel %vm748_vm14, %v1475_v41, %v745_v52 }
 0x776   :  { %v1479_v53 = vpop.eup %1478  ;;  %v754_v59 = vsel %vm751_vm15, %v753_v58, %v749_v18 }
 0x777   :  { %v677_v57 = vmul.f32 %v1479_v53, %v675_v48  ;;  %vm682_vm2 = vweird.f32 %v1479_v53  ;;  %v774_v27 = vmul.f32 %v754_v59, %v1835_v15 }
 0x778   :  { %vm683_vm4 = vmor %vm681_vm3, %vm682_vm2 }
 0x779   :  { %v678_v62 = vsub.f32 1.0, %v677_v57 }
 0x77b   :  { %v679_v0 = vmul.f32 %v1479_v53, %v678_v62 }
 0x77d   :  { %v680_v2 = vadd.f32 %v1479_v53, %v679_v0 }
 0x77f   :  { %v684_v56 = vsel %vm683_vm4, %v1479_v53, %v680_v2 }
 0x780   :  { %v689_v9 = vsel %vm686_vm5, %v688_v7, %v684_v56 }
 0x781   :  { %v703_v22 = vsub.f32 1.0, %v689_v9  ;;  %v709_v23 = vmul.f32 %v689_v9, %v1840_v19  ;;  %v72_v19 = vld [vmem:[%s2071_s0 + $0x20] sm:$0xff] }
 0x782   :  { %1376 = vmatmul.msk.f32.gmra.mxu0 %vm82_vm1, %v72_v19 }
 0x7b5   :  { %v759_v60 = vpop.permute.xlu2 %758 }
 0x7b6   :  { %v761_v61 = vmul.f32 %v759_v60, %v754_v59 }
 0x7b8   :  { %763 = vrot.lane.b32.xlu1 %v761_v61, %s1542_s9 }
 0x7c5   :  { %v694_v49 = vpop.permute.xlu1 %693 }
 0x7c6   :  { %v696_v12 = vmul.f32 %v694_v49, %v689_v9 }
 0x7c8   :  { %698 = vrot.lane.b32.xlu0 %v696_v12, %s1542_s9 }
 0x82a   :  { %v764_v14 = vpop.permute.xlu1 %763 }
 0x82b   :  { %v766_v44 = vadd.f32 %v764_v14, %v1732_v42  ;;  %v768_v42 = vsub.f32 1.0, %v754_v59 }
 0x82d   :  { %1480 = vtanh.f32 %v766_v44 }
 0x833   :  { %v1481_v17 = vpop.eup %1480 }
 0x834   :  { %770 = vrot.lane.b32.xlu0 %v1481_v17, %s1544_s26 }
 0x83a   :  { %v699_v20 = vpop.permute.xlu0 %698 }
 0x83b   :  { %v701_v21 = vadd.f32 %v699_v20, %v134_v33 }
 0x83d   :  { %1482 = vtanh.f32 %v701_v21 }
 0x843   :  { %v1483_v63 = vpop.eup %1482 }
 0x844   :  { %705 = vrot.lane.b32.xlu2 %v1483_v63, %s1544_s26 }
 0x89e   :  { %v706_v5 = vpop.permute.xlu2 %705 }
 0x89f   :  { %v708_v24 = vmul.f32 %v706_v5, %v703_v22 }
 0x8a1   :  { %v1878_v25 = vadd.f32 %v709_v23, %v708_v24 }
 0x8a3   :  { %777 = vrot.lane.b32.xlu1 %v1878_v25, %s1544_s26 }
 0x8a6   :  { %v771_v26 = vpop.permute.xlu0 %770 }
 0x8a7   :  { %v773_v30 = vmul.f32 %v771_v26, %v768_v42 }
 0x8a9   :  { %v1883_v32 = vadd.f32 %v774_v27, %v773_v30 }
 0x8ab   :  { %842 = vrot.lane.b32.xlu2 %v1883_v32, %s1544_s26 }
 0x905   :  { %v843_v33 = vpop.permute.xlu2 %842 }
 0x906   :  { %1330 = vst.msk [vmem:[%s2074_s7 + $0x20] sm:$0xff] %vm65_vm0, %v843_v33  ;;  %1414 = vmatmul.msk.f32.vlgmr.msra.gmra.mxu3 %vm65_vm0, %v843_v33 }
 0x907   :  { %1118 = vmatpush.msra.mxu3 %v1618_v8 }
 0x909   :  { %1119 = vmatpush.msra.mxu3 %v1633_v11 }
 0x90b   :  { %1120 = vmatpush.msra.mxu3 %v1643_v13 }
 0x90d   :  { %1121 = vmatpush.msra.mxu3 %v1655_v16 }
 0x915   :  { %v778_v15 = vpop.permute.xlu1 %777 }
 0x916   :  { %1310 = vst.msk [vmem:[%s2075_s6 + $0x18] sm:$0xff] %vm65_vm0, %v778_v15  ;;  %1412 = vmatmul.msk.f32.vlgmr.msra.gmra.mxu2 %vm65_vm0, %v778_v15  ;;  %v1533_v15 = vld [vmem:[%s2069_s3 + $0x30] sm:$0xff] }
 0x917   :  { %1053 = vmatpush.msra.mxu2 %v1591_v1  ;;  %v136_v1 = vpop.f32.mrf.mxu0 }
 0x919   :  { %1054 = vmatpush.msra.mxu2 %v1601_v4  ;;  %v137_v4 = vadd.f32 %v1741_v47, %v136_v1  ;;  %v1539_v1 = vld [vmem:[%s2069_s3] sm:$0xff] }
 0x91b   :  { %1055 = vmatpush.msra.mxu2 %v1610_v6 }
 0x91d   :  { %1056 = vmatpush.msra.mxu2 %v1628_v10 }
 0x989   :  { %v863_v8 = vpop.f32.mrf.mxu3 }
 0x98a   :  { %v886_v11 = vadd.f32 %v863_v8, %v1723_v34  ;;  %v866_v35 = vadd.f32 %v863_v8, %v1729_v40  ;;  %v1534_v8 = vld [vmem:[%s2069_s3 + $0x28] sm:$0xff] }
 0x98c   :  { %888 = vrot.lane.b32.xlu1 %v886_v11, %s1542_s9  ;;  %v1415_v36 = vmul.f32 -1.442695, %v866_v35  ;;  %v1535_v11 = vld [vmem:[%s2069_s3 + $0x20] sm:$0xff]  ;;  %v1537_v35 = vld [vmem:[%s2069_s3 + $0x10] sm:$0xff] }
 0x98e   :  { %1484 = vpow2.f32 %v1415_v36  ;;  %v1538_v36 = vld [vmem:[%s2069_s3 + $0x8] sm:$0xff] }
 0x994   :  { %v1485_v6 = vpop.eup %1484 }
 0x995   :  { %v870_v10 = vadd.f32 1.0, %v1485_v6 }
 0x997   :  { %1486 = vrcp.f32 %v870_v10  ;;  %v882_v54 = vand.u32 2147483648, %v870_v10  ;;  %vm876_vm7 = vweird.f32 %v870_v10  ;;  %v880_v55 = vand.u32 2147483647, %v870_v10 }
 0x999   :  { %v798_v13 = vpop.f32.mrf.mxu2  ;;  %v883_v58 = vor.u32 1.1754944e-38, %v882_v54  ;;  %vm881_vm9 = vcmp.eq.f32.partialorder %v880_v55, 8.507059e+37 }
 0x99a   :  { %v821_v16 = vadd.f32 %v798_v13, %v1717_v29  ;;  %v801_v38 = vadd.f32 %v798_v13, %v137_v4 }
 0x99c   :  { %823 = vrot.lane.b32.xlu0 %v821_v16, %s1542_s9  ;;  %v1413_v39 = vmul.f32 -1.442695, %v801_v38  ;;  %v1536_v16 = vld [vmem:[%s2069_s3 + $0x18] sm:$0xff] }
 0x99d   :  { %v1487_v41 = vpop.eup %1486 }
 0x99e   :  { %1488 = vpow2.f32 %v1413_v39  ;;  %v872_v45 = vmul.f32 %v1487_v41, %v870_v10  ;;  %vm877_vm6 = vweird.f32 %v1487_v41 }
 0x99f   :  { %vm878_vm8 = vmor %vm876_vm7, %vm877_vm6 }
 0x9a0   :  { %v873_v50 = vsub.f32 1.0, %v872_v45 }
 0x9a2   :  { %v874_v51 = vmul.f32 %v1487_v41, %v873_v50 }
 0x9a4   :  { %v1489_v43 = vpop.eup %1488  ;;  %v875_v52 = vadd.f32 %v1487_v41, %v874_v51 }
 0x9a5   :  { %v805_v48 = vadd.f32 1.0, %v1489_v43 }
 0x9a6   :  { %v879_v18 = vsel %vm878_vm8, %v1487_v41, %v875_v52 }
 0x9a7   :  { %1490 = vrcp.f32 %v805_v48  ;;  %v884_v60 = vsel %vm881_vm9, %v883_v58, %v879_v18  ;;  %v817_v46 = vand.u32 2147483648, %v805_v48  ;;  %vm811_vm11 = vweird.f32 %v805_v48 }
 0x9a8   :  { %v815_v3 = vand.u32 2147483647, %v805_v48  ;;  %v898_v22 = vsub.f32 1.0, %v884_v60  ;;  %v904_v23 = vmul.f32 %v884_v60, %v1883_v32  ;;  %v73_v32 = vld [vmem:[%s2071_s0 + $0x28] sm:$0xff] }
 0x9a9   :  { %v818_v7 = vor.u32 1.1754944e-38, %v817_v46  ;;  %1377 = vmatmul.msk.f32.gmra.mxu0 %vm82_vm1, %v73_v32 }
 0x9aa   :  { %vm816_vm13 = vcmp.eq.f32.partialorder %v815_v3, 8.507059e+37 }
 0x9ad   :  { %v1491_v53 = vpop.eup %1490 }
 0x9ae   :  { %v807_v57 = vmul.f32 %v1491_v53, %v805_v48  ;;  %vm812_vm10 = vweird.f32 %v1491_v53 }
 0x9af   :  { %vm813_vm12 = vmor %vm811_vm11, %vm812_vm10 }
 0x9b0   :  { %v808_v62 = vsub.f32 1.0, %v807_v57 }
 0x9b2   :  { %v809_v0 = vmul.f32 %v1491_v53, %v808_v62 }
 0x9b4   :  { %v810_v2 = vadd.f32 %v1491_v53, %v809_v0 }
 0x9b6   :  { %v814_v56 = vsel %vm813_vm12, %v1491_v53, %v810_v2 }
 0x9b7   :  { %v819_v9 = vsel %vm816_vm13, %v818_v7, %v814_v56 }
 0x9b8   :  { %v833_v26 = vsub.f32 1.0, %v819_v9 }
 0x9fe   :  { %v889_v59 = vpop.permute.xlu1 %888 }
 0x9ff   :  { %v891_v61 = vmul.f32 %v889_v59, %v884_v60 }
 0xa01   :  { %893 = vrot.lane.b32.xlu0 %v891_v61, %s1542_s9 }
 0xa0e   :  { %v824_v49 = vpop.permute.xlu0 %823 }
 0xa0f   :  { %v826_v12 = vmul.f32 %v824_v49, %v819_v9 }
 0xa11   :  { %828 = vrot.lane.b32.xlu2 %v826_v12, %s1542_s9 }
 0xa26   :  { %v139_v39 = vpop.f32.mrf.mxu0 }
 0xa27   :  { %v140_v41 = vadd.f32 %v1741_v47, %v139_v39  ;;  %v2011_v39 = vld [vmem:[%s2073_s4] ss:$0 sm:$0xff] }
 0xa6b   :  { %v829_v14 = vpop.permute.xlu2 %828 }
 0xa6c   :  { %v831_v44 = vadd.f32 %v829_v14, %v137_v4 }
 0xa6e   :  { %1492 = vtanh.f32 %v831_v44 }
 0xa73   :  { %v894_v17 = vpop.permute.xlu0 %893 }
 0xa74   :  { %v1493_v20 = vpop.eup %1492  ;;  %v896_v21 = vadd.f32 %v894_v17, %v1729_v40  ;;  %v839_v40 = vmul.f32 %v819_v9, %v1878_v25  ;;  %v1532_v25 = vld [vmem:[%s2069_s3 + $0x38] sm:$0xff] }
 0xa75   :  { %835 = vrot.lane.b32.xlu1 %v1493_v20, %s1544_s26 }
 0xa76   :  { %1494 = vtanh.f32 %v896_v21 }
 0xa7c   :  { %v1495_v63 = vpop.eup %1494 }
 0xa7d   :  { %900 = vrot.lane.b32.xlu2 %v1495_v63, %s1544_s26 }
 0xad7   :  { %v901_v5 = vpop.permute.xlu2 %900 }
 0xad8   :  { %v903_v24 = vmul.f32 %v901_v5, %v898_v22 }
 0xada   :  { %v1921_v42 = vadd.f32 %v904_v23, %v903_v24 }
 0xadc   :  { %972 = vrot.lane.b32.xlu1 %v1921_v42, %s1544_s26 }
 0xae7   :  { %v836_v27 = vpop.permute.xlu1 %835 }
 0xae8   :  { %v838_v30 = vmul.f32 %v836_v27, %v833_v26 }
 0xaea   :  { %v1926_v19 = vadd.f32 %v839_v40, %v838_v30 }
 0xaec   :  { %907 = vrot.lane.b32.xlu0 %v1926_v19, %s1544_s26 }
 0xb4e   :  { %v973_v33 = vpop.permute.xlu1 %972 }
 0xb4f   :  { %1329 = vst.msk [vmem:[%s2074_s7 + $0x18] sm:$0xff] %vm65_vm0, %v973_v33  ;;  %1418 = vmatmul.msk.f32.vlgmr.msrb.gmra.mxu3 %vm65_vm0, %v973_v33 }
 0xb50   :  { %1248 = vmatpush.msrb.mxu3 %v1532_v25 }
 0xb52   :  { %1249 = vmatpush.msrb.mxu3 %v1533_v15 }
 0xb54   :  { %1250 = vmatpush.msrb.mxu3 %v1534_v8 }
 0xb56   :  { %1251 = vmatpush.msrb.mxu3 %v1535_v11 }
 0xb5e   :  { %v908_v13 = vpop.permute.xlu0 %907 }
 0xb5f   :  { %1311 = vst.msk [vmem:[%s2075_s6 + $0x20] sm:$0xff] %vm65_vm0, %v908_v13  ;;  %1416 = vmatmul.msk.f32.vlgmr.msrb.gmra.mxu2 %vm65_vm0, %v908_v13 }
 0xb60   :  { %1183 = vmatpush.msrb.mxu2 %v1536_v16 }
 0xb62   :  { %1184 = vmatpush.msrb.mxu2 %v1537_v35 }
 0xb64   :  { %1185 = vmatpush.msrb.mxu2 %v1538_v36 }
 0xb66   :  { %1186 = vmatpush.msrb.mxu2 %v1539_v1 }
 0xbd2   :  { %v993_v4 = vpop.f32.mrf.mxu3 }
 0xbd3   :  { %v1016_v6 = vadd.f32 %v993_v4, %v1723_v34  ;;  %v996_v48 = vadd.f32 %v993_v4, %v1725_v37 }
 0xbd5   :  { %1018 = vrot.lane.b32.xlu0 %v1016_v6, %s1542_s9  ;;  %v1419_v50 = vmul.f32 -1.442695, %v996_v48 }
 0xbe2   :  { %v928_v38 = vpop.f32.mrf.mxu2 }
 0xbe3   :  { %v951_v10 = vadd.f32 %v928_v38, %v1717_v29  ;;  %v931_v43 = vadd.f32 %v928_v38, %v140_v41 }
 0xbe5   :  { %953 = vrot.lane.b32.xlu2 %v951_v10, %s1542_s9  ;;  %v1417_v45 = vmul.f32 -1.442695, %v931_v43 }
 0xbe7   :  { %1496 = vpow2.f32 %v1417_v45 }
 0xbe8   :  { %1498 = vpow2.f32 %v1419_v50 }
 0xbed   :  { %v1497_v51 = vpop.eup %1496 }
 0xbee   :  { %v935_v52 = vadd.f32 1.0, %v1497_v51  ;;  %v1499_v53 = vpop.eup %1498 }
 0xbef   :  { %v1000_v54 = vadd.f32 1.0, %v1499_v53 }
 0xbf0   :  { %1500 = vrcp.f32 %v935_v52  ;;  %v947_v62 = vand.u32 2147483648, %v935_v52  ;;  %vm941_vm15 = vweird.f32 %v935_v52  ;;  %v945_v0 = vand.u32 2147483647, %v935_v52 }
 0xbf1   :  { %1502 = vrcp.f32 %v1000_v54  ;;  %v1012_v12 = vand.u32 2147483648, %v1000_v54  ;;  %vm1006_vm5 = vweird.f32 %v1000_v54  ;;  %v1010_v14 = vand.u32 2147483647, %v1000_v54 }
 0xbf2   :  { %v948_v3 = vor.u32 1.1754944e-38, %v947_v62  ;;  %vm946_vm3 = vcmp.eq.f32.partialorder %v945_v0, 8.507059e+37 }
 0xbf3   :  { %v1013_v17 = vor.u32 1.1754944e-38, %v1012_v12  ;;  %vm1011_vm7 = vcmp.eq.f32.partialorder %v1010_v14, 8.507059e+37 }
 0xbf6   :  { %v1501_v55 = vpop.eup %1500 }
 0xbf7   :  { %v937_v18 = vmul.f32 %v1501_v55, %v935_v52  ;;  %v1503_v58 = vpop.eup %1502  ;;  %vm942_vm14 = vweird.f32 %v1501_v55 }
 0xbf8   :  { %v1002_v60 = vmul.f32 %v1503_v58, %v1000_v54  ;;  %vm943_vm2 = vmor %vm941_vm15, %vm942_vm14  ;;  %vm1007_vm4 = vweird.f32 %v1503_v58 }
 0xbf9   :  { %v938_v57 = vsub.f32 1.0, %v937_v18  ;;  %vm1008_vm6 = vmor %vm1006_vm5, %vm1007_vm4 }
 0xbfa   :  { %v1003_v61 = vsub.f32 1.0, %v1002_v60 }
 0xbfb   :  { %v939_v59 = vmul.f32 %v1501_v55, %v938_v57 }
 0xbfc   :  { %v1004_v46 = vmul.f32 %v1503_v58, %v1003_v61 }
 0xbfd   :  { %v940_v47 = vadd.f32 %v1501_v55, %v939_v59 }
 0xbfe   :  { %v1005_v9 = vadd.f32 %v1503_v58, %v1004_v46 }
 0xbff   :  { %v944_v2 = vsel %vm943_vm2, %v1501_v55, %v940_v47 }
 0xc00   :  { %v949_v56 = vsel %vm946_vm3, %v948_v3, %v944_v2  ;;  %v1009_v44 = vsel %vm1008_vm6, %v1503_v58, %v1005_v9 }
 0xc01   :  { %v1014_v21 = vsel %vm1011_vm7, %v1013_v17, %v1009_v44  ;;  %v969_v8 = vmul.f32 %v949_v56, %v1926_v19 }
 0xc02   :  { %v1028_v40 = vsub.f32 1.0, %v1014_v21  ;;  %v1034_v32 = vmul.f32 %v1014_v21, %v1921_v42  ;;  %v74_v42 = vld [vmem:[%s2071_s0 + $0x30] sm:$0xff] }
 0xc03   :  { %1378 = vmatmul.msk.f32.gmra.mxu0 %vm82_vm1, %v74_v42 }
 0xc3f   :  { %v954_v7 = vpop.permute.xlu2 %953 }
 0xc40   :  { %v956_v49 = vmul.f32 %v954_v7, %v949_v56 }
 0xc42   :  { %958 = vrot.lane.b32.xlu1 %v956_v49, %s1542_s9 }
 0xc47   :  { %v1019_v20 = vpop.permute.xlu0 %1018 }
 0xc48   :  { %v1021_v63 = vmul.f32 %v1019_v20, %v1014_v21 }
 0xc4a   :  { %1023 = vrot.lane.b32.xlu2 %v1021_v63, %s1542_s9 }
 0xc80   :  { %v142_v10 = vpop.f32.mrf.mxu0 }
 0xca4   :  { %v1024_v22 = vpop.permute.xlu2 %1023 }
 0xca5   :  { %v1026_v5 = vadd.f32 %v1024_v22, %v1725_v37  ;;  %v963_v37 = vsub.f32 1.0, %v949_v56 }
 0xca7   :  { %1504 = vtanh.f32 %v1026_v5 }
 0xcad   :  { %v1505_v23 = vpop.eup %1504 }
 0xcae   :  { %1030 = vrot.lane.b32.xlu1 %v1505_v23, %s1544_s26 }
 0xcb4   :  { %v959_v24 = vpop.permute.xlu1 %958 }
 0xcb5   :  { %v961_v26 = vadd.f32 %v959_v24, %v140_v41  ;;  %v143_v41 = vadd.f32 %v2011_v39, %v142_v10 }
 0xcb7   :  { %1506 = vtanh.f32 %v961_v26 }
 0xcbd   :  { %v1507_v27 = vpop.eup %1506 }
 0xcbe   :  { %965 = vrot.lane.b32.xlu0 %v1507_v27, %s1544_s26 }
 0xd20   :  { %v1031_v30 = vpop.permute.xlu1 %1030 }
 0xd21   :  { %v1033_v33 = vmul.f32 %v1031_v30, %v1028_v40 }
 0xd23   :  { %v1980_v25 = vadd.f32 %v1034_v32, %v1033_v33 }
 0xd25   :  { %1102 = vrot.lane.b32.xlu0 %v1980_v25, %s1544_s26 }
 0xd30   :  { %v966_v15 = vpop.permute.xlu0 %965 }
 0xd31   :  { %v968_v11 = vmul.f32 %v966_v15, %v963_v37 }
 0xd33   :  { %v1985_v13 = vadd.f32 %v969_v8, %v968_v11  ;;  %v75_v11 = vld [vmem:[%s2071_s0 + $0x38] sm:$0xff] }
 0xd34   :  { %1379 = vmatmul.msk.f32.gmra.mxu0 %vm82_vm1, %v75_v11 }
 0xd35   :  { %1037 = vrot.lane.b32.xlu2 %v1985_v13, %s1544_s26 }
 0xd8f   :  { %v1038_v16 = vpop.permute.xlu2 %1037 }
 0xd90   :  { %1312 = vst.msk [vmem:[%s2075_s6 + $0x28] sm:$0xff] %vm65_vm0, %v1038_v16  ;;  %1420 = vmatmul.msk.f32.vlgmr.msra.gmra.mxu2 %vm65_vm0, %v1038_v16 }
 0xd97   :  { %v1103_v19 = vpop.permute.xlu0 %1102 }
 0xd98   :  { %1328 = vst.msk [vmem:[%s2074_s7 + $0x10] sm:$0xff] %vm65_vm0, %v1103_v19  ;;  %1422 = vmatmul.msk.f32.vlgmr.msra.gmra.mxu3 %vm65_vm0, %v1103_v19 }
 0xe13   :  { %v1058_v35 = vpop.f32.mrf.mxu2 }
 0xe14   :  { %v1081_v36 = vadd.f32 %v1058_v35, %v1717_v29  ;;  %v1061_v45 = vadd.f32 %v1058_v35, %v143_v41 }
 0xe16   :  { %1083 = vrot.lane.b32.xlu1 %v1081_v36, %s1542_s9  ;;  %v1421_v50 = vmul.f32 -1.442695, %v1061_v45 }
 0xe1b   :  { %v1123_v1 = vpop.f32.mrf.mxu3 }
 0xe1c   :  { %v1146_v4 = vadd.f32 %v1123_v1, %v1723_v34  ;;  %v1126_v6 = vadd.f32 %v1123_v1, %v1719_v31 }
 0xe1e   :  { %1148 = vrot.lane.b32.xlu2 %v1146_v4, %s1542_s9  ;;  %v1423_v38 = vmul.f32 -1.442695, %v1126_v6  ;;  %v145_v4 = vpop.f32.mrf.mxu0 }
 0xe1f   :  { %v146_v6 = vadd.f32 %v2011_v39, %v145_v4 }
 0xe20   :  { %1508 = vpow2.f32 %v1423_v38 }
 0xe26   :  { %v1509_v43 = vpop.eup %1508 }
 0xe27   :  { %v1130_v48 = vadd.f32 1.0, %v1509_v43 }
 0xe29   :  { %1510 = vrcp.f32 %v1130_v48  ;;  %v1142_v59 = vand.u32 2147483648, %v1130_v48  ;;  %vm1136_vm9 = vweird.f32 %v1130_v48  ;;  %v1140_v60 = vand.u32 2147483647, %v1130_v48 }
 0xe2a   :  { %1512 = vpow2.f32 %v1421_v50 }
 0xe2b   :  { %v1143_v62 = vor.u32 1.1754944e-38, %v1142_v59  ;;  %vm1141_vm11 = vcmp.eq.f32.partialorder %v1140_v60, 8.507059e+37 }
 0xe2f   :  { %v1511_v51 = vpop.eup %1510 }
 0xe30   :  { %v1513_v52 = vpop.eup %1512  ;;  %v1132_v53 = vmul.f32 %v1511_v51, %v1130_v48  ;;  %vm1137_vm8 = vweird.f32 %v1511_v51 }
 0xe31   :  { %v1065_v54 = vadd.f32 1.0, %v1513_v52  ;;  %vm1138_vm10 = vmor %vm1136_vm9, %vm1137_vm8 }
 0xe32   :  { %v1133_v55 = vsub.f32 1.0, %v1132_v53 }
 0xe33   :  { %1514 = vrcp.f32 %v1065_v54  ;;  %v1077_v49 = vand.u32 2147483648, %v1065_v54  ;;  %vm1071_vm13 = vweird.f32 %v1065_v54  ;;  %v1075_v9 = vand.u32 2147483647, %v1065_v54 }
 0xe34   :  { %v1134_v18 = vmul.f32 %v1511_v51, %v1133_v55 }
 0xe35   :  { %v1078_v14 = vor.u32 1.1754944e-38, %v1077_v49  ;;  %vm1076_vm15 = vcmp.eq.f32.partialorder %v1075_v9, 8.507059e+37 }
 0xe36   :  { %v1135_v57 = vadd.f32 %v1511_v51, %v1134_v18 }
 0xe38   :  { %v1139_v47 = vsel %vm1138_vm10, %v1511_v51, %v1135_v57 }
 0xe39   :  { %v1515_v58 = vpop.eup %1514  ;;  %v1144_v0 = vsel %vm1141_vm11, %v1143_v62, %v1139_v47 }
 0xe3a   :  { %v1067_v61 = vmul.f32 %v1515_v58, %v1065_v54  ;;  %vm1072_vm12 = vweird.f32 %v1515_v58  ;;  %v1164_v37 = vmul.f32 %v1144_v0, %v1980_v25 }
 0xe3b   :  { %vm1073_vm14 = vmor %vm1071_vm13, %vm1072_vm12 }
 0xe3c   :  { %v1068_v3 = vsub.f32 1.0, %v1067_v61 }
 0xe3e   :  { %v1069_v56 = vmul.f32 %v1515_v58, %v1068_v3 }
 0xe40   :  { %v1070_v7 = vadd.f32 %v1515_v58, %v1069_v56 }
 0xe42   :  { %v1074_v12 = vsel %vm1073_vm14, %v1515_v58, %v1070_v7 }
 0xe43   :  { %v1079_v17 = vsel %vm1076_vm15, %v1078_v14, %v1074_v12 }
 0xe44   :  { %v1093_v26 = vsub.f32 1.0, %v1079_v17  ;;  %v1099_v40 = vmul.f32 %v1079_v17, %v1985_v13 }
 0xe78   :  { %v1149_v2 = vpop.permute.xlu2 %1148 }
 0xe79   :  { %v1151_v46 = vmul.f32 %v1149_v2, %v1144_v0 }
 0xe7b   :  { %1153 = vrot.lane.b32.xlu1 %v1151_v46, %s1542_s9 }
 0xe88   :  { %v1084_v44 = vpop.permute.xlu1 %1083 }
 0xe89   :  { %v1086_v20 = vmul.f32 %v1084_v44, %v1079_v17 }
 0xe8b   :  { %1088 = vrot.lane.b32.xlu0 %v1086_v20, %s1542_s9 }
 0xeed   :  { %v1154_v21 = vpop.permute.xlu1 %1153 }
 0xeee   :  { %v1156_v63 = vadd.f32 %v1154_v21, %v1719_v31  ;;  %v1158_v31 = vsub.f32 1.0, %v1144_v0 }
 0xef0   :  { %1516 = vtanh.f32 %v1156_v63 }
 0xef6   :  { %v1517_v22 = vpop.eup %1516 }
 0xef7   :  { %1160 = vrot.lane.b32.xlu0 %v1517_v22, %s1544_s26 }
 0xefd   :  { %v1089_v5 = vpop.permute.xlu0 %1088 }
 0xefe   :  { %v1091_v23 = vadd.f32 %v1089_v5, %v143_v41 }
 0xf00   :  { %1518 = vtanh.f32 %v1091_v23 }
 0xf06   :  { %v1519_v24 = vpop.eup %1518 }
 0xf07   :  { %1095 = vrot.lane.b32.xlu2 %v1519_v24, %s1544_s26 }
 0xf61   :  { %v1096_v27 = vpop.permute.xlu2 %1095 }
 0xf62   :  { %v1098_v30 = vmul.f32 %v1096_v27, %v1093_v26 }
 0xf64   :  { %v2020_v32 = vadd.f32 %v1099_v40, %v1098_v30 }
 0xf66   :  { %1167 = vrot.lane.b32.xlu1 %v2020_v32, %s1544_s26 }
 0xf69   :  { %v1161_v33 = vpop.permute.xlu0 %1160 }
 0xf6a   :  { %v1163_v15 = vmul.f32 %v1161_v33, %v1158_v31 }
 0xf6c   :  { %v2025_v8 = vadd.f32 %v1164_v37, %v1163_v15 }
 0xf6e   :  { %1232 = vrot.lane.b32.xlu2 %v2025_v8, %s1544_s26 }
 0xfc8   :  { %v1233_v13 = vpop.permute.xlu2 %1232 }
 0xfc9   :  { %1327 = vst.msk [vmem:[%s2074_s7 + $0x8] sm:$0xff] %vm65_vm0, %v1233_v13  ;;  %1426 = vmatmul.msk.f32.vlgmr.msrb.gmra.mxu3 %vm65_vm0, %v1233_v13 }
 0xfd8   :  { %v1168_v25 = vpop.permute.xlu1 %1167 }
 0xfd9   :  { %1313 = vst.msk [vmem:[%s2075_s6 + $0x30] sm:$0xff] %vm65_vm0, %v1168_v25  ;;  %1424 = vmatmul.msk.f32.vlgmr.msrb.gmra.mxu2 %vm65_vm0, %v1168_v25 }
0x104c   :  { %v1253_v42 = vpop.f32.mrf.mxu3 }
0x104d   :  { %v1276_v16 = vadd.f32 %v1253_v42, %v1723_v34  ;;  %v1256_v36 = vadd.f32 %v1253_v42, %v1715_v28 }
0x104f   :  { %1278 = vrot.lane.b32.xlu1 %v1276_v16, %s1542_s9  ;;  %v1427_v1 = vmul.f32 -1.442695, %v1256_v36 }
0x1051   :  { %1520 = vpow2.f32 %v1427_v1 }
0x1057   :  { %v1521_v38 = vpop.eup %1520 }
0x1058   :  { %v1260_v41 = vadd.f32 1.0, %v1521_v38 }
0x105a   :  { %1522 = vrcp.f32 %v1260_v41  ;;  %v1272_v54 = vand.u32 2147483648, %v1260_v41  ;;  %vm1266_vm2 = vweird.f32 %v1260_v41  ;;  %v1270_v55 = vand.u32 2147483647, %v1260_v41 }
0x105c   :  { %v1188_v19 = vpop.f32.mrf.mxu2  ;;  %v1273_v57 = vor.u32 1.1754944e-38, %v1272_v54  ;;  %vm1271_vm4 = vcmp.eq.f32.partialorder %v1270_v55, 8.507059e+37 }
0x105d   :  { %v1211_v35 = vadd.f32 %v1188_v19, %v1717_v29  ;;  %v1191_v10 = vadd.f32 %v1188_v19, %v146_v6 }
0x105f   :  { %1213 = vrot.lane.b32.xlu0 %v1211_v35, %s1542_s9  ;;  %v1425_v43 = vmul.f32 -1.442695, %v1191_v10 }
0x1060   :  { %v1523_v34 = vpop.eup %1522 }
0x1061   :  { %1524 = vpow2.f32 %v1425_v43  ;;  %v1262_v48 = vmul.f32 %v1523_v34, %v1260_v41  ;;  %vm1267_vm1 = vweird.f32 %v1523_v34 }
0x1062   :  { %vm1268_vm3 = vmor %vm1266_vm2, %vm1267_vm1 }
0x1063   :  { %v1263_v29 = vsub.f32 1.0, %v1262_v48 }
0x1065   :  { %v1264_v51 = vmul.f32 %v1523_v34, %v1263_v29 }
0x1067   :  { %v1525_v45 = vpop.eup %1524  ;;  %v1265_v52 = vadd.f32 %v1523_v34, %v1264_v51 }
0x1068   :  { %v1195_v50 = vadd.f32 1.0, %v1525_v45 }
0x1069   :  { %v1269_v39 = vsel %vm1268_vm3, %v1523_v34, %v1265_v52 }
0x106a   :  { %1526 = vrcp.f32 %v1195_v50  ;;  %v1274_v59 = vsel %vm1271_vm4, %v1273_v57, %v1269_v39  ;;  %v1207_v0 = vand.u32 2147483648, %v1195_v50  ;;  %vm1201_vm6 = vweird.f32 %v1195_v50 }
0x106b   :  { %v1205_v2 = vand.u32 2147483647, %v1195_v50  ;;  %v1288_v21 = vsub.f32 1.0, %v1274_v59  ;;  %v1294_v22 = vmul.f32 %v1274_v59, %v2025_v8 }
0x106c   :  { %v1208_v3 = vor.u32 1.1754944e-38, %v1207_v0 }
0x106d   :  { %vm1206_vm8 = vcmp.eq.f32.partialorder %v1205_v2, 8.507059e+37 }
0x1070   :  { %v1527_v53 = vpop.eup %1526 }
0x1071   :  { %v1197_v18 = vmul.f32 %v1527_v53, %v1195_v50  ;;  %vm1202_vm5 = vweird.f32 %v1527_v53 }
0x1072   :  { %vm1203_vm7 = vmor %vm1201_vm6, %vm1202_vm5 }
0x1073   :  { %v1198_v47 = vsub.f32 1.0, %v1197_v18 }
0x1075   :  { %v1199_v61 = vmul.f32 %v1527_v53, %v1198_v47 }
0x1077   :  { %v1200_v62 = vadd.f32 %v1527_v53, %v1199_v61 }
0x1079   :  { %v1204_v46 = vsel %vm1203_vm7, %v1527_v53, %v1200_v62 }
0x107a   :  { %v1209_v7 = vsel %vm1206_vm8, %v1208_v3, %v1204_v46 }
0x107b   :  { %v1223_v24 = vsub.f32 1.0, %v1209_v7  ;;  %v1229_v27 = vmul.f32 %v1209_v7, %v2020_v32 }
0x10c1   :  { %v1279_v58 = vpop.permute.xlu1 %1278 }
0x10c2   :  { %v1281_v60 = vmul.f32 %v1279_v58, %v1274_v59 }
0x10c4   :  { %1283 = vrot.lane.b32.xlu0 %v1281_v60, %s1542_s9 }
0x10d1   :  { %v1214_v56 = vpop.permute.xlu0 %1213 }
0x10d2   :  { %v1216_v49 = vmul.f32 %v1214_v56, %v1209_v7 }
0x10d4   :  { %1218 = vrot.lane.b32.xlu2 %v1216_v49, %s1542_s9 }
0x112e   :  { %v1219_v9 = vpop.permute.xlu2 %1218 }
0x112f   :  { %v1221_v12 = vadd.f32 %v1219_v9, %v146_v6 }
0x1131   :  { %1528 = vtanh.f32 %v1221_v12 }
0x1136   :  { %v1284_v14 = vpop.permute.xlu0 %1283 }
0x1137   :  { %v1529_v44 = vpop.eup %1528  ;;  %v1286_v17 = vadd.f32 %v1284_v14, %v1715_v28 }
0x1138   :  { %1225 = vrot.lane.b32.xlu1 %v1529_v44, %s1544_s26 }
0x1139   :  { %1530 = vtanh.f32 %v1286_v17 }
0x113f   :  { %v1531_v20 = vpop.eup %1530 }
0x1140   :  { %1290 = vrot.lane.b32.xlu2 %v1531_v20, %s1544_s26 }
0x119a   :  { %v1291_v63 = vpop.permute.xlu2 %1290 }
0x119b   :  { %v1293_v5 = vmul.f32 %v1291_v63, %v1288_v21 }
0x119d   :  { %v1295_v23 = vadd.f32 %v1294_v22, %v1293_v5 }
0x119f   :  { %1316 = vrot.lane.b32.xlu1 %v1295_v23, %s1544_s26 }
0x11aa   :  { %v1226_v26 = vpop.permute.xlu1 %1225 }
0x11ab   :  { %v1228_v40 = vmul.f32 %v1226_v26, %v1223_v24 }
0x11ad   :  { %v1230_v28 = vadd.f32 %v1229_v27, %v1228_v40 }
0x11af   :  { %1297 = vrot.lane.b32.xlu0 %v1230_v28, %s1544_s26 }
0x1211   :  { %v1317_v30 = vpop.permute.xlu1 %1316 }
0x1212   :  { %1326 = vst.msk [vmem:[%s2074_s7] sm:$0xff] %vm65_vm0, %v1317_v30 }
0x1213   :  { %1335 = vst.msk [vmem:[#allocation3] sm:$0xff] %vm65_vm0, %v1317_v30 }
0x1221   :  { %v1298_v31 = vpop.permute.xlu0 %1297 }
0x1222   :  { %1314 = vst.msk [vmem:[%s2075_s6 + $0x38] sm:$0xff] %vm65_vm0, %v1298_v31 }
0x1223   :  { %1334 = vst.msk [vmem:[#allocation2] sm:$0xff] %vm65_vm0, %v1298_v31 }

// kernel: bgru_forward.3
= control target key start
LH: loop header
LB: loop body
LE: loop exit
PB: predicated region body
PF: predicated region fallthrough
CT: control target
= control target key end

     0   :  { %vm65_vm0 = vcmask 261120   ;;  %v1752_v35 = vmov 0.0   ;;  %s1753_s16 = smov 64   ;;  %s1754_s21 = smov 32   ;;  %s2391_s2 = inlined_call_operand.vmem [shape: f32[2,2,32,96], index: 2, kind: input, shape index: {}]   ;;  %s2392_s0 = inlined_call_operand.vmem [shape: f32[2,64,32], index: 0, kind: input, shape index: {}, may-alias: {0,1}]   ;;  %s2393_s3 = inlined_call_operand.vmem [shape: f32[2,32,96], index: 3, kind: input, shape index: {}]   ;;  %s2394_s5 = inlined_call_operand.vmem [shape: f32[2,1,32], index: 5, kind: input, shape index: {}]   ;;  %s2395_s4 = inlined_call_operand.vmem [shape: f32[2,1,96], index: 4, kind: input, shape index: {}]   ;;  %s2396_s1 = inlined_call_operand.vmem [shape: f32[2,64,32], index: 1, kind: input, shape index: {}, may-alias: {0,1}]   ;;  %s2397_s7 = inlined_call_operand.vmem [shape: f32[64,32], index: 7, kind: output, shape index: {1}]   ;;  %s2398_s6 = inlined_call_operand.vmem [shape: f32[64,32], index: 6, kind: output, shape index: {0}]  }
   0x1   :  { %v1560_v0 = vld [vmem:[%s2391_s2 + $0x38] sm:$0xff]  ;;  %v1559_v2 = vld [vmem:[%s2391_s2 + $0x30] sm:$0xff]  ;;  %v1558_v4 = vld [vmem:[%s2391_s2 + $0x28] sm:$0xff]  ;;  %66 = vst.msk [vmem:[#allocation2] sm:$0xff] %vm65_vm0, %v1752_v35  ;;  %s1755_s24 = smov 96  }
   0x2   :  { %v79_v1 = vld [vmem:[%s2391_s2 + $0x18] sm:$0xff]  ;;  %131 = vmatpush.msra.mxu0 %v1560_v0  ;;  %v78_v3 = vld [vmem:[%s2391_s2 + $0x10] sm:$0xff]  ;;  %v77_v5 = vld [vmem:[%s2391_s2 + $0x8] sm:$0xff]  ;;  %67 = vst.msk [vmem:[#allocation3] sm:$0xff] %vm65_vm0, %v1752_v35 }
   0x3   :  { %196 = vmatpush.msra.mxu1 %v79_v1  ;;  %v1557_v6 = vld [vmem:[%s2391_s2 + $0x20] sm:$0xff]  ;;  %v1829_v10 = vld [vmem:[%s2393_s3 + $0x18] sm:$0xff]  ;;  %v1842_v13 = vld [vmem:[%s2393_s3 + $0x10] sm:$0xff] }
   0x4   :  { %132 = vmatpush.msra.mxu0 %v1559_v2  ;;  %v76_v7 = vld [vmem:[%s2391_s2] sm:$0xff]  ;;  %v1592_v11 = vld [vmem:[%s2391_s2 + $0x78] sm:$0xff]  ;;  %v1591_v14 = vld [vmem:[%s2391_s2 + $0x70] sm:$0xff] }
   0x5   :  { %197 = vmatpush.msra.mxu1 %v78_v3  ;;  %v1549_v8 = vld [vmem:[%s2392_s0 + $0x40] sm:$0xff]  ;;  %v1580_v12 = vld [vmem:[%s2391_s2 + $0x58] sm:$0xff]  ;;  %300 = vmatpush.msra.mxu2 %v1592_v11  ;;  %v1579_v15 = vld [vmem:[%s2391_s2 + $0x50] sm:$0xff] }
   0x6   :  { %133 = vmatpush.msra.mxu0 %v1558_v4  ;;  %v68_v9 = vld [vmem:[%s2392_s0] sm:$0xff]  ;;  %v1590_v16 = vld [vmem:[%s2391_s2 + $0x68] sm:$0xff]  ;;  %365 = vmatpush.msra.mxu3 %v1580_v12  ;;  %v1551_v25 = vld [vmem:[%s2392_s0 + $0x50] sm:$0xff] }
   0x7   :  { %198 = vmatpush.msra.mxu1 %v77_v5  ;;  %v1578_v17 = vld [vmem:[%s2391_s2 + $0x48] sm:$0xff]  ;;  %301 = vmatpush.msra.mxu2 %v1591_v14  ;;  %v1589_v19 = vld [vmem:[%s2391_s2 + $0x60] sm:$0xff]  ;;  %v70_v26 = vld [vmem:[%s2392_s0 + $0x10] sm:$0xff] }
   0x8   :  { %134 = vmatpush.msra.mxu0 %v1557_v6  ;;  %v1860_v18 = vld [vmem:[%s2393_s3 + $0x8] sm:$0xff]  ;;  %366 = vmatpush.msra.mxu3 %v1579_v15  ;;  %v1577_v22 = vld [vmem:[%s2391_s2 + $0x40] sm:$0xff]  ;;  %v1911_v30 = vld [vmem:[%s2393_s3 + $0x38] sm:$0xff] }
   0x9   :  { %199 = vmatpush.msra.mxu1 %v76_v7  ;;  %1561 = vmatmul.msk.f32.vlgmr.msra.gmra.mxu0 %vm65_vm0, %v1549_v8  ;;  %v1550_v20 = vld [vmem:[%s2392_s0 + $0x48] sm:$0xff]  ;;  %v1581_v23 = vld [vmem:[%s2396_s1 + $0x40] sm:$0xff]  ;;  %v1552_v31 = vld [vmem:[%s2392_s0 + $0x58] sm:$0xff] }
   0xa   :  { %1569 = vmatmul.msk.f32.vlgmr.msra.gmra.mxu1 %vm65_vm0, %v68_v9  ;;  %436 = vmatpush.msrb.mxu0 %v1829_v10  ;;  %v69_v21 = vld [vmem:[%s2392_s0 + $0x8] sm:$0xff]  ;;  %v237_v24 = vld [vmem:[%s2396_s1] sm:$0xff]  ;;  %v71_v32 = vld [vmem:[%s2392_s0 + $0x18] sm:$0xff] }
   0xb   :  { %302 = vmatpush.msra.mxu2 %v1590_v16  ;;  %367 = vmatpush.msra.mxu3 %v1578_v17  ;;  %v1582_v27 = vld [vmem:[%s2396_s1 + $0x48] sm:$0xff]  ;;  %v1906_v29 = vld [vmem:[%s2393_s3] sm:$0xff]  ;;  %v1583_v33 = vld [vmem:[%s2396_s1 + $0x50] sm:$0xff] }
   0xc   :  { %437 = vmatpush.msrb.mxu0 %v1842_v13  ;;  %v238_v28 = vld [vmem:[%s2396_s1 + $0x8] sm:$0xff]  ;;  %507 = vmatpush.msrb.mxu1 %v1911_v30  ;;  %v239_v34 = vld [vmem:[%s2396_s1 + $0x10] sm:$0xff]  ;;  %v1553_v36 = vld [vmem:[%s2392_s0 + $0x60] sm:$0xff] }
   0xd   :  { %303 = vmatpush.msra.mxu2 %v1589_v19  ;;  %368 = vmatpush.msra.mxu3 %v1577_v22  ;;  %v72_v37 = vld [vmem:[%s2392_s0 + $0x20] sm:$0xff]  ;;  %v1584_v38 = vld [vmem:[%s2396_s1 + $0x58] sm:$0xff]  ;;  %v1962_v40 = vld [vmem:[%s2393_s3 + $0x30] sm:$0xff] }
   0xe   :  { %438 = vmatpush.msrb.mxu0 %v1860_v18  ;;  %1593 = vmatmul.msk.f32.vlgmr.msra.gmra.mxu2 %vm65_vm0, %v1581_v23  ;;  %v240_v39 = vld [vmem:[%s2396_s1 + $0x18] sm:$0xff]  ;;  %v1969_v41 = vld [vmem:[%s2393_s3 + $0x28] sm:$0xff]  ;;  %v1975_v42 = vld [vmem:[%s2393_s3 + $0x20] sm:$0xff] }
   0xf   :  { %1601 = vmatmul.msk.f32.vlgmr.msra.gmra.mxu3 %vm65_vm0, %v237_v24  ;;  %580 = vmatpush.msrb.mxu2 %v1829_v10  ;;  %v1651_v43 = vld [vmem:[%s2394_s5] ss:$0 sm:$0xff]  ;;  %v1554_v44 = vld [vmem:[%s2392_s0 + $0x68] sm:$0xff]  ;;  %v1652_v48 = vld [vmem:[%s2394_s5 + $0x1] ss:$0 sm:$0xff] }
  0x10   :  { %439 = vmatpush.msrb.mxu0 %v1906_v29  ;;  %645 = vmatpush.msrb.mxu3 %v1911_v30  ;;  %v73_v45 = vld [vmem:[%s2392_s0 + $0x28] sm:$0xff]  ;;  %v1585_v46 = vld [vmem:[%s2396_s1 + $0x60] sm:$0xff]  ;;  %v1555_v49 = vld [vmem:[%s2392_s0 + $0x70] sm:$0xff] }
  0x11   :  { %1562 = vmatmul.msk.f32.gmra.mxu0 %vm65_vm0, %v1550_v20  ;;  %581 = vmatpush.msrb.mxu2 %v1842_v13  ;;  %v241_v47 = vld [vmem:[%s2396_s1 + $0x20] sm:$0xff]  ;;  %v74_v50 = vld [vmem:[%s2392_s0 + $0x30] sm:$0xff]  ;;  %v1586_v51 = vld [vmem:[%s2396_s1 + $0x68] sm:$0xff] }
  0x12   :  { %1570 = vmatmul.msk.f32.gmra.mxu1 %vm65_vm0, %v69_v21  ;;  %710 = vmatpush.msra.mxu0 %v1829_v10  ;;  %v242_v52 = vld [vmem:[%s2396_s1 + $0x28] sm:$0xff]  ;;  %v1556_v53 = vld [vmem:[%s2392_s0 + $0x78] sm:$0xff]  ;;  %v1587_v55 = vld [vmem:[%s2396_s1 + $0x70] sm:$0xff] }
  0x13   :  { %582 = vmatpush.msrb.mxu2 %v1860_v18  ;;  %508 = vmatpush.msrb.mxu1 %v1962_v40  ;;  %v75_v54 = vld [vmem:[%s2392_s0 + $0x38] sm:$0xff]  ;;  %v243_v56 = vld [vmem:[%s2396_s1 + $0x30] sm:$0xff]  ;;  %v2046_v57 = vld [vmem:[#allocation2] sm:$0xff] }
  0x14   :  { %711 = vmatpush.msra.mxu0 %v1842_v13  ;;  %646 = vmatpush.msrb.mxu3 %v1962_v40  ;;  %v2048_v58 = vld [vmem:[#allocation3] sm:$0xff]  ;;  %v1588_v59 = vld [vmem:[%s2396_s1 + $0x78] sm:$0xff]  ;;  %v1653_v2 = vld [vmem:[%s2395_s4] ss:$0 sm:$0xff] }
  0x15   :  { %583 = vmatpush.msrb.mxu2 %v1906_v29  ;;  %509 = vmatpush.msrb.mxu1 %v1969_v41  ;;  %v244_v60 = vld [vmem:[%s2396_s1 + $0x38] sm:$0xff] }
  0x16   :  { %1594 = vmatmul.msk.f32.gmra.mxu2 %vm65_vm0, %v1582_v27  ;;  %712 = vmatpush.msra.mxu0 %v1860_v18 }
  0x17   :  { %1602 = vmatmul.msk.f32.gmra.mxu3 %vm65_vm0, %v238_v28  ;;  %840 = vmatpush.msra.mxu2 %v1829_v10 }
  0x18   :  { %713 = vmatpush.msra.mxu0 %v1906_v29  ;;  %466 = vrot.lane.b32.xlu0 %v1651_v43, %s1753_s16 }
  0x19   :  { %1563 = vmatmul.msk.f32.gmra.mxu0 %vm65_vm0, %v1551_v25  ;;  %841 = vmatpush.msra.mxu2 %v1842_v13 }
  0x1a   :  { %1571 = vmatmul.msk.f32.gmra.mxu1 %vm65_vm0, %v70_v26  ;;  %647 = vmatpush.msrb.mxu3 %v1969_v41 }
  0x1b   :  { %842 = vmatpush.msra.mxu2 %v1860_v18  ;;  %510 = vmatpush.msrb.mxu1 %v1975_v42 }
  0x1c   :  { %648 = vmatpush.msrb.mxu3 %v1975_v42 }
  0x1d   :  { %843 = vmatpush.msra.mxu2 %v1906_v29  ;;  %775 = vmatpush.msra.mxu1 %v1911_v30 }
  0x1e   :  { %1595 = vmatmul.msk.f32.gmra.mxu2 %vm65_vm0, %v1583_v33  ;;  %905 = vmatpush.msra.mxu3 %v1911_v30 }
  0x1f   :  { %1603 = vmatmul.msk.f32.gmra.mxu3 %vm65_vm0, %v239_v34  ;;  %776 = vmatpush.msra.mxu1 %v1962_v40 }
  0x20   :  { %537 = vrot.lane.b32.xlu0 %v1652_v48, %s1753_s16  ;;  %906 = vmatpush.msra.mxu3 %v1962_v40 }
  0x21   :  { %1564 = vmatmul.msk.f32.gmra.mxu0 %vm65_vm0, %v1552_v31  ;;  %777 = vmatpush.msra.mxu1 %v1969_v41 }
  0x22   :  { %1572 = vmatmul.msk.f32.gmra.mxu1 %vm65_vm0, %v71_v32  ;;  %907 = vmatpush.msra.mxu3 %v1969_v41 }
  0x23   :  { %778 = vmatpush.msra.mxu1 %v1975_v42 }
  0x24   :  { %908 = vmatpush.msra.mxu3 %v1975_v42 }
  0x26   :  { %1596 = vmatmul.msk.f32.gmra.mxu2 %vm65_vm0, %v1584_v38 }
  0x27   :  { %1604 = vmatmul.msk.f32.gmra.mxu3 %vm65_vm0, %v240_v39 }
  0x29   :  { %1565 = vmatmul.msk.f32.gmra.mxu0 %vm65_vm0, %v1553_v36 }
  0x2a   :  { %1573 = vmatmul.msk.f32.gmra.mxu1 %vm65_vm0, %v72_v37 }
  0x2e   :  { %1597 = vmatmul.msk.f32.gmra.mxu2 %vm65_vm0, %v1585_v46 }
  0x2f   :  { %1605 = vmatmul.msk.f32.gmra.mxu3 %vm65_vm0, %v241_v47 }
  0x31   :  { %1566 = vmatmul.msk.f32.gmra.mxu0 %vm65_vm0, %v1554_v44 }
  0x32   :  { %1574 = vmatmul.msk.f32.gmra.mxu1 %vm65_vm0, %v73_v45 }
  0x36   :  { %1598 = vmatmul.msk.f32.gmra.mxu2 %vm65_vm0, %v1586_v51 }
  0x37   :  { %1606 = vmatmul.msk.f32.gmra.mxu3 %vm65_vm0, %v242_v52 }
  0x39   :  { %1567 = vmatmul.msk.f32.gmra.mxu0 %vm65_vm0, %v1555_v49 }
  0x3a   :  { %1575 = vmatmul.msk.f32.gmra.mxu1 %vm65_vm0, %v74_v50 }
  0x3e   :  { %1599 = vmatmul.msk.f32.gmra.mxu2 %vm65_vm0, %v1587_v55 }
  0x3f   :  { %1607 = vmatmul.msk.f32.gmra.mxu3 %vm65_vm0, %v243_v56 }
  0x41   :  { %1568 = vmatmul.msk.f32.gmra.mxu0 %vm65_vm0, %v1556_v53 }
  0x42   :  { %1576 = vmatmul.msk.f32.gmra.mxu1 %vm65_vm0, %v75_v54 }
  0x46   :  { %1600 = vmatmul.msk.f32.gmra.mxu2 %vm65_vm0, %v1588_v59 }
  0x47   :  { %1608 = vmatmul.msk.f32.gmra.mxu3 %vm65_vm0, %v244_v60 }
  0x49   :  { %1615 = vmatmul.msk.f32.vlgmr.msrb.gmra.mxu0 %vm65_vm0, %v2046_v57 }
  0x4a   :  { %1617 = vmatmul.msk.f32.vlgmr.msrb.gmra.mxu1 %vm65_vm0, %v2048_v58  ;;  %970 = vmatpush.msrb.mxu0 %v1829_v10 }
  0x4b   :  { %1035 = vmatpush.msrb.mxu1 %v1911_v30 }
  0x4c   :  { %971 = vmatpush.msrb.mxu0 %v1842_v13 }
  0x4d   :  { %1036 = vmatpush.msrb.mxu1 %v1962_v40 }
  0x4e   :  { %972 = vmatpush.msrb.mxu0 %v1860_v18 }
  0x4f   :  { %1037 = vmatpush.msrb.mxu1 %v1969_v41 }
  0x50   :  { %973 = vmatpush.msrb.mxu0 %v1906_v29 }
  0x51   :  { %1038 = vmatpush.msrb.mxu1 %v1975_v42 }
  0x86   :  { %v136_v61 = vpop.f32.mrf.mxu0 }
  0x87   :  { %v201_v62 = vpop.f32.mrf.mxu1 }
  0x88   :  { %v2070_v63 = vadd.f32 %v201_v62, %v136_v61 }
  0x8a   :  { %v2097_v53 = vpop.permute.xlu0 %466 }
  0x8e   :  { %v139_v0 = vpop.f32.mrf.mxu0 }
  0x8f   :  { %v204_v1 = vpop.f32.mrf.mxu1 }
  0x90   :  { %v205_v3 = vadd.f32 %v204_v1, %v139_v0 }
  0x91   :  { %v305_v5 = vpop.f32.mrf.mxu2 }
  0x92   :  { %v2075_v4 = vadd.f32 %v1653_v2, %v205_v3  ;;  %v370_v9 = vpop.f32.mrf.mxu3  ;;  %v2107_v0 = vpop.permute.xlu0 %537 }
  0x93   :  { %v2077_v11 = vadd.f32 %v370_v9, %v305_v5 }
  0x96   :  { %v142_v6 = vpop.f32.mrf.mxu0 }
  0x97   :  { %v207_v7 = vpop.f32.mrf.mxu1 }
  0x98   :  { %v208_v8 = vadd.f32 %v207_v7, %v142_v6  ;;  %v229_v7 = vadd.f32 %v1653_v2, %v2070_v63 }
  0x99   :  { %v308_v14 = vpop.f32.mrf.mxu2 }
  0x9a   :  { %v2079_v12 = vadd.f32 %v1653_v2, %v208_v8  ;;  %v373_v19 = vpop.f32.mrf.mxu3  ;;  %v2117_v8 = vld [vmem:[%s2395_s4 + $0x1] ss:$0 sm:$0xff] }
  0x9b   :  { %v2081_v20 = vadd.f32 %v373_v19, %v308_v14 }
  0x9e   :  { %v145_v15 = vpop.f32.mrf.mxu0 }
  0x9f   :  { %v210_v16 = vpop.f32.mrf.mxu1 }
  0xa0   :  { %v211_v17 = vadd.f32 %v210_v16, %v145_v15 }
  0xa1   :  { %v311_v22 = vpop.f32.mrf.mxu2 }
  0xa2   :  { %v2083_v21 = vadd.f32 %v1653_v2, %v211_v17  ;;  %v376_v26 = vpop.f32.mrf.mxu3 }
  0xa3   :  { %v2085_v27 = vadd.f32 %v376_v26, %v311_v22 }
  0xa6   :  { %v148_v23 = vpop.f32.mrf.mxu0 }
  0xa7   :  { %v213_v24 = vpop.f32.mrf.mxu1 }
  0xa8   :  { %v214_v25 = vadd.f32 %v213_v24, %v148_v23 }
  0xa9   :  { %v314_v31 = vpop.f32.mrf.mxu2 }
  0xaa   :  { %v2087_v28 = vadd.f32 %v1653_v2, %v214_v25  ;;  %v379_v35 = vpop.f32.mrf.mxu3 }
  0xab   :  { %v2089_v36 = vadd.f32 %v379_v35, %v314_v31 }
  0xae   :  { %v151_v32 = vpop.f32.mrf.mxu0 }
  0xaf   :  { %v216_v33 = vpop.f32.mrf.mxu1 }
  0xb0   :  { %v217_v34 = vadd.f32 %v216_v33, %v151_v32 }
  0xb1   :  { %v317_v38 = vpop.f32.mrf.mxu2 }
  0xb2   :  { %v2091_v37 = vadd.f32 %v1653_v2, %v217_v34  ;;  %v382_v45 = vpop.f32.mrf.mxu3 }
  0xb3   :  { %v2093_v46 = vadd.f32 %v382_v45, %v317_v38 }
  0xb6   :  { %v154_v39 = vpop.f32.mrf.mxu0 }
  0xb7   :  { %v219_v43 = vpop.f32.mrf.mxu1 }
  0xb8   :  { %v220_v44 = vadd.f32 %v219_v43, %v154_v39 }
  0xb9   :  { %v320_v48 = vpop.f32.mrf.mxu2 }
  0xba   :  { %v2095_v47 = vadd.f32 %v1653_v2, %v220_v44  ;;  %v385_v52 = vpop.f32.mrf.mxu3 }
  0xbb   :  { %v2099_v54 = vadd.f32 %v385_v52, %v320_v48 }
  0xbe   :  { %v157_v49 = vpop.f32.mrf.mxu0 }
  0xbf   :  { %v222_v50 = vpop.f32.mrf.mxu1 }
  0xc0   :  { %v223_v51 = vadd.f32 %v222_v50, %v157_v49 }
  0xc1   :  { %v323_v60 = vpop.f32.mrf.mxu2 }
  0xc2   :  { %v2101_v55 = vadd.f32 %v1653_v2, %v223_v51  ;;  %v388_v61 = vpop.f32.mrf.mxu3 }
  0xc3   :  { %v2104_v62 = vadd.f32 %v388_v61, %v323_v60 }
  0xc6   :  { %v441_v56 = vpop.f32.mrf.mxu0 }
  0xc7   :  { %v469_v59 = vadd.f32 %v2097_v53, %v441_v56  ;;  %v512_v1 = vpop.f32.mrf.mxu1  ;;  %v444_v9 = vadd.f32 %v441_v56, %v229_v7 }
  0xc8   :  { %v540_v3 = vadd.f32 %v2107_v0, %v512_v1 }
  0xc9   :  { %471 = vrot.lane.b32.xlu1 %v469_v59, %s1753_s16  ;;  %v326_v5 = vpop.f32.mrf.mxu2  ;;  %v1616_v15 = vmul.f32 -1.442695, %v444_v9 }
  0xca   :  { %v391_v6 = vpop.f32.mrf.mxu3 }
  0xcb   :  { %v392_v14 = vadd.f32 %v391_v6, %v326_v5  ;;  %1655 = vpow2.f32 %v1616_v15 }
  0xcd   :  { %v406_v16 = vadd.f32 %v2117_v8, %v392_v14 }
  0xcf   :  { %v515_v17 = vadd.f32 %v512_v1, %v406_v16 }
  0xd1   :  { %542 = vrot.lane.b32.xlu1 %v540_v3, %s1753_s16  ;;  %v1618_v19 = vmul.f32 -1.442695, %v515_v17  ;;  %v1656_v22 = vpop.eup %1655 }
  0xd3   :  { %1657 = vpow2.f32 %v1618_v19 }
  0xd9   :  { %487 = vrot.lane.b32.xlu1 %v2046_v57, %s1754_s21  ;;  %v448_v57 = vadd.f32 1.0, %v1656_v22  ;;  %v1658_v23 = vpop.eup %1657 }
  0xda   :  { %v519_v24 = vadd.f32 1.0, %v1658_v23 }
  0xdb   :  { %1659 = vrcp.f32 %v448_v57  ;;  %v460_v35 = vand.u32 2147483648, %v448_v57  ;;  %vm454_vm2 = vweird.f32 %v448_v57  ;;  %v458_v38 = vand.u32 2147483647, %v448_v57 }
  0xdc   :  { %1661 = vrcp.f32 %v519_v24  ;;  %vm525_vm5 = vweird.f32 %v519_v24  ;;  %v531_v49 = vand.u32 2147483648, %v519_v24  ;;  %v529_v52 = vand.u32 2147483647, %v519_v24 }
  0xdd   :  { %v461_v44 = vor.u32 1.1754944e-38, %v460_v35  ;;  %vm459_vm4 = vcmp.eq.f32.partialorder %v458_v38, 8.507059e+37  ;;  %v405_v38 = vadd.f32 %v2117_v8, %v2104_v62 }
  0xde   :  { %v532_v56 = vor.u32 1.1754944e-38, %v531_v49  ;;  %vm530_vm8 = vcmp.eq.f32.partialorder %v529_v52, 8.507059e+37 }
  0xe1   :  { %v1660_v63 = vpop.eup %1659 }
  0xe2   :  { %v450_v2 = vmul.f32 %v1660_v63, %v448_v57  ;;  %v1662_v26 = vpop.eup %1661  ;;  %vm455_vm1 = vweird.f32 %v1660_v63 }
  0xe3   :  { %v521_v32 = vmul.f32 %v1662_v26, %v519_v24  ;;  %vm456_vm3 = vmor %vm454_vm2, %vm455_vm1  ;;  %vm526_vm6 = vweird.f32 %v1662_v26 }
  0xe4   :  { %v451_v25 = vsub.f32 1.0, %v450_v2  ;;  %vm527_vm7 = vmor %vm525_vm5, %vm526_vm6 }
  0xe5   :  { %v522_v34 = vsub.f32 1.0, %v521_v32 }
  0xe6   :  { %v452_v31 = vmul.f32 %v1660_v63, %v451_v25 }
  0xe7   :  { %v523_v43 = vmul.f32 %v1662_v26, %v522_v34 }
  0xe8   :  { %v453_v33 = vadd.f32 %v1660_v63, %v452_v31 }
  0xe9   :  { %v524_v51 = vadd.f32 %v1662_v26, %v523_v43 }
  0xea   :  { %v457_v39 = vsel %vm456_vm3, %v1660_v63, %v453_v33 }
  0xeb   :  { %v462_v48 = vsel %vm459_vm4, %v461_v44, %v457_v39  ;;  %v528_v59 = vsel %vm527_vm7, %v1662_v26, %v524_v51 }
  0xec   :  { %v533_v61 = vsel %vm530_vm8, %v532_v56, %v528_v59  ;;  %v481_v19 = vsub.f32 1.0, %v462_v48 }
  0xed   :  { %v552_v24 = vsub.f32 1.0, %v533_v61 }
 0x13b   :  { %v472_v45 = vpop.permute.xlu1 %471 }
 0x13c   :  { %v474_v50 = vmul.f32 %v472_v45, %v462_v48 }
 0x13e   :  { %476 = vrot.lane.b32.xlu2 %v474_v50, %s1753_s16 }
 0x143   :  { %v543_v60 = vpop.permute.xlu1 %542 }
 0x144   :  { %v545_v1 = vmul.f32 %v543_v60, %v533_v61 }
 0x146   :  { %547 = vrot.lane.b32.xlu2 %v545_v1, %s1753_s16 }
 0x14b   :  { %v488_v17 = vpop.permute.xlu1 %487 }
 0x14c   :  { %v490_v57 = vmul.f32 %v488_v17, %v462_v48 }
 0x198   :  { %v477_v3 = vpop.permute.xlu2 %476 }
 0x199   :  { %v479_v5 = vadd.f32 %v477_v3, %v229_v7 }
 0x19b   :  { %1663 = vtanh.f32 %v479_v5 }
 0x1a0   :  { %v548_v6 = vpop.permute.xlu2 %547 }
 0x1a1   :  { %v1664_v9 = vpop.eup %1663  ;;  %v550_v14 = vadd.f32 %v548_v6, %v406_v16 }
 0x1a2   :  { %483 = vrot.lane.b32.xlu0 %v1664_v9, %s1755_s24 }
 0x1a3   :  { %1665 = vtanh.f32 %v550_v14 }
 0x1a9   :  { %v1666_v15 = vpop.eup %1665 }
 0x1aa   :  { %558 = vrot.lane.b32.xlu0 %v2048_v58, %s1754_s21  ;;  %554 = vrot.lane.b32.xlu2 %v1666_v15, %s1755_s24 }
 0x204   :  { %v555_v16 = vpop.permute.xlu2 %554 }
 0x205   :  { %v557_v2 = vmul.f32 %v555_v16, %v552_v24 }
 0x214   :  { %v484_v22 = vpop.permute.xlu0 %483 }
 0x215   :  { %v486_v23 = vmul.f32 %v484_v22, %v481_v19 }
 0x217   :  { %v2126_v7 = vadd.f32 %v490_v57, %v486_v23 }
 0x219   :  { %564 = vrot.lane.b32.xlu1 %v2126_v7, %s1755_s24 }
 0x21c   :  { %v559_v63 = vpop.permute.xlu0 %558 }
 0x21d   :  { %v561_v25 = vmul.f32 %v559_v63, %v533_v61 }
 0x21f   :  { %v2130_v26 = vadd.f32 %v561_v25, %v557_v2 }
 0x221   :  { %629 = vrot.lane.b32.xlu2 %v2130_v26, %s1755_s24 }
 0x27b   :  { %v630_v58 = vpop.permute.xlu2 %629 }
 0x27c   :  { %1510 = vst.msk [vmem:[%s2397_s7 + $0x38] sm:$0xff] %vm65_vm0, %v630_v58  ;;  %1621 = vmatmul.msk.f32.vlgmr.msrb.gmra.mxu3 %vm65_vm0, %v630_v58 }
 0x27d   :  { %1165 = vmatpush.msrb.mxu3 %v1911_v30 }
 0x27f   :  { %1166 = vmatpush.msrb.mxu3 %v1962_v40 }
 0x281   :  { %1167 = vmatpush.msrb.mxu3 %v1969_v41 }
 0x283   :  { %1168 = vmatpush.msrb.mxu3 %v1975_v42 }
 0x28b   :  { %v565_v31 = vpop.permute.xlu1 %564 }
 0x28c   :  { %1484 = vst.msk [vmem:[%s2398_s6] sm:$0xff] %vm65_vm0, %v565_v31  ;;  %1619 = vmatmul.msk.f32.vlgmr.msrb.gmra.mxu2 %vm65_vm0, %v565_v31 }
 0x28d   :  { %1100 = vmatpush.msrb.mxu2 %v1829_v10 }
 0x28f   :  { %1101 = vmatpush.msrb.mxu2 %v1842_v13 }
 0x291   :  { %1102 = vmatpush.msrb.mxu2 %v1860_v18 }
 0x293   :  { %1103 = vmatpush.msrb.mxu2 %v1906_v29 }
 0x2ff   :  { %v650_v32 = vpop.f32.mrf.mxu3 }
 0x300   :  { %v673_v33 = vadd.f32 %v650_v32, %v2107_v0  ;;  %v653_v39 = vadd.f32 %v650_v32, %v405_v38 }
 0x302   :  { %675 = vrot.lane.b32.xlu1 %v673_v33, %s1753_s16  ;;  %v1622_v43 = vmul.f32 -1.442695, %v653_v39 }
 0x304   :  { %1667 = vpow2.f32 %v1622_v43 }
 0x30a   :  { %v1668_v44 = vpop.eup %1667 }
 0x30b   :  { %v657_v48 = vadd.f32 1.0, %v1668_v44 }
 0x30d   :  { %1669 = vrcp.f32 %v657_v48  ;;  %v669_v1 = vand.u32 2147483648, %v657_v48  ;;  %vm663_vm10 = vweird.f32 %v657_v48  ;;  %v667_v3 = vand.u32 2147483647, %v657_v48 }
 0x30f   :  { %v585_v34 = vpop.f32.mrf.mxu2  ;;  %v670_v9 = vor.u32 1.1754944e-38, %v669_v1  ;;  %vm668_vm12 = vcmp.eq.f32.partialorder %v667_v3, 8.507059e+37  ;;  %v404_v3 = vadd.f32 %v2117_v8, %v2099_v54 }
 0x310   :  { %v608_v35 = vadd.f32 %v585_v34, %v2097_v53  ;;  %v588_v45 = vadd.f32 %v585_v34, %v2075_v4 }
 0x312   :  { %610 = vrot.lane.b32.xlu0 %v608_v35, %s1753_s16  ;;  %v1620_v49 = vmul.f32 -1.442695, %v588_v45 }
 0x313   :  { %v1670_v50 = vpop.eup %1669 }
 0x314   :  { %1671 = vpow2.f32 %v1620_v49  ;;  %v659_v52 = vmul.f32 %v1670_v50, %v657_v48  ;;  %vm664_vm9 = vweird.f32 %v1670_v50 }
 0x315   :  { %vm665_vm11 = vmor %vm663_vm10, %vm664_vm9 }
 0x316   :  { %v660_v59 = vsub.f32 1.0, %v659_v52 }
 0x318   :  { %v661_v60 = vmul.f32 %v1670_v50, %v660_v59 }
 0x31a   :  { %v1672_v51 = vpop.eup %1671  ;;  %v662_v61 = vadd.f32 %v1670_v50, %v661_v60 }
 0x31b   :  { %v592_v56 = vadd.f32 1.0, %v1672_v51 }
 0x31c   :  { %v666_v5 = vsel %vm665_vm11, %v1670_v50, %v662_v61 }
 0x31d   :  { %1673 = vrcp.f32 %v592_v56  ;;  %v671_v15 = vsel %vm668_vm12, %v670_v9, %v666_v5  ;;  %v604_v23 = vand.u32 2147483648, %v592_v56  ;;  %vm598_vm14 = vweird.f32 %v592_v56 }
 0x31e   :  { %v602_v16 = vand.u32 2147483647, %v592_v56  ;;  %v685_v43 = vsub.f32 1.0, %v671_v15  ;;  %v691_v45 = vmul.f32 %v671_v15, %v2130_v26 }
 0x31f   :  { %v605_v63 = vor.u32 1.1754944e-38, %v604_v23 }
 0x320   :  { %vm603_vm1 = vcmp.eq.f32.partialorder %v602_v16, 8.507059e+37 }
 0x323   :  { %v1674_v62 = vpop.eup %1673 }
 0x324   :  { %v594_v6 = vmul.f32 %v1674_v62, %v592_v56  ;;  %vm599_vm13 = vweird.f32 %v1674_v62 }
 0x325   :  { %vm600_vm15 = vmor %vm598_vm14, %vm599_vm13 }
 0x326   :  { %v595_v19 = vsub.f32 1.0, %v594_v6 }
 0x328   :  { %v596_v22 = vmul.f32 %v1674_v62, %v595_v19 }
 0x32a   :  { %v597_v57 = vadd.f32 %v1674_v62, %v596_v22 }
 0x32c   :  { %v601_v24 = vsel %vm600_vm15, %v1674_v62, %v597_v57 }
 0x32d   :  { %v606_v2 = vsel %vm603_vm1, %v605_v63, %v601_v24 }
 0x374   :  { %v676_v14 = vpop.permute.xlu1 %675 }
 0x375   :  { %v678_v17 = vmul.f32 %v676_v14, %v671_v15 }
 0x377   :  { %680 = vrot.lane.b32.xlu0 %v678_v17, %s1753_s16 }
 0x384   :  { %v611_v25 = vpop.permute.xlu0 %610 }
 0x385   :  { %v613_v58 = vmul.f32 %v611_v25, %v606_v2 }
 0x387   :  { %615 = vrot.lane.b32.xlu2 %v613_v58, %s1753_s16 }
 0x3e1   :  { %v616_v31 = vpop.permute.xlu2 %615 }
 0x3e2   :  { %v618_v32 = vadd.f32 %v616_v31, %v2075_v4  ;;  %v620_v4 = vsub.f32 1.0, %v606_v2 }
 0x3e4   :  { %1675 = vtanh.f32 %v618_v32 }
 0x3e9   :  { %v681_v33 = vpop.permute.xlu0 %680 }
 0x3ea   :  { %v1676_v34 = vpop.eup %1675  ;;  %v683_v35 = vadd.f32 %v681_v33, %v405_v38  ;;  %v626_v38 = vmul.f32 %v606_v2, %v2126_v7 }
 0x3eb   :  { %622 = vrot.lane.b32.xlu1 %v1676_v34, %s1755_s24 }
 0x3ec   :  { %1677 = vtanh.f32 %v683_v35 }
 0x3f2   :  { %v1678_v39 = vpop.eup %1677 }
 0x3f3   :  { %687 = vrot.lane.b32.xlu2 %v1678_v39, %s1755_s24 }
 0x44d   :  { %v688_v44 = vpop.permute.xlu2 %687 }
 0x44e   :  { %v690_v48 = vmul.f32 %v688_v44, %v685_v43 }
 0x450   :  { %v2165_v49 = vadd.f32 %v691_v45, %v690_v48 }
 0x452   :  { %759 = vrot.lane.b32.xlu1 %v2165_v49, %s1755_s24 }
 0x45d   :  { %v623_v50 = vpop.permute.xlu1 %622 }
 0x45e   :  { %v625_v51 = vmul.f32 %v623_v50, %v620_v4 }
 0x460   :  { %v2170_v52 = vadd.f32 %v626_v38, %v625_v51 }
 0x462   :  { %694 = vrot.lane.b32.xlu0 %v2170_v52, %s1755_s24 }
 0x4c4   :  { %v760_v56 = vpop.permute.xlu1 %759 }
 0x4c5   :  { %1509 = vst.msk [vmem:[%s2397_s7 + $0x30] sm:$0xff] %vm65_vm0, %v760_v56  ;;  %1625 = vmatmul.msk.f32.vlgmr.msra.gmra.mxu1 %vm65_vm0, %v760_v56 }
 0x4c6   :  { %1295 = vmatpush.msra.mxu1 %v1911_v30 }
 0x4c8   :  { %1296 = vmatpush.msra.mxu1 %v1962_v40 }
 0x4ca   :  { %1297 = vmatpush.msra.mxu1 %v1969_v41 }
 0x4cc   :  { %1298 = vmatpush.msra.mxu1 %v1975_v42 }
 0x4d4   :  { %v695_v7 = vpop.permute.xlu0 %694 }
 0x4d5   :  { %1485 = vst.msk [vmem:[%s2398_s6 + $0x8] sm:$0xff] %vm65_vm0, %v695_v7  ;;  %1623 = vmatmul.msk.f32.vlgmr.msra.gmra.mxu0 %vm65_vm0, %v695_v7 }
 0x4d6   :  { %1230 = vmatpush.msra.mxu0 %v1829_v10 }
 0x4d8   :  { %1231 = vmatpush.msra.mxu0 %v1842_v13 }
 0x4da   :  { %1232 = vmatpush.msra.mxu0 %v1860_v18 }
 0x4dc   :  { %1233 = vmatpush.msra.mxu0 %v1906_v29 }
 0x542   :  { %v780_v26 = vpop.f32.mrf.mxu1 }
 0x543   :  { %v803_v59 = vadd.f32 %v780_v26, %v2107_v0  ;;  %v783_v5 = vadd.f32 %v780_v26, %v404_v3 }
 0x545   :  { %805 = vrot.lane.b32.xlu0 %v803_v59, %s1753_s16  ;;  %v1626_v6 = vmul.f32 -1.442695, %v783_v5 }
 0x552   :  { %v715_v60 = vpop.f32.mrf.mxu0 }
 0x553   :  { %v738_v61 = vadd.f32 %v715_v60, %v2097_v53  ;;  %v718_v62 = vadd.f32 %v715_v60, %v2079_v12 }
 0x555   :  { %740 = vrot.lane.b32.xlu2 %v738_v61, %s1753_s16  ;;  %v1624_v1 = vmul.f32 -1.442695, %v718_v62 }
 0x557   :  { %1679 = vpow2.f32 %v1624_v1 }
 0x558   :  { %1681 = vpow2.f32 %v1626_v6 }
 0x55d   :  { %v1680_v9 = vpop.eup %1679 }
 0x55e   :  { %v722_v14 = vadd.f32 1.0, %v1680_v9  ;;  %v1682_v15 = vpop.eup %1681 }
 0x55f   :  { %v787_v17 = vadd.f32 1.0, %v1682_v15 }
 0x560   :  { %1683 = vrcp.f32 %v722_v14  ;;  %v734_v54 = vand.u32 2147483648, %v722_v14  ;;  %vm728_vm3 = vweird.f32 %v722_v14  ;;  %v732_v25 = vand.u32 2147483647, %v722_v14 }
 0x561   :  { %1685 = vrcp.f32 %v787_v17  ;;  %v799_v43 = vand.u32 2147483648, %v787_v17  ;;  %vm793_vm7 = vweird.f32 %v787_v17  ;;  %v797_v44 = vand.u32 2147483647, %v787_v17 }
 0x562   :  { %v735_v32 = vor.u32 1.1754944e-38, %v734_v54  ;;  %vm733_vm5 = vcmp.eq.f32.partialorder %v732_v25, 8.507059e+37 }
 0x563   :  { %v800_v48 = vor.u32 1.1754944e-38, %v799_v43  ;;  %vm798_vm9 = vcmp.eq.f32.partialorder %v797_v44, 8.507059e+37 }
 0x566   :  { %v1684_v19 = vpop.eup %1683 }
 0x567   :  { %v724_v22 = vmul.f32 %v1684_v19, %v722_v14  ;;  %v1686_v23 = vpop.eup %1685  ;;  %vm729_vm2 = vweird.f32 %v1684_v19 }
 0x568   :  { %v789_v24 = vmul.f32 %v1686_v23, %v787_v17  ;;  %vm730_vm4 = vmor %vm728_vm3, %vm729_vm2  ;;  %vm794_vm6 = vweird.f32 %v1686_v23 }
 0x569   :  { %v725_v57 = vsub.f32 1.0, %v724_v22  ;;  %vm795_vm8 = vmor %vm793_vm7, %vm794_vm6 }
 0x56a   :  { %v790_v2 = vsub.f32 1.0, %v789_v24 }
 0x56b   :  { %v726_v16 = vmul.f32 %v1684_v19, %v725_v57 }
 0x56c   :  { %v791_v31 = vmul.f32 %v1686_v23, %v790_v2 }
 0x56d   :  { %v727_v63 = vadd.f32 %v1684_v19, %v726_v16 }
 0x56e   :  { %v792_v39 = vadd.f32 %v1686_v23, %v791_v31 }
 0x56f   :  { %v731_v58 = vsel %vm730_vm4, %v1684_v19, %v727_v63 }
 0x570   :  { %v736_v33 = vsel %vm733_vm5, %v735_v32, %v731_v58  ;;  %v796_v45 = vsel %vm795_vm8, %v1686_v23, %v792_v39 }
 0x571   :  { %v801_v50 = vsel %vm798_vm9, %v800_v48, %v796_v45  ;;  %v756_v14 = vmul.f32 %v736_v33, %v2170_v52  ;;  %v403_v52 = vadd.f32 %v2117_v8, %v2093_v46 }
 0x572   :  { %v815_v61 = vsub.f32 1.0, %v801_v50  ;;  %v821_v1 = vmul.f32 %v801_v50, %v2165_v49 }
 0x5af   :  { %v741_v34 = vpop.permute.xlu2 %740 }
 0x5b0   :  { %v743_v35 = vmul.f32 %v741_v34, %v736_v33 }
 0x5b2   :  { %745 = vrot.lane.b32.xlu1 %v743_v35, %s1753_s16 }
 0x5b7   :  { %v806_v4 = vpop.permute.xlu0 %805 }
 0x5b8   :  { %v808_v38 = vmul.f32 %v806_v4, %v801_v50 }
 0x5ba   :  { %810 = vrot.lane.b32.xlu2 %v808_v38, %s1753_s16 }
 0x614   :  { %v811_v51 = vpop.permute.xlu2 %810 }
 0x615   :  { %v813_v56 = vadd.f32 %v811_v51, %v404_v3  ;;  %v750_v3 = vsub.f32 1.0, %v736_v33 }
 0x617   :  { %1687 = vtanh.f32 %v813_v56 }
 0x61d   :  { %v1688_v7 = vpop.eup %1687 }
 0x61e   :  { %817 = vrot.lane.b32.xlu1 %v1688_v7, %s1755_s24 }
 0x624   :  { %v746_v26 = vpop.permute.xlu1 %745 }
 0x625   :  { %v748_v59 = vadd.f32 %v746_v26, %v2079_v12 }
 0x627   :  { %1689 = vtanh.f32 %v748_v59 }
 0x62d   :  { %v1690_v60 = vpop.eup %1689 }
 0x62e   :  { %752 = vrot.lane.b32.xlu0 %v1690_v60, %s1755_s24 }
 0x690   :  { %v818_v62 = vpop.permute.xlu1 %817 }
 0x691   :  { %v820_v5 = vmul.f32 %v818_v62, %v815_v61 }
 0x693   :  { %v2205_v6 = vadd.f32 %v821_v1, %v820_v5 }
 0x695   :  { %889 = vrot.lane.b32.xlu0 %v2205_v6, %s1755_s24 }
 0x6a0   :  { %v753_v9 = vpop.permute.xlu0 %752 }
 0x6a1   :  { %v755_v15 = vmul.f32 %v753_v9, %v750_v3 }
 0x6a3   :  { %v2210_v12 = vadd.f32 %v756_v14, %v755_v15 }
 0x6a5   :  { %824 = vrot.lane.b32.xlu2 %v2210_v12, %s1755_s24 }
 0x6ff   :  { %v825_v17 = vpop.permute.xlu2 %824 }
 0x700   :  { %1486 = vst.msk [vmem:[%s2398_s6 + $0x10] sm:$0xff] %vm65_vm0, %v825_v17  ;;  %1627 = vmatmul.msk.f32.vlgmr.msra.gmra.mxu2 %vm65_vm0, %v825_v17 }
 0x701   :  { %1360 = vmatpush.msra.mxu2 %v1829_v10 }
 0x703   :  { %1361 = vmatpush.msra.mxu2 %v1842_v13 }
 0x705   :  { %1362 = vmatpush.msra.mxu2 %v1860_v18 }
 0x707   :  { %v890_v49 = vpop.permute.xlu0 %889  ;;  %1363 = vmatpush.msra.mxu2 %v1906_v29 }
 0x708   :  { %1508 = vst.msk [vmem:[%s2397_s7 + $0x28] sm:$0xff] %vm65_vm0, %v890_v49  ;;  %1629 = vmatmul.msk.f32.vlgmr.msra.gmra.mxu3 %vm65_vm0, %v890_v49 }
 0x709   :  { %1425 = vmatpush.msra.mxu3 %v1911_v30 }
 0x70b   :  { %1426 = vmatpush.msra.mxu3 %v1962_v40 }
 0x70d   :  { %1427 = vmatpush.msra.mxu3 %v1969_v41 }
 0x70f   :  { %1428 = vmatpush.msra.mxu3 %v1975_v42 }
 0x783   :  { %v845_v10 = vpop.f32.mrf.mxu2 }
 0x784   :  { %v868_v13 = vadd.f32 %v845_v10, %v2097_v53  ;;  %v848_v41 = vadd.f32 %v845_v10, %v2083_v21 }
 0x786   :  { %870 = vrot.lane.b32.xlu1 %v868_v13, %s1753_s16  ;;  %v1628_v22 = vmul.f32 -1.442695, %v848_v41 }
 0x78b   :  { %v910_v18 = vpop.f32.mrf.mxu3 }
 0x78c   :  { %v933_v29 = vadd.f32 %v910_v18, %v2107_v0  ;;  %v913_v30 = vadd.f32 %v910_v18, %v403_v52 }
 0x78e   :  { %935 = vrot.lane.b32.xlu2 %v933_v29, %s1753_s16  ;;  %v1630_v19 = vmul.f32 -1.442695, %v913_v30 }
 0x790   :  { %1691 = vpow2.f32 %v1630_v19  ;;  %v402_v19 = vadd.f32 %v2117_v8, %v2089_v36 }
 0x796   :  { %v1692_v40 = vpop.eup %1691 }
 0x797   :  { %v917_v42 = vadd.f32 1.0, %v1692_v40 }
 0x799   :  { %1693 = vrcp.f32 %v917_v42  ;;  %v929_v25 = vand.u32 2147483648, %v917_v42  ;;  %vm923_vm11 = vweird.f32 %v917_v42  ;;  %v927_v58 = vand.u32 2147483647, %v917_v42 }
 0x79a   :  { %1695 = vpow2.f32 %v1628_v22 }
 0x79b   :  { %v930_v33 = vor.u32 1.1754944e-38, %v929_v25  ;;  %vm928_vm13 = vcmp.eq.f32.partialorder %v927_v58, 8.507059e+37 }
 0x79f   :  { %v1694_v57 = vpop.eup %1693 }
 0x7a0   :  { %v1696_v23 = vpop.eup %1695  ;;  %v919_v16 = vmul.f32 %v1694_v57, %v917_v42  ;;  %vm924_vm10 = vweird.f32 %v1694_v57 }
 0x7a1   :  { %v852_v24 = vadd.f32 1.0, %v1696_v23  ;;  %vm925_vm12 = vmor %vm923_vm11, %vm924_vm10 }
 0x7a2   :  { %v920_v63 = vsub.f32 1.0, %v919_v16 }
 0x7a3   :  { %1697 = vrcp.f32 %v852_v24  ;;  %v864_v48 = vand.u32 2147483648, %v852_v24  ;;  %vm858_vm15 = vweird.f32 %v852_v24  ;;  %v862_v4 = vand.u32 2147483647, %v852_v24 }
 0x7a4   :  { %v921_v2 = vmul.f32 %v1694_v57, %v920_v63 }
 0x7a5   :  { %v865_v38 = vor.u32 1.1754944e-38, %v864_v48  ;;  %vm863_vm2 = vcmp.eq.f32.partialorder %v862_v4, 8.507059e+37 }
 0x7a6   :  { %v922_v54 = vadd.f32 %v1694_v57, %v921_v2 }
 0x7a8   :  { %v926_v31 = vsel %vm925_vm12, %v1694_v57, %v922_v54 }
 0x7a9   :  { %v1698_v46 = vpop.eup %1697  ;;  %v931_v34 = vsel %vm928_vm13, %v930_v33, %v926_v31 }
 0x7aa   :  { %v854_v32 = vmul.f32 %v1698_v46, %v852_v24  ;;  %vm859_vm14 = vweird.f32 %v1698_v46  ;;  %v945_v17 = vsub.f32 1.0, %v931_v34  ;;  %v951_v10 = vmul.f32 %v931_v34, %v2205_v6 }
 0x7ab   :  { %vm860_vm1 = vmor %vm858_vm15, %vm859_vm14 }
 0x7ac   :  { %v855_v43 = vsub.f32 1.0, %v854_v32 }
 0x7ae   :  { %v856_v44 = vmul.f32 %v1698_v46, %v855_v43 }
 0x7b0   :  { %v857_v45 = vadd.f32 %v1698_v46, %v856_v44 }
 0x7b2   :  { %v861_v50 = vsel %vm860_vm1, %v1698_v46, %v857_v45 }
 0x7b3   :  { %v866_v56 = vsel %vm863_vm2, %v865_v38, %v861_v50 }
 0x7b4   :  { %v880_v5 = vsub.f32 1.0, %v866_v56  ;;  %v886_v9 = vmul.f32 %v866_v56, %v2210_v12 }
 0x7e8   :  { %v936_v35 = vpop.permute.xlu2 %935 }
 0x7e9   :  { %v938_v39 = vmul.f32 %v936_v35, %v931_v34 }
 0x7eb   :  { %940 = vrot.lane.b32.xlu1 %v938_v39, %s1753_s16 }
 0x7f8   :  { %v871_v51 = vpop.permute.xlu1 %870 }
 0x7f9   :  { %v873_v7 = vmul.f32 %v871_v51, %v866_v56 }
 0x7fb   :  { %875 = vrot.lane.b32.xlu0 %v873_v7, %s1753_s16 }
 0x85d   :  { %v941_v26 = vpop.permute.xlu1 %940 }
 0x85e   :  { %v943_v59 = vadd.f32 %v941_v26, %v403_v52 }
 0x860   :  { %1699 = vtanh.f32 %v943_v59 }
 0x866   :  { %v1700_v60 = vpop.eup %1699 }
 0x867   :  { %947 = vrot.lane.b32.xlu0 %v1700_v60, %s1755_s24 }
 0x86d   :  { %v876_v61 = vpop.permute.xlu0 %875 }
 0x86e   :  { %v878_v62 = vadd.f32 %v876_v61, %v2083_v21 }
 0x870   :  { %1701 = vtanh.f32 %v878_v62 }
 0x876   :  { %v1702_v1 = vpop.eup %1701 }
 0x877   :  { %882 = vrot.lane.b32.xlu2 %v1702_v1, %s1755_s24 }
 0x8d1   :  { %v883_v3 = vpop.permute.xlu2 %882 }
 0x8d2   :  { %v885_v14 = vmul.f32 %v883_v3, %v880_v5 }
 0x8d4   :  { %v2245_v15 = vadd.f32 %v886_v9, %v885_v14 }
 0x8d6   :  { %954 = vrot.lane.b32.xlu1 %v2245_v15, %s1755_s24 }
 0x8d9   :  { %v948_v49 = vpop.permute.xlu0 %947 }
 0x8da   :  { %v950_v13 = vmul.f32 %v948_v49, %v945_v17 }
 0x8dc   :  { %v2250_v21 = vadd.f32 %v951_v10, %v950_v13 }
 0x8de   :  { %1019 = vrot.lane.b32.xlu2 %v2250_v21, %s1755_s24 }
 0x938   :  { %v1020_v18 = vpop.permute.xlu2 %1019 }
 0x939   :  { %1507 = vst.msk [vmem:[%s2397_s7 + $0x20] sm:$0xff] %vm65_vm0, %v1020_v18  ;;  %1633 = vmatmul.msk.f32.vlgmr.msrb.gmra.mxu1 %vm65_vm0, %v1020_v18 }
 0x948   :  { %v955_v12 = vpop.permute.xlu1 %954 }
 0x949   :  { %1487 = vst.msk [vmem:[%s2398_s6 + $0x18] sm:$0xff] %vm65_vm0, %v955_v12  ;;  %1631 = vmatmul.msk.f32.vlgmr.msrb.gmra.mxu0 %vm65_vm0, %v955_v12 }
 0x9b6   :  { %v1040_v6 = vpop.f32.mrf.mxu1 }
 0x9b7   :  { %v1063_v29 = vadd.f32 %v1040_v6, %v2107_v0  ;;  %v1043_v40 = vadd.f32 %v1040_v6, %v402_v19 }
 0x9b9   :  { %1065 = vrot.lane.b32.xlu1 %v1063_v29, %s1753_s16  ;;  %v1634_v41 = vmul.f32 -1.442695, %v1043_v40 }
 0x9bb   :  { %1703 = vpow2.f32 %v1634_v41  ;;  %v401_v41 = vadd.f32 %v2117_v8, %v2085_v27 }
 0x9c1   :  { %v1704_v42 = vpop.eup %1703 }
 0x9c2   :  { %v1047_v57 = vadd.f32 1.0, %v1704_v42 }
 0x9c4   :  { %1705 = vrcp.f32 %v1047_v57  ;;  %v1059_v58 = vand.u32 2147483648, %v1047_v57  ;;  %vm1053_vm4 = vweird.f32 %v1047_v57  ;;  %v1057_v31 = vand.u32 2147483647, %v1047_v57 }
 0x9c6   :  { %v975_v52 = vpop.f32.mrf.mxu0  ;;  %v1060_v34 = vor.u32 1.1754944e-38, %v1059_v58  ;;  %vm1058_vm6 = vcmp.eq.f32.partialorder %v1057_v31, 8.507059e+37 }
 0x9c7   :  { %v998_v30 = vadd.f32 %v975_v52, %v2097_v53  ;;  %v978_v22 = vadd.f32 %v975_v52, %v2087_v28 }
 0x9c9   :  { %1000 = vrot.lane.b32.xlu0 %v998_v30, %s1753_s16  ;;  %v1632_v23 = vmul.f32 -1.442695, %v978_v22 }
 0x9ca   :  { %v1706_v16 = vpop.eup %1705 }
 0x9cb   :  { %1707 = vpow2.f32 %v1632_v23  ;;  %v1049_v63 = vmul.f32 %v1706_v16, %v1047_v57  ;;  %vm1054_vm3 = vweird.f32 %v1706_v16 }
 0x9cc   :  { %vm1055_vm5 = vmor %vm1053_vm4, %vm1054_vm3 }
 0x9cd   :  { %v1050_v54 = vsub.f32 1.0, %v1049_v63 }
 0x9cf   :  { %v1051_v46 = vmul.f32 %v1706_v16, %v1050_v54 }
 0x9d1   :  { %v1708_v24 = vpop.eup %1707  ;;  %v1052_v25 = vadd.f32 %v1706_v16, %v1051_v46 }
 0x9d2   :  { %v982_v2 = vadd.f32 1.0, %v1708_v24 }
 0x9d3   :  { %v1056_v32 = vsel %vm1055_vm5, %v1706_v16, %v1052_v25 }
 0x9d4   :  { %1709 = vrcp.f32 %v982_v2  ;;  %v1061_v39 = vsel %vm1058_vm6, %v1060_v34, %v1056_v32  ;;  %v994_v4 = vand.u32 2147483648, %v982_v2  ;;  %vm988_vm8 = vweird.f32 %v982_v2 }
 0x9d5   :  { %v992_v50 = vand.u32 2147483647, %v982_v2  ;;  %v1075_v3 = vsub.f32 1.0, %v1061_v39  ;;  %v1081_v14 = vmul.f32 %v1061_v39, %v2250_v21 }
 0x9d6   :  { %v995_v51 = vor.u32 1.1754944e-38, %v994_v4 }
 0x9d7   :  { %vm993_vm10 = vcmp.eq.f32.partialorder %v992_v50, 8.507059e+37 }
 0x9da   :  { %v1710_v36 = vpop.eup %1709 }
 0x9db   :  { %v984_v33 = vmul.f32 %v1710_v36, %v982_v2  ;;  %vm989_vm7 = vweird.f32 %v1710_v36 }
 0x9dc   :  { %vm990_vm9 = vmor %vm988_vm8, %vm989_vm7 }
 0x9dd   :  { %v985_v44 = vsub.f32 1.0, %v984_v33 }
 0x9df   :  { %v986_v45 = vmul.f32 %v1710_v36, %v985_v44 }
 0x9e1   :  { %v987_v48 = vadd.f32 %v1710_v36, %v986_v45 }
 0x9e3   :  { %v991_v38 = vsel %vm990_vm9, %v1710_v36, %v987_v48 }
 0x9e4   :  { %v996_v7 = vsel %vm993_vm10, %v995_v51, %v991_v38 }
 0x9e5   :  { %v1016_v13 = vmul.f32 %v996_v7, %v2245_v15 }
 0xa2b   :  { %v1066_v35 = vpop.permute.xlu1 %1065 }
 0xa2c   :  { %v1068_v43 = vmul.f32 %v1066_v35, %v1061_v39 }
 0xa2e   :  { %1070 = vrot.lane.b32.xlu0 %v1068_v43, %s1753_s16 }
 0xa3b   :  { %v1001_v56 = vpop.permute.xlu0 %1000 }
 0xa3c   :  { %v1003_v26 = vmul.f32 %v1001_v56, %v996_v7 }
 0xa3e   :  { %1005 = vrot.lane.b32.xlu2 %v1003_v26, %s1753_s16 }
 0xa98   :  { %v1006_v59 = vpop.permute.xlu2 %1005 }
 0xa99   :  { %v1008_v60 = vadd.f32 %v1006_v59, %v2087_v28  ;;  %v1010_v28 = vsub.f32 1.0, %v996_v7 }
 0xa9b   :  { %1711 = vtanh.f32 %v1008_v60 }
 0xaa0   :  { %v1071_v61 = vpop.permute.xlu0 %1070 }
 0xaa1   :  { %v1712_v62 = vpop.eup %1711  ;;  %v1073_v1 = vadd.f32 %v1071_v61, %v402_v19 }
 0xaa2   :  { %1012 = vrot.lane.b32.xlu1 %v1712_v62, %s1755_s24 }
 0xaa3   :  { %1713 = vtanh.f32 %v1073_v1 }
 0xaa9   :  { %v1714_v5 = vpop.eup %1713 }
 0xaaa   :  { %1077 = vrot.lane.b32.xlu2 %v1714_v5, %s1755_s24 }
 0xb04   :  { %v1078_v9 = vpop.permute.xlu2 %1077 }
 0xb05   :  { %v1080_v17 = vmul.f32 %v1078_v9, %v1075_v3 }
 0xb07   :  { %v2277_v49 = vadd.f32 %v1081_v14, %v1080_v17 }
 0xb09   :  { %1149 = vrot.lane.b32.xlu1 %v2277_v49, %s1755_s24 }
 0xb14   :  { %v1013_v10 = vpop.permute.xlu1 %1012 }
 0xb15   :  { %v1015_v18 = vmul.f32 %v1013_v10, %v1010_v28 }
 0xb17   :  { %v2282_v12 = vadd.f32 %v1016_v13, %v1015_v18 }
 0xb19   :  { %1084 = vrot.lane.b32.xlu0 %v2282_v12, %s1755_s24 }
 0xb7b   :  { %v1150_v6 = vpop.permute.xlu1 %1149 }
 0xb7c   :  { %1506 = vst.msk [vmem:[%s2397_s7 + $0x18] sm:$0xff] %vm65_vm0, %v1150_v6  ;;  %1637 = vmatmul.msk.f32.vlgmr.msrb.gmra.mxu3 %vm65_vm0, %v1150_v6 }
 0xb8b   :  { %v1085_v21 = vpop.permute.xlu0 %1084 }
 0xb8c   :  { %1488 = vst.msk [vmem:[%s2398_s6 + $0x20] sm:$0xff] %vm65_vm0, %v1085_v21  ;;  %1635 = vmatmul.msk.f32.vlgmr.msrb.gmra.mxu2 %vm65_vm0, %v1085_v21 }
 0xbff   :  { %v1170_v15 = vpop.f32.mrf.mxu3 }
 0xc00   :  { %v1193_v29 = vadd.f32 %v1170_v15, %v2107_v0  ;;  %v1173_v42 = vadd.f32 %v1170_v15, %v401_v41 }
 0xc02   :  { %1195 = vrot.lane.b32.xlu0 %v1193_v29, %s1753_s16  ;;  %v1638_v22 = vmul.f32 -1.442695, %v1173_v42  ;;  %v2335_v29 = vld [vmem:[%s2395_s4 + $0x1] ss:$0 sm:$0xff] }
 0xc0f   :  { %v1105_v52 = vpop.f32.mrf.mxu2 }
 0xc10   :  { %v1128_v30 = vadd.f32 %v1105_v52, %v2097_v53  ;;  %v1108_v19 = vadd.f32 %v1105_v52, %v2091_v37  ;;  %v400_v52 = vadd.f32 %v2335_v29, %v2081_v20 }
 0xc12   :  { %1130 = vrot.lane.b32.xlu2 %v1128_v30, %s1753_s16  ;;  %v1636_v40 = vmul.f32 -1.442695, %v1108_v19 }
 0xc14   :  { %1715 = vpow2.f32 %v1636_v40 }
 0xc15   :  { %1717 = vpow2.f32 %v1638_v22 }
 0xc1a   :  { %v1716_v57 = vpop.eup %1715 }
 0xc1b   :  { %v1112_v23 = vadd.f32 1.0, %v1716_v57  ;;  %v1718_v16 = vpop.eup %1717 }
 0xc1c   :  { %v1177_v24 = vadd.f32 1.0, %v1718_v16 }
 0xc1d   :  { %1719 = vrcp.f32 %v1112_v23  ;;  %v1124_v27 = vand.u32 2147483648, %v1112_v23  ;;  %vm1118_vm12 = vweird.f32 %v1112_v23  ;;  %v1122_v8 = vand.u32 2147483647, %v1112_v23 }
 0xc1e   :  { %1721 = vrcp.f32 %v1177_v24  ;;  %v1189_v45 = vand.u32 2147483648, %v1177_v24  ;;  %vm1183_vm1 = vweird.f32 %v1177_v24  ;;  %v1187_v48 = vand.u32 2147483647, %v1177_v24 }
 0xc1f   :  { %v1125_v34 = vor.u32 1.1754944e-38, %v1124_v27  ;;  %vm1123_vm14 = vcmp.eq.f32.partialorder %v1122_v8, 8.507059e+37 }
 0xc20   :  { %v1190_v50 = vor.u32 1.1754944e-38, %v1189_v45  ;;  %vm1188_vm3 = vcmp.eq.f32.partialorder %v1187_v48, 8.507059e+37 }
 0xc23   :  { %v1720_v63 = vpop.eup %1719 }
 0xc24   :  { %v1114_v2 = vmul.f32 %v1720_v63, %v1112_v23  ;;  %v1722_v46 = vpop.eup %1721  ;;  %vm1119_vm11 = vweird.f32 %v1720_v63 }
 0xc25   :  { %v1179_v36 = vmul.f32 %v1722_v46, %v1177_v24  ;;  %vm1120_vm13 = vmor %vm1118_vm12, %vm1119_vm11  ;;  %vm1184_vm15 = vweird.f32 %v1722_v46 }
 0xc26   :  { %v1115_v54 = vsub.f32 1.0, %v1114_v2  ;;  %vm1185_vm2 = vmor %vm1183_vm1, %vm1184_vm15 }
 0xc27   :  { %v1180_v31 = vsub.f32 1.0, %v1179_v36 }
 0xc28   :  { %v1116_v25 = vmul.f32 %v1720_v63, %v1115_v54 }
 0xc29   :  { %v1181_v33 = vmul.f32 %v1722_v46, %v1180_v31 }
 0xc2a   :  { %v1117_v58 = vadd.f32 %v1720_v63, %v1116_v25 }
 0xc2b   :  { %v1182_v44 = vadd.f32 %v1722_v46, %v1181_v33 }
 0xc2c   :  { %v1121_v32 = vsel %vm1120_vm13, %v1720_v63, %v1117_v58 }
 0xc2d   :  { %v1126_v35 = vsel %vm1123_vm14, %v1125_v34, %v1121_v32  ;;  %v1186_v4 = vsel %vm1185_vm2, %v1722_v46, %v1182_v44 }
 0xc2e   :  { %v1191_v51 = vsel %vm1188_vm3, %v1190_v50, %v1186_v4  ;;  %v1140_v17 = vsub.f32 1.0, %v1126_v35  ;;  %v1146_v10 = vmul.f32 %v1126_v35, %v2282_v12 }
 0xc2f   :  { %v1205_v1 = vsub.f32 1.0, %v1191_v51  ;;  %v1211_v3 = vmul.f32 %v1191_v51, %v2277_v49 }
 0xc6c   :  { %v1131_v39 = vpop.permute.xlu2 %1130 }
 0xc6d   :  { %v1133_v43 = vmul.f32 %v1131_v39, %v1126_v35 }
 0xc6f   :  { %1135 = vrot.lane.b32.xlu1 %v1133_v43, %s1753_s16 }
 0xc74   :  { %v1196_v38 = vpop.permute.xlu0 %1195 }
 0xc75   :  { %v1198_v56 = vmul.f32 %v1196_v38, %v1191_v51 }
 0xc77   :  { %1200 = vrot.lane.b32.xlu2 %v1198_v56, %s1753_s16 }
 0xcd1   :  { %v1201_v7 = vpop.permute.xlu2 %1200 }
 0xcd2   :  { %v1203_v26 = vadd.f32 %v1201_v7, %v401_v41 }
 0xcd4   :  { %1723 = vtanh.f32 %v1203_v26 }
 0xcda   :  { %v1724_v59 = vpop.eup %1723 }
 0xcdb   :  { %1207 = vrot.lane.b32.xlu1 %v1724_v59, %s1755_s24 }
 0xce1   :  { %v1136_v60 = vpop.permute.xlu1 %1135 }
 0xce2   :  { %v1138_v61 = vadd.f32 %v1136_v60, %v2091_v37 }
 0xce4   :  { %1725 = vtanh.f32 %v1138_v61 }
 0xcea   :  { %v1726_v62 = vpop.eup %1725 }
 0xceb   :  { %1142 = vrot.lane.b32.xlu0 %v1726_v62, %s1755_s24 }
 0xd4d   :  { %v1208_v5 = vpop.permute.xlu1 %1207 }
 0xd4e   :  { %v1210_v9 = vmul.f32 %v1208_v5, %v1205_v1 }
 0xd50   :  { %v2309_v14 = vadd.f32 %v1211_v3, %v1210_v9 }
 0xd52   :  { %1279 = vrot.lane.b32.xlu0 %v2309_v14, %s1755_s24 }
 0xd5d   :  { %v1143_v28 = vpop.permute.xlu0 %1142 }
 0xd5e   :  { %v1145_v13 = vmul.f32 %v1143_v28, %v1140_v17 }
 0xd60   :  { %v2314_v37 = vadd.f32 %v1146_v10, %v1145_v13 }
 0xd62   :  { %1214 = vrot.lane.b32.xlu2 %v2314_v37, %s1755_s24 }
 0xdbc   :  { %v1215_v18 = vpop.permute.xlu2 %1214 }
 0xdbd   :  { %1489 = vst.msk [vmem:[%s2398_s6 + $0x28] sm:$0xff] %vm65_vm0, %v1215_v18  ;;  %1639 = vmatmul.msk.f32.vlgmr.msra.gmra.mxu0 %vm65_vm0, %v1215_v18 }
 0xdc4   :  { %v1280_v49 = vpop.permute.xlu0 %1279 }
 0xdc5   :  { %1505 = vst.msk [vmem:[%s2397_s7 + $0x10] sm:$0xff] %vm65_vm0, %v1280_v49  ;;  %1641 = vmatmul.msk.f32.vlgmr.msra.gmra.mxu1 %vm65_vm0, %v1280_v49 }
 0xe3a   :  { %v1235_v12 = vpop.f32.mrf.mxu0 }
 0xe3b   :  { %v1258_v6 = vadd.f32 %v1235_v12, %v2097_v53  ;;  %v1238_v41 = vadd.f32 %v1235_v12, %v2095_v47  ;;  %v399_v12 = vadd.f32 %v2335_v29, %v2077_v11 }
 0xe3d   :  { %1260 = vrot.lane.b32.xlu1 %v1258_v6, %s1753_s16  ;;  %v1640_v22 = vmul.f32 -1.442695, %v1238_v41 }
 0xe42   :  { %v1300_v21 = vpop.f32.mrf.mxu1 }
 0xe43   :  { %v1323_v15 = vadd.f32 %v1300_v21, %v2107_v0  ;;  %v1303_v30 = vadd.f32 %v1300_v21, %v400_v52 }
 0xe45   :  { %1325 = vrot.lane.b32.xlu2 %v1323_v15, %s1753_s16  ;;  %v1642_v19 = vmul.f32 -1.442695, %v1303_v30 }
 0xe47   :  { %1727 = vpow2.f32 %v1642_v19 }
 0xe4d   :  { %v1728_v40 = vpop.eup %1727 }
 0xe4e   :  { %v1307_v42 = vadd.f32 1.0, %v1728_v40 }
 0xe50   :  { %1729 = vrcp.f32 %v1307_v42  ;;  %v1319_v46 = vand.u32 2147483648, %v1307_v42  ;;  %vm1313_vm5 = vweird.f32 %v1307_v42  ;;  %v1317_v25 = vand.u32 2147483647, %v1307_v42 }
 0xe51   :  { %1731 = vpow2.f32 %v1640_v22 }
 0xe52   :  { %v1320_v31 = vor.u32 1.1754944e-38, %v1319_v46  ;;  %vm1318_vm7 = vcmp.eq.f32.partialorder %v1317_v25, 8.507059e+37 }
 0xe56   :  { %v1730_v57 = vpop.eup %1729 }
 0xe57   :  { %v1732_v23 = vpop.eup %1731  ;;  %v1309_v16 = vmul.f32 %v1730_v57, %v1307_v42  ;;  %vm1314_vm4 = vweird.f32 %v1730_v57 }
 0xe58   :  { %v1242_v24 = vadd.f32 1.0, %v1732_v23  ;;  %vm1315_vm6 = vmor %vm1313_vm5, %vm1314_vm4 }
 0xe59   :  { %v1310_v63 = vsub.f32 1.0, %v1309_v16 }
 0xe5a   :  { %1733 = vrcp.f32 %v1242_v24  ;;  %v1254_v39 = vand.u32 2147483648, %v1242_v24  ;;  %vm1248_vm9 = vweird.f32 %v1242_v24  ;;  %v1252_v43 = vand.u32 2147483647, %v1242_v24 }
 0xe5b   :  { %v1311_v2 = vmul.f32 %v1730_v57, %v1310_v63 }
 0xe5c   :  { %v1255_v45 = vor.u32 1.1754944e-38, %v1254_v39  ;;  %vm1253_vm11 = vcmp.eq.f32.partialorder %v1252_v43, 8.507059e+37 }
 0xe5d   :  { %v1312_v54 = vadd.f32 %v1730_v57, %v1311_v2 }
 0xe5f   :  { %v1316_v36 = vsel %vm1315_vm6, %v1730_v57, %v1312_v54 }
 0xe60   :  { %v1734_v20 = vpop.eup %1733  ;;  %v1321_v27 = vsel %vm1318_vm7, %v1320_v31, %v1316_v36 }
 0xe61   :  { %v1244_v58 = vmul.f32 %v1734_v20, %v1242_v24  ;;  %vm1249_vm8 = vweird.f32 %v1734_v20  ;;  %v1335_v3 = vsub.f32 1.0, %v1321_v27  ;;  %v1341_v17 = vmul.f32 %v1321_v27, %v2309_v14 }
 0xe62   :  { %vm1250_vm10 = vmor %vm1248_vm9, %vm1249_vm8 }
 0xe63   :  { %v1245_v33 = vsub.f32 1.0, %v1244_v58 }
 0xe65   :  { %v1246_v34 = vmul.f32 %v1734_v20, %v1245_v33 }
 0xe67   :  { %v1247_v35 = vadd.f32 %v1734_v20, %v1246_v34 }
 0xe69   :  { %v1251_v44 = vsel %vm1250_vm10, %v1734_v20, %v1247_v35 }
 0xe6a   :  { %v1256_v4 = vsel %vm1253_vm11, %v1255_v45, %v1251_v44 }
 0xe6b   :  { %v1270_v60 = vsub.f32 1.0, %v1256_v4  ;;  %v1276_v62 = vmul.f32 %v1256_v4, %v2314_v37 }
 0xe9f   :  { %v1326_v8 = vpop.permute.xlu2 %1325 }
 0xea0   :  { %v1328_v32 = vmul.f32 %v1326_v8, %v1321_v27 }
 0xea2   :  { %1330 = vrot.lane.b32.xlu1 %v1328_v32, %s1753_s16 }
 0xeaf   :  { %v1261_v48 = vpop.permute.xlu1 %1260 }
 0xeb0   :  { %v1263_v50 = vmul.f32 %v1261_v48, %v1256_v4 }
 0xeb2   :  { %1265 = vrot.lane.b32.xlu0 %v1263_v50, %s1753_s16 }
 0xf14   :  { %v1331_v38 = vpop.permute.xlu1 %1330 }
 0xf15   :  { %v1333_v51 = vadd.f32 %v1331_v38, %v400_v52 }
 0xf17   :  { %1735 = vtanh.f32 %v1333_v51 }
 0xf1d   :  { %v1736_v56 = vpop.eup %1735 }
 0xf1e   :  { %1337 = vrot.lane.b32.xlu0 %v1736_v56, %s1755_s24 }
 0xf24   :  { %v1266_v7 = vpop.permute.xlu0 %1265 }
 0xf25   :  { %v1268_v26 = vadd.f32 %v1266_v7, %v2095_v47 }
 0xf27   :  { %1737 = vtanh.f32 %v1268_v26 }
 0xf2d   :  { %v1738_v59 = vpop.eup %1737 }
 0xf2e   :  { %1272 = vrot.lane.b32.xlu2 %v1738_v59, %s1755_s24 }
 0xf88   :  { %v1273_v61 = vpop.permute.xlu2 %1272 }
 0xf89   :  { %v1275_v1 = vmul.f32 %v1273_v61, %v1270_v60 }
 0xf8b   :  { %v2346_v5 = vadd.f32 %v1276_v62, %v1275_v1 }
 0xf8d   :  { %1344 = vrot.lane.b32.xlu1 %v2346_v5, %s1755_s24 }
 0xf90   :  { %v1338_v9 = vpop.permute.xlu0 %1337 }
 0xf91   :  { %v1340_v28 = vmul.f32 %v1338_v9, %v1335_v3 }
 0xf93   :  { %v2351_v47 = vadd.f32 %v1341_v17, %v1340_v28 }
 0xf95   :  { %1409 = vrot.lane.b32.xlu2 %v2351_v47, %s1755_s24 }
 0xfef   :  { %v1410_v10 = vpop.permute.xlu2 %1409 }
 0xff0   :  { %1504 = vst.msk [vmem:[%s2397_s7 + $0x8] sm:$0xff] %vm65_vm0, %v1410_v10  ;;  %1645 = vmatmul.msk.f32.vlgmr.msra.gmra.mxu3 %vm65_vm0, %v1410_v10 }
 0xfff   :  { %v1345_v13 = vpop.permute.xlu1 %1344 }
0x1000   :  { %1490 = vst.msk [vmem:[%s2398_s6 + $0x30] sm:$0xff] %vm65_vm0, %v1345_v13  ;;  %1643 = vmatmul.msk.f32.vlgmr.msra.gmra.mxu2 %vm65_vm0, %v1345_v13 }
0x1073   :  { %v1430_v14 = vpop.f32.mrf.mxu3 }
0x1074   :  { %v1453_v37 = vadd.f32 %v1430_v14, %v2107_v0  ;;  %v1433_v6 = vadd.f32 %v1430_v14, %v399_v12 }
0x1076   :  { %1455 = vrot.lane.b32.xlu1 %v1453_v37, %s1753_s16  ;;  %v1646_v21 = vmul.f32 -1.442695, %v1433_v6 }
0x1078   :  { %1739 = vpow2.f32 %v1646_v21 }
0x107e   :  { %v1740_v15 = vpop.eup %1739 }
0x107f   :  { %v1437_v30 = vadd.f32 1.0, %v1740_v15 }
0x1081   :  { %1741 = vrcp.f32 %v1437_v30  ;;  %v1449_v29 = vand.u32 2147483648, %v1437_v30  ;;  %vm1443_vm13 = vweird.f32 %v1437_v30  ;;  %v1447_v23 = vand.u32 2147483647, %v1437_v30 }
0x1083   :  { %v1365_v18 = vpop.f32.mrf.mxu2  ;;  %v1450_v63 = vor.u32 1.1754944e-38, %v1449_v29  ;;  %vm1448_vm15 = vcmp.eq.f32.partialorder %v1447_v23, 8.507059e+37 }
0x1084   :  { %v1388_v49 = vadd.f32 %v1365_v18, %v2097_v53  ;;  %v1368_v52 = vadd.f32 %v1365_v18, %v2101_v55 }
0x1086   :  { %1390 = vrot.lane.b32.xlu0 %v1388_v49, %s1753_s16  ;;  %v1644_v19 = vmul.f32 -1.442695, %v1368_v52 }
0x1087   :  { %v1742_v0 = vpop.eup %1741 }
0x1088   :  { %1743 = vpow2.f32 %v1644_v19  ;;  %v1439_v41 = vmul.f32 %v1742_v0, %v1437_v30  ;;  %vm1444_vm12 = vweird.f32 %v1742_v0 }
0x1089   :  { %vm1445_vm14 = vmor %vm1443_vm13, %vm1444_vm12 }
0x108a   :  { %v1440_v53 = vsub.f32 1.0, %v1439_v41 }
0x108c   :  { %v1441_v22 = vmul.f32 %v1742_v0, %v1440_v53 }
0x108e   :  { %v1744_v40 = vpop.eup %1743  ;;  %v1442_v57 = vadd.f32 %v1742_v0, %v1441_v22 }
0x108f   :  { %v1372_v42 = vadd.f32 1.0, %v1744_v40 }
0x1090   :  { %v1446_v16 = vsel %vm1445_vm14, %v1742_v0, %v1442_v57 }
0x1091   :  { %1745 = vrcp.f32 %v1372_v42  ;;  %v1451_v54 = vsel %vm1448_vm15, %v1450_v63, %v1446_v16  ;;  %v1384_v58 = vand.u32 2147483648, %v1372_v42  ;;  %vm1378_vm2 = vweird.f32 %v1372_v42 }
0x1092   :  { %v1382_v31 = vand.u32 2147483647, %v1372_v42  ;;  %v1465_v4 = vsub.f32 1.0, %v1451_v54  ;;  %v1471_v38 = vmul.f32 %v1451_v54, %v2351_v47 }
0x1093   :  { %v1385_v8 = vor.u32 1.1754944e-38, %v1384_v58 }
0x1094   :  { %vm1383_vm4 = vcmp.eq.f32.partialorder %v1382_v31, 8.507059e+37 }
0x1097   :  { %v1746_v11 = vpop.eup %1745 }
0x1098   :  { %v1374_v24 = vmul.f32 %v1746_v11, %v1372_v42  ;;  %vm1379_vm1 = vweird.f32 %v1746_v11 }
0x1099   :  { %vm1380_vm3 = vmor %vm1378_vm2, %vm1379_vm1 }
0x109a   :  { %v1375_v46 = vsub.f32 1.0, %v1374_v24 }
0x109c   :  { %v1376_v25 = vmul.f32 %v1746_v11, %v1375_v46 }
0x109e   :  { %v1377_v36 = vadd.f32 %v1746_v11, %v1376_v25 }
0x10a0   :  { %v1381_v27 = vsel %vm1380_vm3, %v1746_v11, %v1377_v36 }
0x10a1   :  { %v1386_v33 = vsel %vm1383_vm4, %v1385_v8, %v1381_v27 }
0x10a2   :  { %v1400_v7 = vsub.f32 1.0, %v1386_v33  ;;  %v1406_v26 = vmul.f32 %v1386_v33, %v2346_v5 }
0x10e8   :  { %v1456_v2 = vpop.permute.xlu1 %1455 }
0x10e9   :  { %v1458_v20 = vmul.f32 %v1456_v2, %v1451_v54 }
0x10eb   :  { %1460 = vrot.lane.b32.xlu0 %v1458_v20, %s1753_s16 }
0x10f8   :  { %v1391_v32 = vpop.permute.xlu0 %1390 }
0x10f9   :  { %v1393_v34 = vmul.f32 %v1391_v32, %v1386_v33 }
0x10fb   :  { %1395 = vrot.lane.b32.xlu2 %v1393_v34, %s1753_s16 }
0x1155   :  { %v1396_v35 = vpop.permute.xlu2 %1395 }
0x1156   :  { %v1398_v39 = vadd.f32 %v1396_v35, %v2101_v55 }
0x1158   :  { %1747 = vtanh.f32 %v1398_v39 }
0x115d   :  { %v1461_v43 = vpop.permute.xlu0 %1460 }
0x115e   :  { %v1748_v44 = vpop.eup %1747  ;;  %v1463_v45 = vadd.f32 %v1461_v43, %v399_v12 }
0x115f   :  { %1402 = vrot.lane.b32.xlu1 %v1748_v44, %s1755_s24 }
0x1160   :  { %1749 = vtanh.f32 %v1463_v45 }
0x1166   :  { %v1750_v48 = vpop.eup %1749 }
0x1167   :  { %1467 = vrot.lane.b32.xlu2 %v1750_v48, %s1755_s24 }
0x11c1   :  { %v1468_v50 = vpop.permute.xlu2 %1467 }
0x11c2   :  { %v1470_v51 = vmul.f32 %v1468_v50, %v1465_v4 }
0x11c4   :  { %v1472_v56 = vadd.f32 %v1471_v38, %v1470_v51 }
0x11c6   :  { %1493 = vrot.lane.b32.xlu1 %v1472_v56, %s1755_s24 }
0x11d1   :  { %v1403_v55 = vpop.permute.xlu1 %1402 }
0x11d2   :  { %v1405_v59 = vmul.f32 %v1403_v55, %v1400_v7 }
0x11d4   :  { %v1407_v60 = vadd.f32 %v1406_v26, %v1405_v59 }
0x11d6   :  { %1474 = vrot.lane.b32.xlu0 %v1407_v60, %s1755_s24 }
0x1238   :  { %v1494_v61 = vpop.permute.xlu1 %1493 }
0x1239   :  { %1503 = vst.msk [vmem:[%s2397_s7] sm:$0xff] %vm65_vm0, %v1494_v61 }
0x123a   :  { %1512 = vst.msk [vmem:[#allocation3] sm:$0xff] %vm65_vm0, %v1494_v61 }
0x1248   :  { %v1475_v62 = vpop.permute.xlu0 %1474 }
0x1249   :  { %1491 = vst.msk [vmem:[%s2398_s6 + $0x38] sm:$0xff] %vm65_vm0, %v1475_v62 }
0x124a   :  { %1511 = vst.msk [vmem:[#allocation2] sm:$0xff] %vm65_vm0, %v1475_v62 }

</bundles_post_ra>
